<compile_context>
chip_gen: v5e
topology: v5e:2x2
jax: 0.10.0
libtpu: 0.0.40
codegen_flags: <defaults>
</compile_context>

<pallas_src>
import jax
import jax.numpy as jnp
from jax.experimental import pallas as pl
from jax.experimental.pallas import tpu as pltpu


def conv3x3_bn_relu_kernel(x_ref, w_ref, b_ref, o_ref):
    """One image per grid step.

    x_ref: (1, H+2, W+2, Cin)  bf16  zero-padded NHWC activation tile
    w_ref: (9, Cin, Coutp)     bf16  3x3 weights with BN scale folded in
    b_ref: (1, Coutp)          f32   folded BN bias
    o_ref: (1, H*W, Coutp)     f32   conv + BN + ReLU output (flattened H*W)
    """
    Cin = x_ref.shape[3]
    HW, Coutp = o_ref.shape[1], o_ref.shape[2]
    H, W = x_ref.shape[1] - 2, x_ref.shape[2] - 2

    acc = jnp.zeros((HW, Coutp), jnp.float32)
    # 3x3 conv = 9 statically shifted (H*W, Cin) x (Cin, Coutp) MXU matmuls.
    for kh in range(3):
        for kw in range(3):
            xs = x_ref[0, kh:kh + H, kw:kw + W, :].reshape(HW, Cin)
            acc = acc + jnp.dot(xs, w_ref[kh * 3 + kw],
                                preferred_element_type=jnp.float32)

    y = acc + b_ref[...]                      # (1, Coutp) broadcasts over rows
    o_ref[0] = jnp.maximum(y, 0.0).astype(o_ref.dtype)


def chain_block_forward(x, weight, gamma, beta, running_mean, running_var,
                        eps=1e-5):
    """x: (N, Cin, H, W) f32.  weight: (Cout, Cin, 3, 3).  Returns NCHW f32."""
    N, C, H, W = x.shape
    Cout, Cin, KH, KW = weight.shape
    assert C == Cin and KH == 3 and KW == 3

    # ---- layout glue: NCHW -> NHWC, zero-pad spatial halo, bf16 operands ----
    # (In a chain of blocks keep activations NHWC between blocks; these
    #  transposes belong only at network entry/exit.)
    x_nhwc = jnp.transpose(x, (0, 2, 3, 1))
    x_pad = jnp.pad(x_nhwc, ((0, 0), (1, 1), (1, 1), (0, 0))).astype(jnp.bfloat16)

    # ---- fold BatchNorm (inference) into weight/bias ----
    scale = gamma / jnp.sqrt(running_var + eps)
    bias = beta - running_mean * scale
    # (Cout, Cin, 3, 3) -> (3, 3, Cin, Cout) -> (9, Cin, Cout), scale folded in.
    w = jnp.transpose(weight, (2, 3, 1, 0)).reshape(KH * KW, Cin, Cout)
    w = w * scale[None, None, :]

    # Lane-dense output channel padding (zeros are exact; sliced off after).
    Coutp = max(128, ((Cout + 127) // 128) * 128)
    w_p = jnp.zeros((9, Cin, Coutp), jnp.float32).at[:, :, :Cout].set(w)
    w_p = w_p.astype(jnp.bfloat16)
    b_p = jnp.zeros((1, Coutp), jnp.float32).at[0, :Cout].set(bias)

    HW = H * W
    out_p = pl.pallas_call(
        conv3x3_bn_relu_kernel,
        out_shape=jax.ShapeDtypeStruct((N, HW, Coutp), jnp.float32),
        grid=(N,),
        in_specs=[
            # Per-image padded activation tile, pipelined over the batch grid.
            pl.BlockSpec((1, H + 2, W + 2, Cin), lambda n: (n, 0, 0, 0)),
            # Weights / bias: constant block index -> stay VMEM-resident.
            pl.BlockSpec((9, Cin, Coutp), lambda n: (0, 0, 0)),
            pl.BlockSpec((1, Coutp), lambda n: (0, 0)),
        ],
        out_specs=pl.BlockSpec((1, HW, Coutp), lambda n: (n, 0, 0)),
        compiler_params=pltpu.CompilerParams(
            dimension_semantics=("parallel",)),
    )(x_pad, w_p, b_p)

    out = out_p[:, :, :Cout].reshape(N, H, W, Cout)
    return jnp.transpose(out, (0, 3, 1, 2)).astype(x.dtype)


def _reference(x, weight, gamma, beta, running_mean, running_var, eps=1e-5):
    y = jax.lax.conv_general_dilated(
        x, weight, window_strides=(1, 1), padding="SAME",
        dimension_numbers=("NCHW", "OIHW", "NCHW"))
    scale = gamma / jnp.sqrt(running_var + eps)
    bias = beta - running_mean * scale
    y = y * scale[None, :, None, None] + bias[None, :, None, None]
    return jnp.maximum(y, 0.0)


if __name__ == "__main__":
    key = jax.random.PRNGKey(0)
    kx, kw, kg, kb, km, kv = jax.random.split(key, 6)

    N, Cin, H, W = 2, 4, 16, 16
    Cout = 8

    x = jax.random.normal(kx, (N, Cin, H, W), jnp.float32)
    weight = jax.random.normal(kw, (Cout, Cin, 3, 3), jnp.float32) * 0.1
    gamma = 1.0 + 0.1 * jax.random.normal(kg, (Cout,), jnp.float32)
    beta = 0.1 * jax.random.normal(kb, (Cout,), jnp.float32)
    running_mean = 0.05 * jax.random.normal(km, (Cout,), jnp.float32)
    running_var = 1.0 + 0.1 * jax.random.uniform(kv, (Cout,), jnp.float32)

    fwd = jax.jit(chain_block_forward)
    out = fwd(x, weight, gamma, beta, running_mean, running_var)
    out = jax.block_until_ready(out)

    ref = _reference(x, weight, gamma, beta, running_mean, running_var)
    assert out.shape == (N, Cout, H, W)
    # bf16 MXU operands with f32 accumulation: relax tolerance accordingly.
    assert jnp.allclose(out, ref, atol=3e-2, rtol=3e-2), "mismatch vs reference"

    print("KERNEL_OK")
</pallas_src>

<mosaic_0001>
module attributes {stable_mosaic.version = 11 : i64} {
  func.func @conv3x3_bn_relu_kernel(%arg0: i32, %arg1: memref<1x18x18x4xbf16, #tpu.memory_space<vmem>>, %arg2: memref<9x4x128xbf16, #tpu.memory_space<vmem>>, %arg3: memref<1x128xf32, #tpu.memory_space<vmem>>, %arg4: memref<1x256x128xf32, #tpu.memory_space<vmem>>) attributes {dimension_semantics = [#tpu.dimension_semantics<parallel>], iteration_bounds = array<i64: 2>, scalar_prefetch = 0 : i64, scratch_operands = 0 : i64, tpu.core_type = #tpu.core_type<tc>, window_params = [{transform_indices = @transform_0, window_bounds = array<i64: 1, 18, 18, 4>}, {pipeline_mode = #tpu.pipeline_mode<synchronous>, transform_indices = @transform_1, window_bounds = array<i64: 9, 4, 128>}, {pipeline_mode = #tpu.pipeline_mode<synchronous>, transform_indices = @transform_2, window_bounds = array<i64: 1, 128>}, {transform_indices = @transform_3, window_bounds = array<i64: 1, 256, 128>}]} {
    %cst = arith.constant 0.000000e+00 : f32
    %0 = vector.broadcast %cst : f32 to vector<256x128xf32>
    %c0 = arith.constant 0 : index
    %c0_0 = arith.constant 0 : index
    %c0_1 = arith.constant 0 : index
    %c0_2 = arith.constant 0 : index
    %1 = vector.load %arg1[%c0, %c0_0, %c0_1, %c0_2] : memref<1x18x18x4xbf16, #tpu.memory_space<vmem>>, vector<1x16x16x4xbf16>
    %2 = vector.shape_cast %1 : vector<1x16x16x4xbf16> to vector<16x16x4xbf16>
    %3 = vector.shape_cast %2 : vector<16x16x4xbf16> to vector<256x4xbf16>
    %c0_3 = arith.constant 0 : index
    %c0_4 = arith.constant 0 : index
    %c0_5 = arith.constant 0 : index
    %4 = vector.load %arg2[%c0_3, %c0_4, %c0_5] : memref<9x4x128xbf16, #tpu.memory_space<vmem>>, vector<1x4x128xbf16>
    %5 = vector.shape_cast %4 : vector<1x4x128xbf16> to vector<4x128xbf16>
    %cst_6 = arith.constant dense<0.000000e+00> : vector<256x128xf32>
    %6 = tpu.matmul %3, %5, %cst_6 {dimension_numbers = #tpu.dot_dimension_numbers<[1], [0], [0], [1], [0, 0, 1, 1], [], []>} : vector<256x4xbf16>, vector<4x128xbf16>, vector<256x128xf32> -> vector<256x128xf32>
    %7 = arith.addf %0, %6 : vector<256x128xf32>
    %c0_7 = arith.constant 0 : index
    %c0_8 = arith.constant 0 : index
    %c1 = arith.constant 1 : index
    %c0_9 = arith.constant 0 : index
    %8 = vector.load %arg1[%c0_7, %c0_8, %c1, %c0_9] : memref<1x18x18x4xbf16, #tpu.memory_space<vmem>>, vector<1x16x16x4xbf16>
    %9 = vector.shape_cast %8 : vector<1x16x16x4xbf16> to vector<16x16x4xbf16>
    %10 = vector.shape_cast %9 : vector<16x16x4xbf16> to vector<256x4xbf16>
    %c1_10 = arith.constant 1 : index
    %c0_11 = arith.constant 0 : index
    %c0_12 = arith.constant 0 : index
    %11 = vector.load %arg2[%c1_10, %c0_11, %c0_12] : memref<9x4x128xbf16, #tpu.memory_space<vmem>>, vector<1x4x128xbf16>
    %12 = vector.shape_cast %11 : vector<1x4x128xbf16> to vector<4x128xbf16>
    %cst_13 = arith.constant dense<0.000000e+00> : vector<256x128xf32>
    %13 = tpu.matmul %10, %12, %cst_13 {dimension_numbers = #tpu.dot_dimension_numbers<[1], [0], [0], [1], [0, 0, 1, 1], [], []>} : vector<256x4xbf16>, vector<4x128xbf16>, vector<256x128xf32> -> vector<256x128xf32>
    %14 = arith.addf %7, %13 : vector<256x128xf32>
    %c0_14 = arith.constant 0 : index
    %c0_15 = arith.constant 0 : index
    %c2 = arith.constant 2 : index
    %c0_16 = arith.constant 0 : index
    %15 = vector.load %arg1[%c0_14, %c0_15, %c2, %c0_16] : memref<1x18x18x4xbf16, #tpu.memory_space<vmem>>, vector<1x16x16x4xbf16>
    %16 = vector.shape_cast %15 : vector<1x16x16x4xbf16> to vector<16x16x4xbf16>
    %17 = vector.shape_cast %16 : vector<16x16x4xbf16> to vector<256x4xbf16>
    %c2_17 = arith.constant 2 : index
    %c0_18 = arith.constant 0 : index
    %c0_19 = arith.constant 0 : index
    %18 = vector.load %arg2[%c2_17, %c0_18, %c0_19] : memref<9x4x128xbf16, #tpu.memory_space<vmem>>, vector<1x4x128xbf16>
    %19 = vector.shape_cast %18 : vector<1x4x128xbf16> to vector<4x128xbf16>
    %cst_20 = arith.constant dense<0.000000e+00> : vector<256x128xf32>
    %20 = tpu.matmul %17, %19, %cst_20 {dimension_numbers = #tpu.dot_dimension_numbers<[1], [0], [0], [1], [0, 0, 1, 1], [], []>} : vector<256x4xbf16>, vector<4x128xbf16>, vector<256x128xf32> -> vector<256x128xf32>
    %21 = arith.addf %14, %20 : vector<256x128xf32>
    %c0_21 = arith.constant 0 : index
    %c1_22 = arith.constant 1 : index
    %c0_23 = arith.constant 0 : index
    %c0_24 = arith.constant 0 : index
    %22 = vector.load %arg1[%c0_21, %c1_22, %c0_23, %c0_24] : memref<1x18x18x4xbf16, #tpu.memory_space<vmem>>, vector<1x16x16x4xbf16>
    %23 = vector.shape_cast %22 : vector<1x16x16x4xbf16> to vector<16x16x4xbf16>
    %24 = vector.shape_cast %23 : vector<16x16x4xbf16> to vector<256x4xbf16>
    %c3 = arith.constant 3 : index
    %c0_25 = arith.constant 0 : index
    %c0_26 = arith.constant 0 : index
    %25 = vector.load %arg2[%c3, %c0_25, %c0_26] : memref<9x4x128xbf16, #tpu.memory_space<vmem>>, vector<1x4x128xbf16>
    %26 = vector.shape_cast %25 : vector<1x4x128xbf16> to vector<4x128xbf16>
    %cst_27 = arith.constant dense<0.000000e+00> : vector<256x128xf32>
    %27 = tpu.matmul %24, %26, %cst_27 {dimension_numbers = #tpu.dot_dimension_numbers<[1], [0], [0], [1], [0, 0, 1, 1], [], []>} : vector<256x4xbf16>, vector<4x128xbf16>, vector<256x128xf32> -> vector<256x128xf32>
    %28 = arith.addf %21, %27 : vector<256x128xf32>
    %c0_28 = arith.constant 0 : index
    %c1_29 = arith.constant 1 : index
    %c1_30 = arith.constant 1 : index
    %c0_31 = arith.constant 0 : index
    %29 = vector.load %arg1[%c0_28, %c1_29, %c1_30, %c0_31] : memref<1x18x18x4xbf16, #tpu.memory_space<vmem>>, vector<1x16x16x4xbf16>
    %30 = vector.shape_cast %29 : vector<1x16x16x4xbf16> to vector<16x16x4xbf16>
    %31 = vector.shape_cast %30 : vector<16x16x4xbf16> to vector<256x4xbf16>
    %c4 = arith.constant 4 : index
    %c0_32 = arith.constant 0 : index
    %c0_33 = arith.constant 0 : index
    %32 = vector.load %arg2[%c4, %c0_32, %c0_33] : memref<9x4x128xbf16, #tpu.memory_space<vmem>>, vector<1x4x128xbf16>
    %33 = vector.shape_cast %32 : vector<1x4x128xbf16> to vector<4x128xbf16>
    %cst_34 = arith.constant dense<0.000000e+00> : vector<256x128xf32>
    %34 = tpu.matmul %31, %33, %cst_34 {dimension_numbers = #tpu.dot_dimension_numbers<[1], [0], [0], [1], [0, 0, 1, 1], [], []>} : vector<256x4xbf16>, vector<4x128xbf16>, vector<256x128xf32> -> vector<256x128xf32>
    %35 = arith.addf %28, %34 : vector<256x128xf32>
    %c0_35 = arith.constant 0 : index
    %c1_36 = arith.constant 1 : index
    %c2_37 = arith.constant 2 : index
    %c0_38 = arith.constant 0 : index
    %36 = vector.load %arg1[%c0_35, %c1_36, %c2_37, %c0_38] : memref<1x18x18x4xbf16, #tpu.memory_space<vmem>>, vector<1x16x16x4xbf16>
    %37 = vector.shape_cast %36 : vector<1x16x16x4xbf16> to vector<16x16x4xbf16>
    %38 = vector.shape_cast %37 : vector<16x16x4xbf16> to vector<256x4xbf16>
    %c5 = arith.constant 5 : index
    %c0_39 = arith.constant 0 : index
    %c0_40 = arith.constant 0 : index
    %39 = vector.load %arg2[%c5, %c0_39, %c0_40] : memref<9x4x128xbf16, #tpu.memory_space<vmem>>, vector<1x4x128xbf16>
    %40 = vector.shape_cast %39 : vector<1x4x128xbf16> to vector<4x128xbf16>
    %cst_41 = arith.constant dense<0.000000e+00> : vector<256x128xf32>
    %41 = tpu.matmul %38, %40, %cst_41 {dimension_numbers = #tpu.dot_dimension_numbers<[1], [0], [0], [1], [0, 0, 1, 1], [], []>} : vector<256x4xbf16>, vector<4x128xbf16>, vector<256x128xf32> -> vector<256x128xf32>
    %42 = arith.addf %35, %41 : vector<256x128xf32>
    %c0_42 = arith.constant 0 : index
    %c2_43 = arith.constant 2 : index
    %c0_44 = arith.constant 0 : index
    %c0_45 = arith.constant 0 : index
    %43 = vector.load %arg1[%c0_42, %c2_43, %c0_44, %c0_45] : memref<1x18x18x4xbf16, #tpu.memory_space<vmem>>, vector<1x16x16x4xbf16>
    %44 = vector.shape_cast %43 : vector<1x16x16x4xbf16> to vector<16x16x4xbf16>
    %45 = vector.shape_cast %44 : vector<16x16x4xbf16> to vector<256x4xbf16>
    %c6 = arith.constant 6 : index
    %c0_46 = arith.constant 0 : index
    %c0_47 = arith.constant 0 : index
    %46 = vector.load %arg2[%c6, %c0_46, %c0_47] : memref<9x4x128xbf16, #tpu.memory_space<vmem>>, vector<1x4x128xbf16>
    %47 = vector.shape_cast %46 : vector<1x4x128xbf16> to vector<4x128xbf16>
    %cst_48 = arith.constant dense<0.000000e+00> : vector<256x128xf32>
    %48 = tpu.matmul %45, %47, %cst_48 {dimension_numbers = #tpu.dot_dimension_numbers<[1], [0], [0], [1], [0, 0, 1, 1], [], []>} : vector<256x4xbf16>, vector<4x128xbf16>, vector<256x128xf32> -> vector<256x128xf32>
    %49 = arith.addf %42, %48 : vector<256x128xf32>
    %c0_49 = arith.constant 0 : index
    %c2_50 = arith.constant 2 : index
    %c1_51 = arith.constant 1 : index
    %c0_52 = arith.constant 0 : index
    %50 = vector.load %arg1[%c0_49, %c2_50, %c1_51, %c0_52] : memref<1x18x18x4xbf16, #tpu.memory_space<vmem>>, vector<1x16x16x4xbf16>
    %51 = vector.shape_cast %50 : vector<1x16x16x4xbf16> to vector<16x16x4xbf16>
    %52 = vector.shape_cast %51 : vector<16x16x4xbf16> to vector<256x4xbf16>
    %c7 = arith.constant 7 : index
    %c0_53 = arith.constant 0 : index
    %c0_54 = arith.constant 0 : index
    %53 = vector.load %arg2[%c7, %c0_53, %c0_54] : memref<9x4x128xbf16, #tpu.memory_space<vmem>>, vector<1x4x128xbf16>
    %54 = vector.shape_cast %53 : vector<1x4x128xbf16> to vector<4x128xbf16>
    %cst_55 = arith.constant dense<0.000000e+00> : vector<256x128xf32>
    %55 = tpu.matmul %52, %54, %cst_55 {dimension_numbers = #tpu.dot_dimension_numbers<[1], [0], [0], [1], [0, 0, 1, 1], [], []>} : vector<256x4xbf16>, vector<4x128xbf16>, vector<256x128xf32> -> vector<256x128xf32>
    %56 = arith.addf %49, %55 : vector<256x128xf32>
    %c0_56 = arith.constant 0 : index
    %c2_57 = arith.constant 2 : index
    %c2_58 = arith.constant 2 : index
    %c0_59 = arith.constant 0 : index
    %57 = vector.load %arg1[%c0_56, %c2_57, %c2_58, %c0_59] : memref<1x18x18x4xbf16, #tpu.memory_space<vmem>>, vector<1x16x16x4xbf16>
    %58 = vector.shape_cast %57 : vector<1x16x16x4xbf16> to vector<16x16x4xbf16>
    %59 = vector.shape_cast %58 : vector<16x16x4xbf16> to vector<256x4xbf16>
    %c8 = arith.constant 8 : index
    %c0_60 = arith.constant 0 : index
    %c0_61 = arith.constant 0 : index
    %60 = vector.load %arg2[%c8, %c0_60, %c0_61] : memref<9x4x128xbf16, #tpu.memory_space<vmem>>, vector<1x4x128xbf16>
    %61 = vector.shape_cast %60 : vector<1x4x128xbf16> to vector<4x128xbf16>
    %cst_62 = arith.constant dense<0.000000e+00> : vector<256x128xf32>
    %62 = tpu.matmul %59, %61, %cst_62 {dimension_numbers = #tpu.dot_dimension_numbers<[1], [0], [0], [1], [0, 0, 1, 1], [], []>} : vector<256x4xbf16>, vector<4x128xbf16>, vector<256x128xf32> -> vector<256x128xf32>
    %63 = arith.addf %56, %62 : vector<256x128xf32>
    %c0_63 = arith.constant 0 : index
    %c0_64 = arith.constant 0 : index
    %64 = vector.load %arg3[%c0_63, %c0_64] : memref<1x128xf32, #tpu.memory_space<vmem>>, vector<1x128xf32>
    %65 = vector.broadcast %64 : vector<1x128xf32> to vector<256x128xf32>
    %66 = arith.addf %63, %65 : vector<256x128xf32>
    %cst_65 = arith.constant 0.000000e+00 : f32
    %67 = vector.broadcast %cst_65 : f32 to vector<256x128xf32>
    %68 = arith.maximumf %66, %67 : vector<256x128xf32>
    %c0_66 = arith.constant 0 : index
    %c0_67 = arith.constant 0 : index
    %c0_68 = arith.constant 0 : index
    %69 = vector.load %arg4[%c0_66, %c0_67, %c0_68] : memref<1x256x128xf32, #tpu.memory_space<vmem>>, vector<1x256x128xf32>
    %70 = vector.shape_cast %69 : vector<1x256x128xf32> to vector<256x128xf32>
    %71 = vector.shape_cast %68 : vector<256x128xf32> to vector<1x256x128xf32>
    tpu.vector_store %arg4[%c0_66, %c0_67, %c0_68], %71 {strides = array<i32>} : memref<1x256x128xf32, #tpu.memory_space<vmem>>, vector<1x256x128xf32>,
    return
  }
  func.func @transform_0(%arg0: i32) -> (i32, i32, i32, i32) {
    %c0_i32 = arith.constant 0 : i32
    %c0_i32_0 = arith.constant 0 : i32
    %c0_i32_1 = arith.constant 0 : i32
    %c0_i32_2 = arith.constant 0 : i32
    return %arg0, %c0_i32, %c0_i32_0, %c0_i32_1 : i32, i32, i32, i32
  }
  func.func @transform_1(%arg0: i32) -> (i32, i32, i32) {
    %c0_i32 = arith.constant 0 : i32
    %c0_i32_0 = arith.constant 0 : i32
    %c0_i32_1 = arith.constant 0 : i32
    %c0_i32_2 = arith.constant 0 : i32
    return %c0_i32, %c0_i32_0, %c0_i32_1 : i32, i32, i32
  }
  func.func @transform_2(%arg0: i32) -> (i32, i32) {
    %c0_i32 = arith.constant 0 : i32
    %c0_i32_0 = arith.constant 0 : i32
    %c0_i32_1 = arith.constant 0 : i32
    return %c0_i32, %c0_i32_0 : i32, i32
  }
  func.func @transform_3(%arg0: i32) -> (i32, i32, i32) {
    %c0_i32 = arith.constant 0 : i32
    %c0_i32_0 = arith.constant 0 : i32
    %c0_i32_1 = arith.constant 0 : i32
    return %arg0, %c0_i32, %c0_i32_0 : i32, i32, i32
  }
}

</mosaic_0001>

<bundles_post_ra>
// kernel: chain_block_forward.1
= control target key start
LH: loop header
LB: loop body
LE: loop exit
PB: predicated region body
PF: predicated region fallthrough
CT: control target
= control target key end

     0   :  { %s4973_s12 = smov 0   ;;  %s6374_s0 = inlined_call_operand.vmem [shape: bf16[2,18,18,4], index: 0, kind: input, shape index: {}]   ;;  %s6375_s1 = inlined_call_operand.vmem [shape: bf16[9,4,128], index: 1, kind: input, shape index: {}]   ;;  %s6376_s2 = inlined_call_operand.vmem [shape: f32[1,128], index: 2, kind: input, shape index: {}]   ;;  %s6377_s3 = inlined_call_operand.vmem [shape: f32[2,256,128], index: 3, kind: output, shape index: {}]  }
   0x1 LB: > { %s4238_s13 = sadd.s32 4294967295, %s4951_s12   ;;  %p4242_p0 = scmp.ge.s32.totalorder %s4951_s12, 1  ;;  %s4951_s12 = sphi %s4973_s12, %s13_s12  }
   0x2   : > { %p137_p1 = scmp.lt.s32.totalorder %s4951_s12, 3 }
   0x4   : > { %p138_p2 = pnand %p4242_p0, %p137_p1 }
   0x6   : > { %141 = sbr.rel (%p138_p2) target bundleno = 758 (0x2f6), region = 32 }
   0xb   : > { %v4246_v0 = vld [vmem:[%s6375_s1 + $0x2] sm:$0x3]  ;;  %vm707_vm0 = vcmask 1041408   ;;  %p161_p3 = scmp.lt.s32.totalorder %s4238_s13, 1  ;;  %v4359_v2 = vld [vmem:[%s6375_s1 + $0x4] sm:$0x3] }
   0xc   : > { %v709_v1 = vsel %vm707_vm0, %v4246_v0, 0  ;;  %v1282_v3 = vsel %vm707_vm0, %v4359_v2, 0  ;;  %v4408_v4 = vld [vmem:[%s6375_s1 + $0x6] sm:$0x3]  ;;  %v204_v5 = vld [vmem:[%s6375_s1] sm:$0x3] }
   0xd   : > { %4881 = vmatpush.bf16.msra.mxu1 %v709_v1  ;;  %4882 = vmatpush.bf16.msra.mxu2 %v709_v1  ;;  %s6389_s13 = smov (!%p161_p3, %s4238_s13), 1  ;;  %v4537_v6 = vld [vmem:[%s6375_s1 + $0x8] sm:$0x3]  ;;  %v1569_v7 = vsel %vm707_vm0, %v4408_v4, 0  ;;  %v929_v8 = vsel %vm707_vm0, %v204_v5, 0  ;;  %vm658_vm4 = vcmask 31744  }
   0xe   : > { %4883 = vmatpush.bf16.msra.mxu3 %v709_v1  ;;  %718 = vmatpush.bf16.msra.mxu0 %v709_v1  ;;  %s4884_s24 = smul.u32 216, %s6389_s13  ;;  %v2223_v9 = vsel %vm707_vm0, %v4537_v6, 0  ;;  %vm221_vm1 = vsmask.f32 3328  ;;  %vm222_vm2 = vsmask.f32 7440 }
   0xf   : > { %vm5019_vm3 = vmor %vm221_vm1, %vm222_vm2  ;;  %vm1068_vm5 = vcmask 1042432   ;;  %vm1069_vm6 = vcmask 1046532   ;;  %s4832_s11 = sshll.u32 %s6389_s13, 8 }
  0x10   : > { %s5007_s27 = scalar_lea.vmem %s6374_s0, %s4884_s24  ;;  %vm5193_vm7 = vmor %vm1068_vm5, %vm1069_vm6  ;;  %s6069_s15 = scalar_lea.vmem %s6377_s3, %s4832_s11 }
  0x11   : > { %1291 = vmatpush.bf16.msrb.mxu2 %v1282_v3  ;;  %938 = vmatpush.bf16.msrb.mxu1 %v929_v8  ;;  %v180_v10 = vld [vmem:[%s5007_s27 + $0x30] sm:$0xf]  ;;  %v181_v11 = vld [vmem:[%s5007_s27 + $0x34] sm:$0xf]  ;;  %v209_v12 = vld [vmem:[%s5007_s27 + $0x38] sm:$0x1] }
  0x12   : > { %1578 = vmatpush.bf16.msrb.mxu3 %v1569_v7  ;;  %2232 = vmatpush.bf16.msrb.mxu0 %v2223_v9  ;;  %v321_v13 = vshrl.u32 %v180_v10, 16  ;;  %v324_v14 = vshll.u32 %v180_v10, 16  ;;  %v330_v15 = vshll.u32 %v181_v11, 16  ;;  %v334_v16 = vshrl.u32 %v181_v11, 16  ;;  %v188_v17 = vld [vmem:[%s5007_s27 + $0x60] sm:$0xf] }
  0x13   : > { %v340_v18 = vshll.u32 %v209_v12, 16  ;;  %v189_v19 = vld [vmem:[%s5007_s27 + $0x64] sm:$0xf]  ;;  %v213_v20 = vld [vmem:[%s5007_s27 + $0x68] sm:$0x1]  ;;  %v417_v21 = vshrl.u32 %v188_v17, 16 }
  0x14   : > { %v323_v22 = vrot.slane %v321_v13, 4  ;;  %v326_v23 = vrot.slane %v324_v14, 5  ;;  %v332_v24 = vrot.slane %v330_v15, 5  ;;  %v336_v25 = vrot.slane %v334_v16, 4  ;;  %v196_v26 = vld [vmem:[%s5007_s27 + $0x90] sm:$0xf] }
  0x15   : > { %v342_v27 = vrot.slane %v340_v18, 5  ;;  %v419_v28 = vrot.slane %v417_v21, 4  ;;  %v420_v29 = vshll.u32 %v188_v17, 16  ;;  %v426_v30 = vshll.u32 %v189_v19, 16  ;;  %v197_v35 = vld [vmem:[%s5007_s27 + $0x94] sm:$0xf] }
  0x16   : > { %v327_v31 = vor.u32 %v326_v23, %v323_v22  ;;  %v337_v32 = vor.u32 %v336_v25, %v332_v24  ;;  %v430_v33 = vshrl.u32 %v189_v19, 16  ;;  %v436_v34 = vshll.u32 %v213_v20, 16  ;;  %v217_v45 = vld [vmem:[%s5007_s27 + $0x98] sm:$0x1]  ;;  %v172_v61 = vld [vmem:[%s5007_s27] sm:$0xf] }
  0x17   : > { %v422_v37 = vrot.slane %v420_v29, 5  ;;  %v428_v38 = vrot.slane %v426_v30, 5  ;;  %v513_v39 = vshrl.u32 %v196_v26, 16  ;;  %v516_v47 = vshll.u32 %v196_v26, 16  ;;  %v5032_v1 = vld [vmem:[%s5007_s27 + $0x4] sm:$0xf] }
  0x18   : > { %v328_v40 = vrot.slane %v327_v31, 4  ;;  %v338_v41 = vrot.slane %v337_v32, 4  ;;  %v432_v42 = vrot.slane %v430_v33, 4  ;;  %v438_v43 = vrot.slane %v436_v34, 5  ;;  %v5035_v2 = vld [vmem:[%s5007_s27 + $0x8] sm:$0x1] }
  0x19   : > { %v423_v44 = vor.u32 %v422_v37, %v419_v28  ;;  %v515_v46 = vrot.slane %v513_v39, 4  ;;  %v522_v48 = vshll.u32 %v197_v35, 16  ;;  %v526_v52 = vshrl.u32 %v197_v35, 16  ;;  %v182_v19 = vld [vmem:[%s5007_s27 + $0x3c] sm:$0xf] }
  0x1a   : > { %v333_v49 = vsel %vm5019_vm3, %v328_v40, %v332_v24  ;;  %v343_v50 = vsel %vm5019_vm3, %v338_v41, %v342_v27  ;;  %v433_v51 = vor.u32 %v432_v42, %v428_v38  ;;  %v518_v56 = vrot.slane %v516_v47, 5  ;;  %v5047_v20 = vld [vmem:[%s5007_s27 + $0x40] sm:$0xf]  ;;  %v5052_v25 = vld [vmem:[%s5007_s27 + $0x44] sm:$0x1] }
  0x1b   : > { %v618_v53 = vunpack.c.l.b16 %v333_v49  ;;  %v619_v54 = vunpack.c.l.b16 %v343_v50  ;;  %v424_v55 = vrot.slane %v423_v44, 4  ;;  %v524_v58 = vrot.slane %v522_v48, 5  ;;  %v190_v33 = vld [vmem:[%s5007_s27 + $0x6c] sm:$0xf]  ;;  %v214_v47 = vld [vmem:[%s5007_s27 + $0x74] sm:$0x1] }
  0x1c   : > { %v434_v57 = vrot.slane %v433_v51, 4  ;;  %v528_v59 = vrot.slane %v526_v52, 4  ;;  %v532_v60 = vshll.u32 %v217_v45, 16  ;;  %v519_v0 = vor.u32 %v518_v56, %v515_v46 }
  0x1d   : > { %v646_v62 = vpack.c.b16 %v619_v54, %v618_v53  ;;  %v429_v63 = vsel %vm5019_vm3, %v424_v55, %v428_v38  ;;  %v225_v9 = vshrl.u32 %v172_v61, 16  ;;  %v228_v10 = vshll.u32 %v172_v61, 16  ;;  %v198_v61 = vld [vmem:[%s5007_s27 + $0x9c] sm:$0xf] }
  0x1e   : > { %v439_v3 = vsel %vm5019_vm3, %v434_v57, %v438_v43  ;;  %v626_v4 = vunpack.c.l.b16 %v429_v63  ;;  %v529_v5 = vor.u32 %v528_v59, %v524_v58  ;;  %v534_v6 = vrot.slane %v532_v60, 5  ;;  %v191_v43 = vld [vmem:[%s5007_s27 + $0x70] sm:$0xf] }
  0x1f   : > { %4251 = vmatmul.msk.bf16.vlgmr.msra.gmra.mxu1 %vm658_vm4, %v646_v62  ;;  %v627_v7 = vunpack.c.l.b16 %v439_v3  ;;  %v520_v8 = vrot.slane %v519_v0, 4  ;;  %v234_v12 = vshll.u32 %v5032_v1, 16  ;;  %v238_v13 = vshrl.u32 %v5032_v1, 16  ;;  %v199_v3 = vld [vmem:[%s5007_s27 + $0xa0] sm:$0xf] }
  0x20   : > { %v530_v11 = vrot.slane %v529_v5, 4  ;;  %v244_v14 = vshll.u32 %v5035_v2, 16  ;;  %v227_v17 = vrot.slane %v225_v9, 4  ;;  %v230_v18 = vrot.slane %v228_v10, 5 }
  0x21   : > { %v650_v15 = vpack.c.b16 %v627_v7, %v626_v4  ;;  %v525_v16 = vsel %vm5019_vm3, %v520_v8, %v524_v58  ;;  %v236_v23 = vrot.slane %v234_v12, 5  ;;  %v240_v24 = vrot.slane %v238_v13, 4  ;;  %v218_v8 = vld [vmem:[%s5007_s27 + $0xa4] sm:$0x1] }
  0x22   : > { %v535_v21 = vsel %vm5019_vm3, %v530_v11, %v534_v6  ;;  %v634_v22 = vunpack.c.l.b16 %v525_v16  ;;  %v231_v27 = vor.u32 %v230_v18, %v227_v17  ;;  %v246_v28 = vrot.slane %v244_v14, 5 }
  0x23   : > { %4255 = vmatmul.msk.bf16.vlgmr.msra.gmra.mxu2 %vm658_vm4, %v650_v15  ;;  %v635_v26 = vunpack.c.l.b16 %v535_v21  ;;  %v241_v29 = vor.u32 %v240_v24, %v236_v23  ;;  %v345_v30 = vshrl.u32 %v182_v19, 16  ;;  %v348_v31 = vshll.u32 %v182_v19, 16 }
  0x24   : > { %v354_v32 = vshll.u32 %v5047_v20, 16  ;;  %v232_v35 = vrot.slane %v231_v27, 4  ;;  %v358_v37 = vshrl.u32 %v5047_v20, 16  ;;  %v364_v38 = vshll.u32 %v5052_v25, 16 }
  0x25   : > { %v654_v34 = vpack.c.b16 %v635_v26, %v634_v22  ;;  %v242_v39 = vrot.slane %v241_v29, 4  ;;  %v347_v40 = vrot.slane %v345_v30, 4  ;;  %v350_v41 = vrot.slane %v348_v31, 5  ;;  %v174_v22 = vld [vmem:[%s5007_s27 + $0xc] sm:$0xf] }
  0x26   : > { %v356_v42 = vrot.slane %v354_v32, 5  ;;  %v237_v44 = vsel %vm5019_vm3, %v232_v35, %v236_v23  ;;  %v360_v45 = vrot.slane %v358_v37, 4  ;;  %v366_v46 = vrot.slane %v364_v38, 5  ;;  %v5081_v32 = vld [vmem:[%s5007_s27 + $0x14] sm:$0x1] }
  0x27   : > { %4259 = vmatmul.msk.bf16.vlgmr.msra.gmra.mxu3 %vm658_vm4, %v654_v34  ;;  %v441_v48 = vshrl.u32 %v190_v33, 16  ;;  %v247_v49 = vsel %vm5019_vm3, %v242_v39, %v246_v28  ;;  %v610_v50 = vunpack.c.l.b16 %v237_v44  ;;  %v351_v51 = vor.u32 %v350_v41, %v347_v40  ;;  %v5078_v28 = vld [vmem:[%s5007_s27 + $0x10] sm:$0xf] }
  0x28   : > { %v444_v52 = vshll.u32 %v190_v33, 16  ;;  %v611_v53 = vunpack.c.l.b16 %v247_v49  ;;  %v361_v54 = vor.u32 %v360_v45, %v356_v42  ;;  %v450_v56 = vshll.u32 %v191_v43, 16 }
  0x29   : > { %v443_v55 = vrot.slane %v441_v48, 4  ;;  %v352_v57 = vrot.slane %v351_v51, 4  ;;  %v454_v59 = vshrl.u32 %v191_v43, 16  ;;  %v460_v60 = vshll.u32 %v214_v47, 16  ;;  %v5091_v47 = vld [vmem:[%s5007_s27 + $0x4c] sm:$0xf] }
  0x2a   : > { %v446_v58 = vrot.slane %v444_v52, 5  ;;  %v642_v62 = vpack.c.b16 %v611_v53, %v610_v50  ;;  %v362_v63 = vrot.slane %v361_v54, 4  ;;  %v452_v0 = vrot.slane %v450_v56, 5  ;;  %v5096_v56 = vld [vmem:[%s5007_s27 + $0x50] sm:$0x1] }
  0x2b   : > { %v357_v4 = vsel %vm5019_vm3, %v352_v57, %v356_v42  ;;  %v456_v6 = vrot.slane %v454_v59, 4  ;;  %v462_v7 = vrot.slane %v460_v60, 5  ;;  %v537_v11 = vshrl.u32 %v198_v61, 16  ;;  %v184_v42 = vld [vmem:[%s5007_s27 + $0x48] sm:$0xf] }
  0x2c   : > { %v447_v5 = vor.u32 %v446_v58, %v443_v55  ;;  %4247 = vmatmul.msk.bf16.vlgmr.msra.gmra.mxu0 %vm658_vm4, %v642_v62  ;;  %v367_v9 = vsel %vm5019_vm3, %v362_v63, %v366_v46  ;;  %v620_v10 = vunpack.c.l.b16 %v357_v4  ;;  %v540_v12 = vshll.u32 %v198_v61, 16 }
  0x2d   : > { %v621_v13 = vunpack.c.l.b16 %v367_v9  ;;  %v457_v15 = vor.u32 %v456_v6, %v452_v0  ;;  %v546_v16 = vshll.u32 %v199_v3, 16  ;;  %v539_v17 = vrot.slane %v537_v11, 4 }
  0x2e   : > { %v448_v14 = vrot.slane %v447_v5, 4  ;;  %v542_v18 = vrot.slane %v540_v12, 5  ;;  %v550_v19 = vshrl.u32 %v199_v3, 16  ;;  %v556_v21 = vshll.u32 %v218_v8, 16  ;;  %v192_v3 = vld [vmem:[%s5007_s27 + $0x78] sm:$0xf] }
  0x2f   : > { %v647_v23 = vpack.c.b16 %v621_v13, %v620_v10  ;;  %v458_v26 = vrot.slane %v457_v15, 4  ;;  %v548_v27 = vrot.slane %v546_v16, 5  ;;  %v249_v35 = vshrl.u32 %v174_v22, 16  ;;  %v193_v8 = vld [vmem:[%s5007_s27 + $0x7c] sm:$0xf] }
  0x30   : > { %v453_v24 = vsel %vm5019_vm3, %v448_v14, %v452_v0  ;;  %v543_v30 = vor.u32 %v542_v18, %v539_v17  ;;  %v552_v31 = vrot.slane %v550_v19, 4  ;;  %v558_v34 = vrot.slane %v556_v21, 5  ;;  %v215_v16 = vld [vmem:[%s5007_s27 + $0x80] sm:$0x1] }
  0x31   : > { %v628_v29 = vunpack.c.l.b16 %v453_v24  ;;  %4252 = vmatmul.msk.bf16.gmra.mxu1 %vm658_vm4, %v647_v23  ;;  %v463_v33 = vsel %vm5019_vm3, %v458_v26, %v462_v7  ;;  %v252_v37 = vshll.u32 %v174_v22, 16  ;;  %v258_v41 = vshll.u32 %v5078_v28, 16 }
  0x32   : > { %v629_v38 = vunpack.c.l.b16 %v463_v33  ;;  %v544_v39 = vrot.slane %v543_v30, 4  ;;  %v553_v40 = vor.u32 %v552_v31, %v548_v27  ;;  %v251_v43 = vrot.slane %v249_v35, 4 }
  0x33   : > { %v254_v44 = vrot.slane %v252_v37, 5  ;;  %v262_v45 = vshrl.u32 %v5078_v28, 16  ;;  %v268_v46 = vshll.u32 %v5081_v32, 16  ;;  %v260_v51 = vrot.slane %v258_v41, 5 }
  0x34   : > { %v651_v48 = vpack.c.b16 %v629_v38, %v628_v29  ;;  %v549_v49 = vsel %vm5019_vm3, %v544_v39, %v548_v27  ;;  %v554_v50 = vrot.slane %v553_v40, 4  ;;  %v369_v58 = vshrl.u32 %v184_v42, 16  ;;  %v201_v39 = vld [vmem:[%s5007_s27 + $0xac] sm:$0xf]  ;;  %v219_v40 = vld [vmem:[%s5007_s27 + $0xb0] sm:$0x1] }
  0x35   : > { %v636_v52 = vunpack.c.l.b16 %v549_v49  ;;  %v255_v53 = vor.u32 %v254_v44, %v251_v43  ;;  %v264_v54 = vrot.slane %v262_v45, 4  ;;  %v270_v55 = vrot.slane %v268_v46, 5 }
  0x36   : > { %4256 = vmatmul.msk.bf16.gmra.mxu2 %vm658_vm4, %v651_v48  ;;  %v559_v57 = vsel %vm5019_vm3, %v554_v50, %v558_v34  ;;  %v372_v59 = vshll.u32 %v184_v42, 16  ;;  %v378_v60 = vshll.u32 %v5091_v47, 16  ;;  %v382_v0 = vshrl.u32 %v5091_v47, 16  ;;  %v200_v34 = vld [vmem:[%s5007_s27 + $0xa8] sm:$0xf] }
  0x37   : > { %v637_v61 = vunpack.c.l.b16 %v559_v57  ;;  %v256_v62 = vrot.slane %v255_v53, 4  ;;  %v265_v63 = vor.u32 %v264_v54, %v260_v51  ;;  %v371_v4 = vrot.slane %v369_v58, 4 }
  0x38   : > { %v374_v5 = vrot.slane %v372_v59, 5  ;;  %v380_v6 = vrot.slane %v378_v60, 5  ;;  %v388_v7 = vshll.u32 %v5096_v56, 16  ;;  %v384_v12 = vrot.slane %v382_v0, 4  ;;  %v176_v59 = vld [vmem:[%s5007_s27 + $0x18] sm:$0xf] }
  0x39   : > { %v655_v9 = vpack.c.b16 %v637_v61, %v636_v52  ;;  %v261_v10 = vsel %vm5019_vm3, %v256_v62, %v260_v51  ;;  %v266_v11 = vrot.slane %v265_v63, 4  ;;  %v465_v17 = vshrl.u32 %v192_v3, 16  ;;  %v5124_v63 = vld [vmem:[%s5007_s27 + $0x1c] sm:$0xf]  ;;  %v5127_v0 = vld [vmem:[%s5007_s27 + $0x20] sm:$0x1] }
  0x3a   : > { %v612_v13 = vunpack.c.l.b16 %v261_v10  ;;  %v375_v14 = vor.u32 %v374_v5, %v371_v4  ;;  %v390_v15 = vrot.slane %v388_v7, 5  ;;  %v385_v19 = vor.u32 %v384_v12, %v380_v6 }
  0x3b   : > { %4260 = vmatmul.msk.bf16.gmra.mxu3 %vm658_vm4, %v655_v9  ;;  %v271_v18 = vsel %vm5019_vm3, %v266_v11, %v270_v55  ;;  %v468_v21 = vshll.u32 %v192_v3, 16  ;;  %v474_v22 = vshll.u32 %v193_v8, 16  ;;  %v467_v26 = vrot.slane %v465_v17, 4 }
  0x3c   : > { %v613_v23 = vunpack.c.l.b16 %v271_v18  ;;  %v376_v24 = vrot.slane %v375_v14, 4  ;;  %v478_v27 = vshrl.u32 %v193_v8, 16  ;;  %v386_v29 = vrot.slane %v385_v19, 4 }
  0x3d   : > { %v470_v30 = vrot.slane %v468_v21, 5  ;;  %v476_v31 = vrot.slane %v474_v22, 5  ;;  %v484_v33 = vshll.u32 %v215_v16, 16  ;;  %v561_v48 = vshrl.u32 %v200_v34, 16  ;;  %v5137_v21 = vld [vmem:[%s5007_s27 + $0x58] sm:$0xf] }
  0x3e   : > { %v643_v35 = vpack.c.b16 %v613_v23, %v612_v13  ;;  %v381_v37 = vsel %vm5019_vm3, %v376_v24, %v380_v6  ;;  %v480_v38 = vrot.slane %v478_v27, 4  ;;  %v391_v41 = vsel %vm5019_vm3, %v386_v29, %v390_v15  ;;  %v186_v15 = vld [vmem:[%s5007_s27 + $0x54] sm:$0xf]  ;;  %v5142_v27 = vld [vmem:[%s5007_s27 + $0x5c] sm:$0x1] }
  0x3f   : > { %v622_v42 = vunpack.c.l.b16 %v381_v37  ;;  %v471_v43 = vor.u32 %v470_v30, %v467_v26  ;;  %v486_v44 = vrot.slane %v484_v33, 5  ;;  %v623_v45 = vunpack.c.l.b16 %v391_v41 }
  0x40   : > { %4248 = vmatmul.msk.bf16.gmra.mxu0 %vm658_vm4, %v643_v35  ;;  %v481_v46 = vor.u32 %v480_v38, %v476_v31  ;;  %v564_v49 = vshll.u32 %v200_v34, 16  ;;  %v570_v51 = vshll.u32 %v201_v39, 16  ;;  %v574_v52 = vshrl.u32 %v201_v39, 16  ;;  %v194_v39 = vld [vmem:[%s5007_s27 + $0x84] sm:$0xf] }
  0x41   : > { %v472_v50 = vrot.slane %v471_v43, 4  ;;  %v580_v53 = vshll.u32 %v219_v40, 16  ;;  %v648_v54 = vpack.c.b16 %v623_v45, %v622_v42  ;;  %v563_v57 = vrot.slane %v561_v48, 4 }
  0x42   : > { %v482_v55 = vrot.slane %v481_v46, 4  ;;  %v566_v58 = vrot.slane %v564_v49, 5  ;;  %v572_v61 = vrot.slane %v570_v51, 5  ;;  %v576_v62 = vrot.slane %v574_v52, 4  ;;  %v195_v49 = vld [vmem:[%s5007_s27 + $0x88] sm:$0xf] }
  0x43   : > { %v477_v60 = vsel %vm5019_vm3, %v472_v50, %v476_v31  ;;  %4253 = vmatmul.msk.bf16.gmra.mxu1 %vm658_vm4, %v648_v54  ;;  %v582_v6 = vrot.slane %v580_v53, 5  ;;  %v273_v9 = vshrl.u32 %v176_v59, 16  ;;  %v276_v10 = vshll.u32 %v176_v59, 16  ;;  %v216_v53 = vld [vmem:[%s5007_s27 + $0x8c] sm:$0x1] }
  0x44   : > { %v487_v3 = vsel %vm5019_vm3, %v482_v55, %v486_v44  ;;  %v630_v4 = vunpack.c.l.b16 %v477_v60  ;;  %v567_v5 = vor.u32 %v566_v58, %v563_v57  ;;  %v577_v8 = vor.u32 %v576_v62, %v572_v61 }
  0x45   : > { %v631_v7 = vunpack.c.l.b16 %v487_v3  ;;  %v282_v12 = vshll.u32 %v5124_v63, 16  ;;  %v286_v13 = vshrl.u32 %v5124_v63, 16  ;;  %v292_v14 = vshll.u32 %v5127_v0, 16 }
  0x46   : > { %v568_v11 = vrot.slane %v567_v5, 4  ;;  %v578_v17 = vrot.slane %v577_v8, 4  ;;  %v275_v18 = vrot.slane %v273_v9, 4  ;;  %v278_v19 = vrot.slane %v276_v10, 5  ;;  %v202_v8 = vld [vmem:[%s5007_s27 + $0xb4] sm:$0xf] }
  0x47   : > { %v652_v16 = vpack.c.b16 %v631_v7, %v630_v4  ;;  %v284_v23 = vrot.slane %v282_v12, 5  ;;  %v288_v24 = vrot.slane %v286_v13, 4  ;;  %v294_v26 = vrot.slane %v292_v14, 5  ;;  %v203_v12 = vld [vmem:[%s5007_s27 + $0xb8] sm:$0xf] }
  0x48   : > { %v573_v22 = vsel %vm5019_vm3, %v568_v11, %v572_v61  ;;  %v583_v29 = vsel %vm5019_vm3, %v578_v17, %v582_v6  ;;  %v279_v31 = vor.u32 %v278_v19, %v275_v18  ;;  %v393_v33 = vshrl.u32 %v186_v15, 16  ;;  %v220_v17 = vld [vmem:[%s5007_s27 + $0xbc] sm:$0x1] }
  0x49   : > { %4257 = vmatmul.msk.bf16.gmra.mxu2 %vm658_vm4, %v652_v16  ;;  %v638_v30 = vunpack.c.l.b16 %v573_v22  ;;  %v639_v34 = vunpack.c.l.b16 %v583_v29  ;;  %v289_v35 = vor.u32 %v288_v24, %v284_v23  ;;  %v396_v37 = vshll.u32 %v186_v15, 16 }
  0x4a   : > { %v402_v38 = vshll.u32 %v5137_v21, 16  ;;  %v280_v40 = vrot.slane %v279_v31, 4  ;;  %v395_v41 = vrot.slane %v393_v33, 4  ;;  %v406_v42 = vshrl.u32 %v5137_v21, 16 }
  0x4b   : > { %v412_v43 = vshll.u32 %v5142_v27, 16  ;;  %v656_v44 = vpack.c.b16 %v639_v34, %v638_v30  ;;  %v290_v45 = vrot.slane %v289_v35, 4  ;;  %v398_v46 = vrot.slane %v396_v37, 5  ;;  %v178_v37 = vld [vmem:[%s5007_s27 + $0x24] sm:$0xf] }
  0x4c   : > { %v404_v48 = vrot.slane %v402_v38, 5  ;;  %v285_v50 = vsel %vm5019_vm3, %v280_v40, %v284_v23  ;;  %v408_v51 = vrot.slane %v406_v42, 4  ;;  %v489_v54 = vshrl.u32 %v194_v39, 16  ;;  %v5170_v42 = vld [vmem:[%s5007_s27 + $0x28] sm:$0xf] }
  0x4d   : > { %v414_v52 = vrot.slane %v412_v43, 5  ;;  %4261 = vmatmul.msk.bf16.gmra.mxu3 %vm658_vm4, %v656_v44  ;;  %v295_v55 = vsel %vm5019_vm3, %v290_v45, %v294_v26  ;;  %v614_v57 = vunpack.c.l.b16 %v285_v50  ;;  %v399_v58 = vor.u32 %v398_v46, %v395_v41 }
  0x4e   : > { %v492_v59 = vshll.u32 %v194_v39, 16  ;;  %v615_v60 = vunpack.c.l.b16 %v295_v55  ;;  %v409_v61 = vor.u32 %v408_v51, %v404_v48  ;;  %v491_v62 = vrot.slane %v489_v54, 4 }
  0x4f   : > { %v498_v3 = vshll.u32 %v195_v49, 16  ;;  %v400_v4 = vrot.slane %v399_v58, 4  ;;  %v502_v6 = vshrl.u32 %v195_v49, 16  ;;  %v508_v7 = vshll.u32 %v216_v53, 16 }
  0x50   : > { %v494_v5 = vrot.slane %v492_v59, 5  ;;  %v644_v9 = vpack.c.b16 %v615_v60, %v614_v57  ;;  %v410_v10 = vrot.slane %v409_v61, 4  ;;  %v585_v22 = vshrl.u32 %v202_v8, 16  ;;  %v1020_v61 = vld [vmem:[%s5007_s27] sm:$0xe] }
  0x51   : > { %v500_v11 = vrot.slane %v498_v3, 5  ;;  %v405_v13 = vsel %vm5019_vm3, %v400_v4, %v404_v48  ;;  %v504_v15 = vrot.slane %v502_v6, 4  ;;  %v510_v16 = vrot.slane %v508_v7, 5  ;;  %v5174_v48 = vld [vmem:[%s5007_s27 + $0x2c] sm:$0x1] }
  0x52   : > { %v495_v14 = vor.u32 %v494_v5, %v491_v62  ;;  %4249 = vmatmul.msk.bf16.gmra.mxu0 %vm658_vm4, %v644_v9  ;;  %v415_v18 = vsel %vm5019_vm3, %v410_v10, %v414_v52  ;;  %v624_v19 = vunpack.c.l.b16 %v405_v13  ;;  %v588_v23 = vshll.u32 %v202_v8, 16  ;;  %v4489_v6 = vld [vmem:[%s5007_s27 + $0xc] sm:$0xf] }
  0x53   : > { %v625_v24 = vunpack.c.l.b16 %v415_v18  ;;  %v505_v29 = vor.u32 %v504_v15, %v500_v11  ;;  %v594_v30 = vshll.u32 %v203_v12, 16  ;;  %v587_v31 = vrot.slane %v585_v22, 4 }
  0x54   : > { %v496_v26 = vrot.slane %v495_v14, 4  ;;  %v590_v33 = vrot.slane %v588_v23, 5  ;;  %v598_v34 = vshrl.u32 %v203_v12, 16  ;;  %v604_v35 = vshll.u32 %v220_v17, 16  ;;  %v4490_v12 = vld [vmem:[%s5007_s27 + $0x10] sm:$0xf] }
  0x55   : > { %v649_v38 = vpack.c.b16 %v625_v24, %v624_v19  ;;  %v506_v40 = vrot.slane %v505_v29, 4  ;;  %v596_v41 = vrot.slane %v594_v30, 5  ;;  %v1076_v43 = vrot.slane %v5035_v2, 5 }
  0x56   : > { %v501_v39 = vsel %vm5019_vm3, %v496_v26, %v500_v11  ;;  %v591_v45 = vor.u32 %v590_v33, %v587_v31  ;;  %v600_v46 = vrot.slane %v598_v34, 4  ;;  %v606_v50 = vrot.slane %v604_v35, 5  ;;  %v4635_v11 = vld [vmem:[%s6375_s1 + $0xc] sm:$0x3] }
  0x57   : > { %v632_v44 = vunpack.c.l.b16 %v501_v39  ;;  %4254 = vmatmul.msk.bf16.gmra.mxu1 %vm658_vm4, %v649_v38  ;;  %v511_v49 = vsel %vm5019_vm3, %v506_v40, %v510_v16  ;;  %v297_v51 = vshrl.u32 %v178_v37, 16  ;;  %v300_v52 = vshll.u32 %v178_v37, 16  ;;  %v4491_v38 = vld [vmem:[%s5007_s27 + $0x14] sm:$0x1] }
  0x58   : > { %v633_v53 = vunpack.c.l.b16 %v511_v49  ;;  %v592_v54 = vrot.slane %v591_v45, 4  ;;  %v601_v55 = vor.u32 %v600_v46, %v596_v41  ;;  %v306_v2 = vshll.u32 %v5170_v42, 16  ;;  %v4764_v45 = vld [vmem:[%s6375_s1 + $0xe] sm:$0x3] }
  0x59   : > { %v299_v57 = vrot.slane %v297_v51, 4  ;;  %v302_v58 = vrot.slane %v300_v52, 5  ;;  %v310_v59 = vshrl.u32 %v5170_v42, 16  ;;  %v316_v60 = vshll.u32 %v5174_v48, 16  ;;  %v4833_v51 = vld [vmem:[%s5007_s27] sm:$0xff] }
  0x5a   : > { %v653_v62 = vpack.c.b16 %v633_v53, %v632_v44  ;;  %v597_v3 = vsel %vm5019_vm3, %v592_v54, %v596_v41  ;;  %v602_v4 = vrot.slane %v601_v55, 4  ;;  %v308_v5 = vrot.slane %v306_v2, 5  ;;  %v4813_v2 = vld [vmem:[%s6375_s1 + $0x10] sm:$0x3] }
  0x5b   : > { %v640_v7 = vunpack.c.l.b16 %v597_v3  ;;  %v303_v8 = vor.u32 %v302_v58, %v299_v57  ;;  %v312_v9 = vrot.slane %v310_v59, 4  ;;  %v318_v10 = vrot.slane %v316_v60, 5 }
  0x5c   : > { %4258 = vmatmul.msk.bf16.gmra.mxu2 %vm658_vm4, %v653_v62  ;;  %v607_v13 = vsel %vm5019_vm3, %v602_v4, %v606_v50  ;;  %v4343_v14 = vrot.slane %v1020_v61, 9  ;;  %v1073_v19 = vrot.slane %v5032_v1, 5  ;;  %v2908_v22 = vsel %vm707_vm0, %v4635_v11, 0  ;;  %v4586_v50 = vld [vmem:[%s6375_s1 + $0xa] sm:$0x3] }
  0x5d   : > { %v641_v15 = vunpack.c.l.b16 %v607_v13  ;;  %v304_v16 = vrot.slane %v303_v8, 4  ;;  %v313_v17 = vor.u32 %v312_v9, %v308_v5  ;;  %v1741_v23 = vshrl.u32 %v4489_v6, 16  ;;  %2917 = vmatpush.bf16.msra.mxu2 %v2908_v22  ;;  %v1021_v8 = vld [vmem:[%s5007_s27 + $0xc] sm:$0xe] }
  0x5e   : > { %v1744_v24 = vshll.u32 %v4489_v6, 16  ;;  %v1750_v26 = vshll.u32 %v4490_v12, 16  ;;  %v1074_v33 = vsel %vm5193_vm7, %v4343_v14, %v1073_v19  ;;  %v1075_v35 = vrot.slane %v1073_v19, 4  ;;  %v4493_v6 = vld [vmem:[%s5007_s27 + $0x1c] sm:$0xf] }
  0x5f   : > { %v657_v29 = vpack.c.b16 %v641_v15, %v640_v7  ;;  %v309_v30 = vsel %vm5019_vm3, %v304_v16, %v308_v5  ;;  %v314_v31 = vrot.slane %v313_v17, 4  ;;  %v1185_v37 = vunpack.c.l.b16 %v1074_v33  ;;  %v4492_v5 = vld [vmem:[%s5007_s27 + $0x18] sm:$0xf]  ;;  %v4849_v15 = vld [vmem:[%s5007_s27 + $0xc] sm:$0xff] }
  0x60   : > { %v616_v34 = vunpack.c.l.b16 %v309_v30  ;;  %v1743_v1 = vrot.slane %v1741_v23, 4  ;;  %v1746_v40 = vrot.slane %v1744_v24, 5  ;;  %v1752_v41 = vrot.slane %v1750_v26, 5  ;;  %v4494_v30 = vld [vmem:[%s5007_s27 + $0x20] sm:$0x1] }
  0x61   : > { %4262 = vmatmul.msk.bf16.gmra.mxu3 %vm658_vm4, %v657_v29  ;;  %v319_v39 = vsel %vm5019_vm3, %v314_v31, %v318_v10  ;;  %v1754_v44 = vshrl.u32 %v4490_v12, 16  ;;  %v1077_v49 = vsel %vm5193_vm7, %v1075_v35, %v1076_v43  ;;  %v1760_v55 = vshll.u32 %v4491_v38, 16  ;;  %v4834_v35 = vld [vmem:[%s5007_s27 + $0xc] sm:$0xff] }
  0x62   : > { %v617_v46 = vunpack.c.l.b16 %v319_v39  ;;  %v1186_v52 = vunpack.c.l.b16 %v1077_v49  ;;  %v1747_v53 = vor.u32 %v1746_v40, %v1743_v1  ;;  %v3562_v58 = vsel %vm707_vm0, %v4764_v45, 0 }
  0x63   : > { %v1756_v54 = vrot.slane %v1754_v44, 4  ;;  %3571 = vmatpush.bf16.msra.mxu3 %v3562_v58  ;;  %v2621_v60 = vsel %vm707_vm0, %v4586_v50, 0  ;;  %v3960_v61 = vsel %vm707_vm0, %v4813_v2, 0  ;;  %v1762_v4 = vrot.slane %v1760_v55, 5  ;;  %v1022_v50 = vld [vmem:[%s5007_s27 + $0x18] sm:$0xe] }
  0x64   : > { %v645_v57 = vpack.c.b16 %v617_v46, %v616_v34  ;;  %v1217_v43 = vpack.c.b16 %v1186_v52, %v1185_v37  ;;  %2630 = vmatpush.bf16.msra.mxu1 %v2621_v60  ;;  %v1748_v62 = vrot.slane %v1747_v53, 4  ;;  %3969 = vmatpush.bf16.msra.mxu0 %v3960_v61  ;;  %v1080_v7 = vrot.slane %v5078_v28, 5  ;;  %v4496_v46 = vld [vmem:[%s5007_s27 + $0x28] sm:$0xf] }
  0x65   : > { %v1757_v59 = vor.u32 %v1756_v54, %v1752_v41  ;;  %v1765_v9 = vshrl.u32 %v4492_v5, 16  ;;  %v1768_v10 = vshll.u32 %v4492_v5, 16  ;;  %v1774_v13 = vshll.u32 %v4493_v6, 16 }
  0x66   : > { %4250 = vmatmul.msk.bf16.gmra.mxu0 %vm658_vm4, %v645_v57  ;;  %v1753_v11 = vsel %vm5019_vm3, %v1748_v62, %v1752_v41  ;;  %v1778_v14 = vshrl.u32 %v4493_v6, 16  ;;  %v4344_v16 = vrot.slane %v1021_v8, 9  ;;  %v1082_v17 = vrot.slane %v1080_v7, 4  ;;  %v4495_v41 = vld [vmem:[%s5007_s27 + $0x24] sm:$0xf] }
  0x67   : > { %4327 = vmatmul.msk.bf16.vlgmr.msrb.gmra.mxu1 %vm658_vm4, %v4833_v51  ;;  %v1758_v3 = vrot.slane %v1757_v59, 4  ;;  %v1083_v28 = vrot.slane %v5081_v32, 5  ;;  %v2126_v19 = vunpack.c.l.b16 %v1753_v11  ;;  %v1767_v23 = vrot.slane %v1765_v9, 4  ;;  %v4497_v6 = vld [vmem:[%s5007_s27 + $0x2c] sm:$0x1] }
  0x68   : > { %v1770_v24 = vrot.slane %v1768_v10, 5  ;;  %v1776_v26 = vrot.slane %v1774_v13, 5  ;;  %v1780_v29 = vrot.slane %v1778_v14, 4  ;;  %v1081_v31 = vsel %vm5193_vm7, %v4344_v16, %v1080_v7 }
  0x69   : > { %v1763_v12 = vsel %vm5019_vm3, %v1758_v3, %v1762_v4  ;;  %v1084_v33 = vsel %vm5193_vm7, %v1082_v17, %v1083_v28  ;;  %v1784_v38 = vshll.u32 %v4494_v30, 16  ;;  %v1187_v1 = vunpack.c.l.b16 %v1081_v31 }
  0x6a   : > { %v2127_v22 = vunpack.c.l.b16 %v1763_v12  ;;  %v1771_v32 = vor.u32 %v1770_v24, %v1767_v23  ;;  %v1781_v37 = vor.u32 %v1780_v29, %v1776_v26  ;;  %v1188_v39 = vunpack.c.l.b16 %v1084_v33  ;;  %v4835_v12 = vld [vmem:[%s5007_s27 + $0x18] sm:$0xff]  ;;  %v1023_v29 = vld [vmem:[%s5007_s27 + $0x24] sm:$0xe] }
  0x6b   : > { %v1786_v45 = vrot.slane %v1784_v38, 5  ;;  %v1087_v51 = vrot.slane %v5124_v63, 5  ;;  %v1789_v52 = vshrl.u32 %v4495_v41, 16  ;;  %v1792_v54 = vshll.u32 %v4495_v41, 16 }
  0x6c   : > { %4360 = vmatmul.msk.bf16.vlgmr.msrb.gmra.mxu2 %vm658_vm4, %v1217_v43  ;;  %v2158_v34 = vpack.c.b16 %v2127_v22, %v2126_v19  ;;  %v1772_v40 = vrot.slane %v1771_v32, 4  ;;  %v1782_v44 = vrot.slane %v1781_v37, 4  ;;  %v1218_v49 = vpack.c.b16 %v1188_v39, %v1187_v1  ;;  %v4850_v43 = vld [vmem:[%s5007_s27 + $0x18] sm:$0xff]  ;;  %v4498_v19 = vld [vmem:[%s5007_s27 + $0x30] sm:$0xf]  ;;  %v4851_v32 = vld [vmem:[%s5007_s27 + $0x24] sm:$0xff] }
  0x6d   : > { %v1798_v55 = vshll.u32 %v4496_v46, 16  ;;  %v1802_v2 = vshrl.u32 %v4496_v46, 16  ;;  %v4345_v58 = vrot.slane %v1022_v50, 9  ;;  %v1089_v60 = vrot.slane %v1087_v51, 4  ;;  %v4499_v22 = vld [vmem:[%s5007_s27 + $0x34] sm:$0xf] }
  0x6e   : > { %v1777_v53 = vsel %vm5019_vm3, %v1772_v40, %v1776_v26  ;;  %v1787_v57 = vsel %vm5019_vm3, %v1782_v44, %v1786_v45  ;;  %v1090_v63 = vrot.slane %v5127_v0, 5  ;;  %v1791_v61 = vrot.slane %v1789_v52, 4  ;;  %v4500_v45 = vld [vmem:[%s5007_s27 + $0x38] sm:$0x1] }
  0x6f   : > { %v2128_v59 = vunpack.c.l.b16 %v1777_v53  ;;  %v2129_v62 = vunpack.c.l.b16 %v1787_v57  ;;  %v1794_v3 = vrot.slane %v1792_v54, 5  ;;  %v1800_v4 = vrot.slane %v1798_v55, 5  ;;  %v4502_v57 = vld [vmem:[%s5007_s27 + $0x40] sm:$0xf] }
  0x70   : > { %v1804_v5 = vrot.slane %v1802_v2, 4  ;;  %v1088_v7 = vsel %vm5193_vm7, %v4345_v58, %v1087_v51  ;;  %v1091_v8 = vsel %vm5193_vm7, %v1089_v60, %v1090_v63  ;;  %v1808_v0 = vshll.u32 %v4497_v6, 16  ;;  %v4501_v2 = vld [vmem:[%s5007_s27 + $0x3c] sm:$0xf]  ;;  %v4894_v63 = vld [vmem:[%s5007_s27 + $0x34] sm:$0xf] }
  0x71   : > { %4473 = vmatmul.msk.bf16.vlgmr.msrb.gmra.mxu3 %vm658_vm4, %v4849_v15  ;;  %v2159_v9 = vpack.c.b16 %v2129_v62, %v2128_v59  ;;  %v1795_v10 = vor.u32 %v1794_v3, %v1791_v61  ;;  %v1189_v13 = vunpack.c.l.b16 %v1088_v7  ;;  %v1190_v14 = vunpack.c.l.b16 %v1091_v8  ;;  %v1024_v62 = vld [vmem:[%s5007_s27 + $0x30] sm:$0xe] }
  0x72   : > { %v1805_v11 = vor.u32 %v1804_v5, %v1800_v4  ;;  %v1810_v17 = vrot.slane %v1808_v0, 5  ;;  %v1094_v23 = vrot.slane %v5170_v42, 5  ;;  %v1813_v30 = vshrl.u32 %v4498_v19, 16  ;;  %v4895_v0 = vld [vmem:[%s5007_s27 + $0x38] sm:$0x1] }
  0x73   : > { %v1796_v15 = vrot.slane %v1795_v10, 4  ;;  %v1219_v28 = vpack.c.b16 %v1190_v14, %v1189_v13  ;;  %v1816_v31 = vshll.u32 %v4498_v19, 16  ;;  %v1822_v33 = vshll.u32 %v4499_v22, 16  ;;  %v4852_v13 = vld [vmem:[%s5007_s27 + $0x30] sm:$0xff] }
  0x74   : > { %v1806_v16 = vrot.slane %v1805_v11, 4  ;;  %v1096_v37 = vrot.slane %v1094_v23, 4  ;;  %v1097_v42 = vrot.slane %v5174_v48, 5  ;;  %v1815_v39 = vrot.slane %v1813_v30, 4  ;;  %v4836_v48 = vld [vmem:[%s5007_s27 + $0x24] sm:$0xff] }
  0x75   : > { %v1801_v24 = vsel %vm5019_vm3, %v1796_v15, %v1800_v4  ;;  %v1818_v40 = vrot.slane %v1816_v31, 5  ;;  %v1824_v41 = vrot.slane %v1822_v33, 5  ;;  %v1832_v53 = vshll.u32 %v4500_v45, 16  ;;  %v4837_v33 = vld [vmem:[%s5007_s27 + $0x30] sm:$0xff] }
  0x76   : > { %4538 = vmatmul.msk.bf16.vlgmr.msrb.gmra.mxu0 %vm658_vm4, %v2158_v34  ;;  %v1811_v26 = vsel %vm5019_vm3, %v1806_v16, %v1810_v17  ;;  %v1826_v34 = vshrl.u32 %v4499_v22, 16  ;;  %v2130_v38 = vunpack.c.l.b16 %v1801_v24  ;;  %v1101_v61 = vrot.slane %v4894_v63, 5  ;;  %v4503_v22 = vld [vmem:[%s5007_s27 + $0x44] sm:$0x1] }
  0x77   : > { %4328 = vmatmul.msk.bf16.gmra.mxu1 %vm658_vm4, %v4834_v35  ;;  %v4346_v35 = vrot.slane %v1023_v29, 9  ;;  %v2131_v1 = vunpack.c.l.b16 %v1811_v26  ;;  %v1819_v51 = vor.u32 %v1818_v40, %v1815_v39  ;;  %v1834_v59 = vrot.slane %v1832_v53, 5  ;;  %v4504_v39 = vld [vmem:[%s5007_s27 + $0x48] sm:$0xf]  ;;  %v4505_v40 = vld [vmem:[%s5007_s27 + $0x4c] sm:$0xf] }
  0x78   : > { %v1828_v44 = vrot.slane %v1826_v34, 4  ;;  %v1837_v3 = vshrl.u32 %v4501_v2, 16  ;;  %v1840_v4 = vshll.u32 %v4501_v2, 16  ;;  %v1846_v5 = vshll.u32 %v4502_v57, 16  ;;  %v4853_v2 = vld [vmem:[%s5007_s27 + $0x3c] sm:$0xff] }
  0x79   : > { %v1095_v46 = vsel %vm5193_vm7, %v4346_v35, %v1094_v23  ;;  %v2160_v50 = vpack.c.b16 %v2131_v1, %v2130_v38  ;;  %v1820_v58 = vrot.slane %v1819_v51, 4  ;;  %v1850_v6 = vshrl.u32 %v4502_v57, 16 }
  0x7a   : > { %v1829_v52 = vor.u32 %v1828_v44, %v1824_v41  ;;  %v1191_v54 = vunpack.c.l.b16 %v1095_v46  ;;  %v4347_v10 = vrot.slane %v1024_v62, 9  ;;  %v1103_v11 = vrot.slane %v1101_v61, 4 }
  0x7b   : > { %v1825_v8 = vsel %vm5019_vm3, %v1820_v58, %v1824_v41  ;;  %v1839_v14 = vrot.slane %v1837_v3, 4  ;;  %v1842_v15 = vrot.slane %v1840_v4, 5  ;;  %v1848_v16 = vrot.slane %v1846_v5, 5  ;;  %v4506_v4 = vld [vmem:[%s5007_s27 + $0x50] sm:$0x1] }
  0x7c   : > { %4361 = vmatmul.msk.bf16.gmra.mxu2 %vm658_vm4, %v1218_v49  ;;  %v1098_v49 = vsel %vm5193_vm7, %v1096_v37, %v1097_v42  ;;  %v1852_v17 = vrot.slane %v1850_v6, 4  ;;  %v1102_v23 = vsel %vm5193_vm7, %v4347_v10, %v1101_v61  ;;  %v1856_v30 = vshll.u32 %v4503_v22, 16 }
  0x7d   : > { %v1192_v55 = vunpack.c.l.b16 %v1098_v49  ;;  %v1843_v26 = vor.u32 %v1842_v15, %v1839_v14  ;;  %v1861_v51 = vshrl.u32 %v4504_v39, 16  ;;  %v1870_v53 = vshll.u32 %v4505_v40, 16 }
  0x7e   : > { %v1853_v29 = vor.u32 %v1852_v17, %v1848_v16  ;;  %v1858_v1 = vrot.slane %v1856_v30, 5 }
  0x7f   : > { %v1220_v60 = vpack.c.b16 %v1192_v55, %v1191_v54  ;;  %v1844_v42 = vrot.slane %v1843_v26, 4  ;;  %v1874_v54 = vshrl.u32 %v4505_v40, 16  ;;  %v1872_v62 = vrot.slane %v1870_v53, 5 }
  0x80   : > { %v1854_v38 = vrot.slane %v1853_v29, 4  ;;  %v1115_v26 = vrot.slane %v5091_v47, 5 }
  0x81   : > { %4474 = vmatmul.msk.bf16.gmra.mxu3 %vm658_vm4, %v4850_v43  ;;  %v1830_v43 = vrot.slane %v1829_v52, 4  ;;  %v1849_v45 = vsel %vm5019_vm3, %v1844_v42, %v1848_v16  ;;  %v1864_v52 = vshll.u32 %v4504_v39, 16  ;;  %v1876_v3 = vrot.slane %v1874_v54, 4  ;;  %v4509_v54 = vld [vmem:[%s5007_s27 + $0x5c] sm:$0x1] }
  0x82   : > { %v1859_v46 = vsel %vm5019_vm3, %v1854_v38, %v1858_v1  ;;  %v2134_v55 = vunpack.c.l.b16 %v1849_v45  ;;  %v4854_v1 = vld [vmem:[%s5007_s27 + $0x48] sm:$0xff]  ;;  %v1117_v40 = vrot.slane %v1115_v26, 4 }
  0x83   : > { %v2135_v57 = vunpack.c.l.b16 %v1859_v46  ;;  %v1866_v61 = vrot.slane %v1864_v52, 5  ;;  %v1877_v10 = vor.u32 %v1876_v3, %v1872_v62 }
  0x85   : > { %v1878_v16 = vrot.slane %v1877_v10, 4 }
  0x86   : > { %4539 = vmatmul.msk.bf16.gmra.mxu0 %vm658_vm4, %v2159_v9  ;;  %v1835_v9 = vsel %vm5019_vm3, %v1830_v43, %v1834_v59 }
  0x87   : > { %4329 = vmatmul.msk.bf16.gmra.mxu1 %vm658_vm4, %v4835_v12  ;;  %v1104_v12 = vrot.slane %v4895_v0, 5  ;;  %v2133_v19 = vunpack.c.l.b16 %v1835_v9 }
  0x89   : > { %v1105_v24 = vsel %vm5193_vm7, %v1103_v11, %v1104_v12  ;;  %v1880_v11 = vshll.u32 %v4506_v4, 16  ;;  %v4838_v12 = vld [vmem:[%s5007_s27 + $0x3c] sm:$0xff] }
  0x8a   : > { %v1194_v35 = vunpack.c.l.b16 %v1105_v24  ;;  %v4508_v24 = vld [vmem:[%s5007_s27 + $0x58] sm:$0xf]  ;;  %v4510_v4 = vld [vmem:[%s5007_s27 + $0x60] sm:$0xf] }
  0x8b   : > { %v1882_v17 = vrot.slane %v1880_v11, 5  ;;  %v1898_v42 = vshrl.u32 %v4508_v24, 16 }
  0x8c   : > { %4362 = vmatmul.msk.bf16.gmra.mxu2 %vm658_vm4, %v1219_v28  ;;  %v2132_v28 = vunpack.c.l.b16 %v1825_v8  ;;  %v2162_v8 = vpack.c.b16 %v2135_v57, %v2134_v55 }
  0x8d   : > { %v1883_v30 = vsel %vm5019_vm3, %v1878_v16, %v1882_v17  ;;  %v1900_v52 = vrot.slane %v1898_v42, 4 }
  0x8e   : > { %v2161_v31 = vpack.c.b16 %v2133_v19, %v2132_v28  ;;  %v2137_v46 = vunpack.c.l.b16 %v1883_v30 }
  0x91   : > { %4475 = vmatmul.msk.bf16.gmra.mxu3 %vm658_vm4, %v4851_v32  ;;  %v1193_v32 = vunpack.c.l.b16 %v1102_v23  ;;  %v4507_v23 = vld [vmem:[%s5007_s27 + $0x54] sm:$0xf] }
  0x93   : > { %v1221_v44 = vpack.c.b16 %v1194_v35, %v1193_v32  ;;  %v1888_v32 = vshll.u32 %v4507_v23, 16  ;;  %v1894_v35 = vshll.u32 %v4508_v24, 16 }
  0x96   : > { %4540 = vmatmul.msk.bf16.gmra.mxu0 %vm658_vm4, %v2160_v50  ;;  %v1108_v50 = vrot.slane %v5047_v20, 5  ;;  %v1863_v20 = vrot.slane %v1861_v51, 4  ;;  %v1896_v51 = vrot.slane %v1894_v35, 5  ;;  %v1125_v35 = vrot.slane %v5142_v27, 5 }
  0x97   : > { %4330 = vmatmul.msk.bf16.gmra.mxu1 %vm658_vm4, %v4836_v48  ;;  %v1025_v48 = vld [vmem:[%s5007_s27 + $0x3c] sm:$0xe] }
  0x98   : > { %v4348_v43 = vrot.slane %v1025_v48, 9  ;;  %v1110_v59 = vrot.slane %v1108_v50, 4  ;;  %v1890_v48 = vrot.slane %v1888_v32, 5 }
  0x9a   : > { %v1109_v5 = vsel %vm5193_vm7, %v4348_v43, %v1108_v50  ;;  %v4839_v43 = vld [vmem:[%s5007_s27 + $0x48] sm:$0xff] }
  0x9c   : > { %v5288_v7 = vpop.f32.mrf.mxu1  ;;  %4363 = vmatmul.msk.bf16.gmra.mxu2 %vm658_vm4, %v1220_v60  ;;  %v1111_v60 = vrot.slane %v5052_v25, 5  ;;  %v1867_v25 = vor.u32 %v1866_v61, %v1863_v20  ;;  %v1904_v20 = vshll.u32 %v4509_v54, 16  ;;  %v4840_v54 = vld [vmem:[%s5007_s27 + $0x54] sm:$0xff] }
  0x9e   : > { %v1112_v6 = vsel %vm5193_vm7, %v1110_v59, %v1111_v60  ;;  %v1868_v15 = vrot.slane %v1867_v25, 4  ;;  %v1901_v60 = vor.u32 %v1900_v52, %v1896_v51  ;;  %v1906_v10 = vrot.slane %v1904_v20, 5 }
  0x9f   : > { %v1196_v14 = vunpack.c.l.b16 %v1112_v6 }
  0xa0   : > { %v1873_v29 = vsel %vm5019_vm3, %v1868_v15, %v1872_v62  ;;  %v1902_v25 = vrot.slane %v1901_v60, 4  ;;  %v1122_v15 = vrot.slane %v5137_v21, 5 }
  0xa1   : > { %4476 = vmatmul.msk.bf16.gmra.mxu3 %vm658_vm4, %v4852_v13  ;;  %v1195_v13 = vunpack.c.l.b16 %v1109_v5  ;;  %v2136_v45 = vunpack.c.l.b16 %v1873_v29  ;;  %v4511_v5 = vld [vmem:[%s5007_s27 + $0x64] sm:$0xf] }
  0xa2   : > { %v1922_v16 = vshrl.u32 %v4511_v5, 16  ;;  %v1907_v24 = vsel %vm5019_vm3, %v1902_v25, %v1906_v10  ;;  %v1124_v32 = vrot.slane %v1122_v15, 4  ;;  %v4896_v10 = vld [vmem:[%s5007_s27 + $0x64] sm:$0xf] }
  0xa3   : > { %v1222_v19 = vpack.c.b16 %v1196_v14, %v1195_v13  ;;  %v2163_v57 = vpack.c.b16 %v2137_v46, %v2136_v45  ;;  %v1912_v13 = vshll.u32 %v4510_v4, 16  ;;  %v1918_v14 = vshll.u32 %v4511_v5, 16 }
  0xa4   : > { %v5304_v34 = vpop.f32.mrf.mxu1  ;;  %v1924_v42 = vrot.slane %v1922_v16, 4 }
  0xa5   : > { %v1914_v30 = vrot.slane %v1912_v13, 5  ;;  %v1028_v13 = vld [vmem:[%s5007_s27 + $0x60] sm:$0xe] }
  0xa6   : > { %v5306_v37 = vpop.f32.mrf.mxu2  ;;  %4541 = vmatmul.msk.bf16.gmra.mxu0 %vm658_vm4, %v2161_v31  ;;  %v1026_v31 = vld [vmem:[%s5007_s27 + $0x48] sm:$0xe] }
  0xa7   : > { %4331 = vmatmul.msk.bf16.gmra.mxu1 %vm658_vm4, %v4837_v33  ;;  %v1885_v33 = vshrl.u32 %v4507_v23, 16  ;;  %v4349_v47 = vrot.slane %v1026_v31, 9  ;;  %v1920_v31 = vrot.slane %v1918_v14, 5 }
  0xa9   : > { %v5312_v41 = vpop.f32.mrf.mxu0  ;;  %v1887_v50 = vrot.slane %v1885_v33, 4  ;;  %v4855_v33 = vld [vmem:[%s5007_s27 + $0x54] sm:$0xff]  ;;  %v1925_v27 = vor.u32 %v1924_v42, %v1920_v31 }
  0xaa   : > { %v5318_v49 = vpop.f32.mrf.mxu3 }
  0xab   : > { %v1891_v59 = vor.u32 %v1890_v48, %v1887_v50  ;;  %v1126_v48 = vsel %vm5193_vm7, %v1124_v32, %v1125_v35  ;;  %v1926_v60 = vrot.slane %v1925_v27, 4 }
  0xac   : > { %4364 = vmatmul.msk.bf16.gmra.mxu2 %vm658_vm4, %v1221_v44  ;;  %v1118_v44 = vrot.slane %v5096_v56, 5 }
  0xae   : > { %v5324_v58 = vpop.f32.mrf.mxu1  ;;  %v5327_v63 = vpop.f32.mrf.mxu2  ;;  %v1119_v56 = vsel %vm5193_vm7, %v1117_v40, %v1118_v44  ;;  %v4512_v40 = vld [vmem:[%s5007_s27 + $0x68] sm:$0x1] }
  0xaf   : > { %v1198_v62 = vunpack.c.l.b16 %v1119_v56 }
  0xb1   : > { %4477 = vmatmul.msk.bf16.gmra.mxu3 %vm658_vm4, %v4853_v2  ;;  %v5335_v9 = vpop.f32.mrf.mxu0  ;;  %v1116_v2 = vsel %vm5193_vm7, %v4349_v47, %v1115_v26  ;;  %v2139_v47 = vunpack.c.l.b16 %v1907_v24 }
  0xb2   : > { %v5337_v0 = vpop.f32.mrf.mxu3  ;;  %v1197_v61 = vunpack.c.l.b16 %v1116_v2 }
  0xb4   : > { %v1223_v11 = vpack.c.b16 %v1198_v62, %v1197_v61  ;;  %v4513_v61 = vld [vmem:[%s5007_s27 + $0x6c] sm:$0xf]  ;;  %v4514_v62 = vld [vmem:[%s5007_s27 + $0x70] sm:$0xf] }
  0xb5   : > { %v1933_v14 = vshrl.u32 %v4513_v61, 16  ;;  %v1942_v16 = vshll.u32 %v4514_v62, 16 }
  0xb6   : > { %4542 = vmatmul.msk.bf16.gmra.mxu0 %vm658_vm4, %v2162_v8  ;;  %v5341_v28 = vpop.f32.mrf.mxu1  ;;  %v1892_v8 = vrot.slane %v1891_v59, 4 }
  0xb7   : > { %4332 = vmatmul.msk.bf16.gmra.mxu1 %vm658_vm4, %v4838_v12  ;;  %v1909_v12 = vshrl.u32 %v4510_v4, 16  ;;  %v1935_v35 = vrot.slane %v1933_v14, 4  ;;  %v4517_v14 = vld [vmem:[%s5007_s27 + $0x7c] sm:$0xf] }
  0xb8   : > { %v1897_v23 = vsel %vm5019_vm3, %v1892_v8, %v1896_v51  ;;  %v1928_v51 = vshll.u32 %v4512_v40, 16 }
  0xb9   : > { %v5344_v22 = vpop.f32.mrf.mxu2  ;;  %v1911_v29 = vrot.slane %v1909_v12, 4 }
  0xba   : > { %v1930_v20 = vrot.slane %v1928_v51, 5 }
  0xbb   : > { %v1915_v46 = vor.u32 %v1914_v30, %v1911_v29  ;;  %v4856_v30 = vld [vmem:[%s5007_s27 + $0x60] sm:$0xff] }
  0xbc   : > { %4365 = vmatmul.msk.bf16.gmra.mxu2 %vm658_vm4, %v1222_v19  ;;  %v1027_v19 = vld [vmem:[%s5007_s27 + $0x54] sm:$0xe]  ;;  %v1931_v25 = vsel %vm5019_vm3, %v1926_v60, %v1930_v20 }
  0xbd   : > { %v5354_v38 = vpop.f32.mrf.mxu0  ;;  %v4350_v21 = vrot.slane %v1027_v19, 9  ;;  %v1916_v59 = vrot.slane %v1915_v46, 4  ;;  %v1946_v19 = vshrl.u32 %v4514_v62, 16  ;;  %v4515_v46 = vld [vmem:[%s5007_s27 + $0x74] sm:$0x1] }
  0xbe   : > { %v5358_v39 = vpop.f32.mrf.mxu3 }
  0xbf   : > { %v1123_v50 = vsel %vm5193_vm7, %v4350_v21, %v1122_v15  ;;  %v1921_v8 = vsel %vm5019_vm3, %v1916_v59, %v1920_v31  ;;  %v1936_v15 = vshll.u32 %v4513_v61, 16  ;;  %v4351_v21 = vrot.slane %v1028_v13, 9  ;;  %v4516_v13 = vld [vmem:[%s5007_s27 + $0x78] sm:$0xf] }
  0xc0   : > { %v5361_v53 = vpop.f32.mrf.mxu1  ;;  %v1199_v56 = vunpack.c.l.b16 %v1123_v50  ;;  %v2140_v31 = vunpack.c.l.b16 %v1921_v8 }
  0xc1   : > { %4478 = vmatmul.msk.bf16.gmra.mxu3 %vm658_vm4, %v4854_v1  ;;  %v5365_v55 = vpop.f32.mrf.mxu2  ;;  %v2138_v1 = vunpack.c.l.b16 %v1897_v23  ;;  %v4897_v23 = vld [vmem:[%s5007_s27 + $0x68] sm:$0x1]  ;;  %v1938_v42 = vrot.slane %v1936_v15, 5  ;;  %v4898_v15 = vld [vmem:[%s5007_s27 + $0x70] sm:$0xf] }
  0xc2   : > { %v1132_v24 = vrot.slane %v4897_v23, 5  ;;  %v1029_v23 = vld [vmem:[%s5007_s27 + $0x6c] sm:$0xe] }
  0xc3   : > { %v2164_v52 = vpack.c.b16 %v2139_v47, %v2138_v1  ;;  %v1944_v1 = vrot.slane %v1942_v16, 5  ;;  %v1948_v47 = vrot.slane %v1946_v19, 4  ;;  %v1939_v51 = vor.u32 %v1938_v42, %v1935_v35  ;;  %v4899_v42 = vld [vmem:[%s5007_s27 + $0x74] sm:$0x1] }
  0xc4   : > { %v1136_v16 = vrot.slane %v4898_v15, 5 }
  0xc5   : > { %v5372_v3 = vpop.f32.mrf.mxu0 }
  0xc6   : > { %4543 = vmatmul.msk.bf16.gmra.mxu0 %vm658_vm4, %v2163_v57  ;;  %v5377_v6 = vpop.f32.mrf.mxu3  ;;  %v1200_v57 = vunpack.c.l.b16 %v1126_v48 }
  0xc7   : > { %4333 = vmatmul.msk.bf16.gmra.mxu1 %vm658_vm4, %v4839_v43 }
  0xc8   : > { %v5381_v17 = vpop.f32.mrf.mxu1  ;;  %v1224_v4 = vpack.c.b16 %v1200_v57, %v1199_v56  ;;  %v4841_v57 = vld [vmem:[%s5007_s27 + $0x60] sm:$0xff] }
  0xcc   : > { %v5388_v26 = vpop.f32.mrf.mxu2  ;;  %4366 = vmatmul.msk.bf16.gmra.mxu2 %vm658_vm4, %v1223_v11  ;;  %v1129_v11 = vrot.slane %v4896_v10, 5 }
  0xce   : > { %v1131_v32 = vrot.slane %v1129_v11, 4  ;;  %v1130_v50 = vsel %vm5193_vm7, %v4351_v21, %v1129_v11  ;;  %v1970_v21 = vshrl.u32 %v4517_v14, 16 }
  0xcf   : > { %v5394_v44 = vpop.f32.mrf.mxu0  ;;  %v1201_v20 = vunpack.c.l.b16 %v1130_v50  ;;  %v4352_v50 = vrot.slane %v1029_v23, 9 }
  0xd0   : > { %v5396_v45 = vpop.f32.mrf.mxu3  ;;  %v1133_v48 = vsel %vm5193_vm7, %v1131_v32, %v1132_v24 }
  0xd1   : > { %4479 = vmatmul.msk.bf16.gmra.mxu3 %vm658_vm4, %v4855_v33  ;;  %v2141_v33 = vunpack.c.l.b16 %v1931_v25  ;;  %v1202_v61 = vunpack.c.l.b16 %v1133_v48  ;;  %v1138_v48 = vrot.slane %v1136_v16, 4 }
  0xd3   : > { %v2165_v27 = vpack.c.b16 %v2141_v33, %v2140_v31  ;;  %v1225_v11 = vpack.c.b16 %v1202_v61, %v1201_v20  ;;  %v1960_v31 = vshll.u32 %v4516_v13, 16  ;;  %v1966_v33 = vshll.u32 %v4517_v14, 16 }
  0xd4   : > { %v5404_v2 = vpop.f32.mrf.mxu1  ;;  %v5406_v43 = vpop.f32.mrf.mxu2  ;;  %v1972_v20 = vrot.slane %v1970_v21, 4 }
  0xd6   : > { %4544 = vmatmul.msk.bf16.gmra.mxu0 %vm658_vm4, %v2164_v52  ;;  %v1949_v52 = vor.u32 %v1948_v47, %v1944_v1  ;;  %v1139_v47 = vrot.slane %v4899_v42, 5 }
  0xd7   : > { %4334 = vmatmul.msk.bf16.gmra.mxu1 %vm658_vm4, %v4840_v54  ;;  %v5412_v5 = vpop.f32.mrf.mxu0  ;;  %v1952_v54 = vshll.u32 %v4515_v46, 16  ;;  %v4857_v46 = vld [vmem:[%s5007_s27 + $0x6c] sm:$0xff] }
  0xd8   : > { %v5419_v12 = vpop.f32.mrf.mxu3  ;;  %v1950_v8 = vrot.slane %v1949_v52, 4 }
  0xd9   : > { %v1954_v25 = vrot.slane %v1952_v54, 5 }
  0xdc   : > { %4367 = vmatmul.msk.bf16.gmra.mxu2 %vm658_vm4, %v1224_v4  ;;  %v5424_v29 = vpop.f32.mrf.mxu1  ;;  %v1940_v4 = vrot.slane %v1939_v51, 4 }
  0xde   : > { %v1945_v19 = vsel %vm5019_vm3, %v1940_v4, %v1944_v1  ;;  %v4518_v4 = vld [vmem:[%s5007_s27 + $0x80] sm:$0x1] }
  0xdf   : > { %v5427_v40 = vpop.f32.mrf.mxu2 }
  0xe1   : > { %4480 = vmatmul.msk.bf16.gmra.mxu3 %vm658_vm4, %v4856_v30  ;;  %v1957_v30 = vshrl.u32 %v4516_v13, 16  ;;  %v4842_v13 = vld [vmem:[%s5007_s27 + $0x6c] sm:$0xff] }
  0xe3   : > { %v5435_v56 = vpop.f32.mrf.mxu0  ;;  %v1959_v54 = vrot.slane %v1957_v30, 4 }
  0xe4   : > { %v5438_v59 = vpop.f32.mrf.mxu3  ;;  %v940_v60 = vpop.f32.mrf.mxu1 }
  0xe5   : > { %v941_v62 = vadd.f32 %v940_v60, %v5312_v41  ;;  %v1955_v41 = vsel %vm5019_vm3, %v1950_v8, %v1954_v25  ;;  %v1968_v60 = vrot.slane %v1966_v33, 5  ;;  %v1137_v8 = vsel %vm5193_vm7, %v4352_v50, %v1136_v16 }
  0xe6   : > { %4545 = vmatmul.msk.bf16.gmra.mxu0 %vm658_vm4, %v2165_v27  ;;  %v2142_v27 = vunpack.c.l.b16 %v1945_v19  ;;  %v2143_v51 = vunpack.c.l.b16 %v1955_v41  ;;  %v1976_v19 = vshll.u32 %v4518_v4, 16 }
  0xe7   : > { %v5442_v10 = vpop.f32.mrf.mxu2  ;;  %4335 = vmatmul.msk.bf16.gmra.mxu1 %vm658_vm4, %v4841_v57  ;;  %v1962_v57 = vrot.slane %v1960_v31, 5  ;;  %v1973_v15 = vor.u32 %v1972_v20, %v1968_v60 }
  0xe8   : > { %v2166_v25 = vpack.c.b16 %v2143_v51, %v2142_v27  ;;  %v1978_v42 = vrot.slane %v1976_v19, 5  ;;  %v4520_v27 = vld [vmem:[%s5007_s27 + $0x88] sm:$0xf]  ;;  %v4900_v51 = vld [vmem:[%s5007_s27 + $0x7c] sm:$0xf] }
  0xe9   : > { %v1963_v14 = vor.u32 %v1962_v57, %v1959_v54  ;;  %v1030_v54 = vld [vmem:[%s5007_s27 + $0x78] sm:$0xe] }
  0xeb   : > { %v5453_v24 = vpop.f32.mrf.mxu0  ;;  %v1964_v21 = vrot.slane %v1963_v14, 4 }
  0xec   : > { %v5455_v32 = vpop.f32.mrf.mxu3  ;;  %4368 = vmatmul.msk.bf16.gmra.mxu2 %vm658_vm4, %v1225_v11  ;;  %v942_v35 = vpop.f32.mrf.mxu1 }
  0xed   : > { %v943_v1 = vadd.f32 %v942_v35, %v5335_v9  ;;  %v1140_v9 = vsel %vm5193_vm7, %v1138_v48, %v1139_v47  ;;  %v1974_v35 = vrot.slane %v1973_v15, 4  ;;  %v4519_v47 = vld [vmem:[%s5007_s27 + $0x84] sm:$0xf]  ;;  %v4858_v15 = vld [vmem:[%s5007_s27 + $0x78] sm:$0xff] }
  0xee   : > { %v1204_v30 = vunpack.c.l.b16 %v1140_v9  ;;  %v1984_v57 = vshll.u32 %v4519_v47, 16  ;;  %v1994_v9 = vshrl.u32 %v4520_v27, 16 }
  0xef   : > { %v1293_v52 = vpop.f32.mrf.mxu2  ;;  %v1979_v4 = vsel %vm5019_vm3, %v1974_v35, %v1978_v42 }
  0xf0   : > { %v1373_v61 = vadd.f32 %v1293_v52, %v941_v62  ;;  %v1203_v62 = vunpack.c.l.b16 %v1137_v8  ;;  %v1143_v52 = vrot.slane %v4900_v51, 5  ;;  %v1990_v8 = vshll.u32 %v4520_v27, 16 }
  0xf1   : > { %4481 = vmatmul.msk.bf16.gmra.mxu3 %vm658_vm4, %v4857_v46  ;;  %v1996_v35 = vrot.slane %v1994_v9, 4 }
  0xf2   : > { %v1226_v48 = vpack.c.b16 %v1204_v30, %v1203_v62 }
  0xf3   : > { %v2234_v11 = vpop.f32.mrf.mxu0 }
  0xf4   : > { %v1580_v41 = vpop.f32.mrf.mxu3  ;;  %v945_v23 = vpop.f32.mrf.mxu1 }
  0xf5   : > { %v1660_v31 = vadd.f32 %v1580_v41, %v1373_v61  ;;  %v946_v16 = vadd.f32 %v945_v23, %v5354_v38  ;;  %v1981_v38 = vshrl.u32 %v4519_v47, 16  ;;  %v1969_v61 = vsel %vm5019_vm3, %v1964_v21, %v1968_v60 }
  0xf6   : > { %4546 = vmatmul.msk.bf16.gmra.mxu0 %vm658_vm4, %v2166_v25  ;;  %v4901_v25 = vld [vmem:[%s5007_s27 + $0x80] sm:$0x1]  ;;  %v4353_v41 = vrot.slane %v1030_v54, 9  ;;  %v1145_v23 = vrot.slane %v1143_v52, 4  ;;  %v2144_v62 = vunpack.c.l.b16 %v1969_v61  ;;  %v2145_v60 = vunpack.c.l.b16 %v1979_v4 }
  0xf7   : > { %v1295_v33 = vpop.f32.mrf.mxu2  ;;  %4336 = vmatmul.msk.bf16.gmra.mxu1 %vm658_vm4, %v4842_v13  ;;  %v5472_v46 = vadd.f32 %v2234_v11, %v1660_v31  ;;  %v1146_v11 = vrot.slane %v4901_v25, 5  ;;  %v1983_v30 = vrot.slane %v1981_v38, 4  ;;  %v1986_v31 = vrot.slane %v1984_v57, 5  ;;  %v4843_v38 = vld [vmem:[%s5007_s27 + $0x78] sm:$0xff] }
  0xf8   : > { %v1374_v50 = vadd.f32 %v1295_v33, %v943_v1  ;;  %v1992_v21 = vrot.slane %v1990_v8, 5  ;;  %v2167_v27 = vpack.c.b16 %v2145_v60, %v2144_v62  ;;  %v4523_v62 = vld [vmem:[%s5007_s27 + $0x94] sm:$0xf]  ;;  %v4902_v60 = vld [vmem:[%s5007_s27 + $0x88] sm:$0xf] }
  0xf9   : > { %v1987_v51 = vor.u32 %v1986_v31, %v1983_v30  ;;  %v1150_v30 = vrot.slane %v4902_v60, 5  ;;  %v1031_v31 = vld [vmem:[%s5007_s27 + $0x84] sm:$0xe] }
  0xfa   : > { %v1997_v57 = vor.u32 %v1996_v35, %v1992_v21 }
  0xfb   : > { %v2236_v20 = vpop.f32.mrf.mxu0  ;;  %v1988_v25 = vrot.slane %v1987_v51, 4 }
  0xfc   : > { %v1582_v1 = vpop.f32.mrf.mxu3  ;;  %4369 = vmatmul.msk.bf16.gmra.mxu2 %vm658_vm4, %v1226_v48  ;;  %v947_v13 = vpop.f32.mrf.mxu1  ;;  %v4521_v48 = vld [vmem:[%s5007_s27 + $0x8c] sm:$0x1] }
  0xfd   : > { %v1661_v14 = vadd.f32 %v1582_v1, %v1374_v50  ;;  %v948_v19 = vadd.f32 %v947_v13, %v5372_v3  ;;  %v1144_v50 = vsel %vm5193_vm7, %v4353_v41, %v1143_v52  ;;  %v1147_v3 = vsel %vm5193_vm7, %v1145_v23, %v1146_v11 }
  0xfe   : > { %v2000_v61 = vshll.u32 %v4521_v48, 16  ;;  %v1206_v8 = vunpack.c.l.b16 %v1147_v3  ;;  %v1998_v1 = vrot.slane %v1997_v57, 4  ;;  %v2018_v3 = vshrl.u32 %v4523_v62, 16  ;;  %v4859_v57 = vld [vmem:[%s5007_s27 + $0x84] sm:$0xff] }
  0xff   : > { %v1298_v33 = vpop.f32.mrf.mxu2  ;;  %v5485_v42 = vadd.f32 %v2236_v20, %v1661_v14  ;;  %v4522_v14 = vld [vmem:[%s5007_s27 + $0x90] sm:$0xf] }
 0x100   : > { %v1375_v47 = vadd.f32 %v1298_v33, %v946_v16  ;;  %v1205_v16 = vunpack.c.l.b16 %v1144_v50  ;;  %v2002_v13 = vrot.slane %v2000_v61, 5  ;;  %v2005_v33 = vshrl.u32 %v4522_v14, 16 }
 0x101   : > { %4482 = vmatmul.msk.bf16.gmra.mxu3 %vm658_vm4, %v4858_v15  ;;  %v2008_v48 = vshll.u32 %v4522_v14, 16  ;;  %v2014_v50 = vshll.u32 %v4523_v62, 16  ;;  %v4354_v61 = vrot.slane %v1031_v31, 9 }
 0x102   : > { %v1227_v23 = vpack.c.b16 %v1206_v8, %v1205_v16  ;;  %v2007_v8 = vrot.slane %v2005_v33, 4 }
 0x103   : > { %v2239_v54 = vpop.f32.mrf.mxu0 }
 0x104   : > { %v1585_v4 = vpop.f32.mrf.mxu3  ;;  %v950_v20 = vpop.f32.mrf.mxu1 }
 0x105   : > { %v1662_v9 = vadd.f32 %v1585_v4, %v1375_v47  ;;  %v951_v52 = vadd.f32 %v950_v20, %v5394_v44  ;;  %v1993_v44 = vsel %vm5019_vm3, %v1988_v25, %v1992_v21  ;;  %v2003_v47 = vsel %vm5019_vm3, %v1998_v1, %v2002_v13 }
 0x106   : > { %4547 = vmatmul.msk.bf16.gmra.mxu0 %vm658_vm4, %v2167_v27  ;;  %v4903_v27 = vld [vmem:[%s5007_s27 + $0x8c] sm:$0x1]  ;;  %v1152_v4 = vrot.slane %v1150_v30, 4  ;;  %v2146_v20 = vunpack.c.l.b16 %v1993_v44  ;;  %v2147_v16 = vunpack.c.l.b16 %v2003_v47  ;;  %v2010_v25 = vrot.slane %v2008_v48, 5  ;;  %v4844_v44 = vld [vmem:[%s5007_s27 + $0x84] sm:$0xff] }
 0x107   : > { %v1300_v11 = vpop.f32.mrf.mxu2  ;;  %4337 = vmatmul.msk.bf16.gmra.mxu1 %vm658_vm4, %v4843_v38  ;;  %v5498_v15 = vadd.f32 %v2239_v54, %v1662_v9  ;;  %v1153_v51 = vrot.slane %v4903_v27, 5  ;;  %v2020_v1 = vrot.slane %v2018_v3, 4 }
 0x108   : > { %v1376_v41 = vadd.f32 %v1300_v11, %v948_v19  ;;  %v2016_v11 = vrot.slane %v2014_v50, 5  ;;  %v2168_v62 = vpack.c.b16 %v2147_v16, %v2146_v20  ;;  %v2011_v31 = vor.u32 %v2010_v25, %v2007_v8  ;;  %v4526_v20 = vld [vmem:[%s5007_s27 + $0xa0] sm:$0xf]  ;;  %v4904_v16 = vld [vmem:[%s5007_s27 + $0x94] sm:$0xf] }
 0x109   : > { %v1157_v8 = vrot.slane %v4904_v16, 5 }
 0x10a   : > { %v2021_v33 = vor.u32 %v2020_v1, %v2016_v11 }
 0x10b   : > { %v2241_v35 = vpop.f32.mrf.mxu0 }
 0x10c   : > { %v1587_v19 = vpop.f32.mrf.mxu3  ;;  %4370 = vmatmul.msk.bf16.gmra.mxu2 %vm658_vm4, %v1227_v23  ;;  %v952_v54 = vpop.f32.mrf.mxu1  ;;  %v4524_v23 = vld [vmem:[%s5007_s27 + $0x98] sm:$0x1] }
 0x10d   : > { %v1663_v38 = vadd.f32 %v1587_v19, %v1376_v41  ;;  %v953_v21 = vadd.f32 %v952_v54, %v5412_v5  ;;  %v1151_v41 = vsel %vm5193_vm7, %v4354_v61, %v1150_v30  ;;  %v1154_v5 = vsel %vm5193_vm7, %v1152_v4, %v1153_v51 }
 0x10e   : > { %v2024_v47 = vshll.u32 %v4524_v23, 16  ;;  %v1208_v50 = vunpack.c.l.b16 %v1154_v5  ;;  %v2012_v51 = vrot.slane %v2011_v31, 4  ;;  %v2022_v19 = vrot.slane %v2021_v33, 4  ;;  %v4860_v33 = vld [vmem:[%s5007_s27 + $0x90] sm:$0xff] }
 0x10f   : > { %v1303_v9 = vpop.f32.mrf.mxu2  ;;  %v5511_v13 = vadd.f32 %v2241_v35, %v1663_v38  ;;  %v4525_v38 = vld [vmem:[%s5007_s27 + $0x9c] sm:$0xf]  ;;  %v2042_v5 = vshrl.u32 %v4526_v20, 16 }
 0x110   : > { %v1377_v14 = vadd.f32 %v1303_v9, %v951_v52  ;;  %v1207_v52 = vunpack.c.l.b16 %v1151_v41  ;;  %v2026_v54 = vrot.slane %v2024_v47, 5  ;;  %v1032_v9 = vld [vmem:[%s5007_s27 + $0x90] sm:$0xe]  ;;  %v2032_v25 = vshll.u32 %v4525_v38, 16 }
 0x111   : > { %4483 = vmatmul.msk.bf16.gmra.mxu3 %vm658_vm4, %v4859_v57  ;;  %v2038_v41 = vshll.u32 %v4526_v20, 16 }
 0x112   : > { %v1228_v4 = vpack.c.b16 %v1208_v50, %v1207_v52  ;;  %v2027_v23 = vsel %vm5019_vm3, %v2022_v19, %v2026_v54  ;;  %v2044_v19 = vrot.slane %v2042_v5, 4 }
 0x113   : > { %v2244_v60 = vpop.f32.mrf.mxu0 }
 0x114   : > { %v1590_v48 = vpop.f32.mrf.mxu3  ;;  %v955_v35 = vpop.f32.mrf.mxu1 }
 0x115   : > { %v1664_v3 = vadd.f32 %v1590_v48, %v1377_v14  ;;  %v956_v30 = vadd.f32 %v955_v35, %v5435_v56  ;;  %v2029_v56 = vshrl.u32 %v4525_v38, 16  ;;  %v2017_v14 = vsel %vm5019_vm3, %v2012_v51, %v2016_v11 }
 0x116   : > { %4548 = vmatmul.msk.bf16.gmra.mxu0 %vm658_vm4, %v2168_v62  ;;  %v4905_v62 = vld [vmem:[%s5007_s27 + $0x98] sm:$0x1]  ;;  %v4355_v48 = vrot.slane %v1032_v9, 9  ;;  %v1159_v35 = vrot.slane %v1157_v8, 4  ;;  %v2148_v52 = vunpack.c.l.b16 %v2017_v14  ;;  %v2149_v11 = vunpack.c.l.b16 %v2027_v23 }
 0x117   : > { %v1305_v27 = vpop.f32.mrf.mxu2  ;;  %4338 = vmatmul.msk.bf16.gmra.mxu1 %vm658_vm4, %v4844_v44  ;;  %v5524_v57 = vadd.f32 %v2244_v60, %v1664_v3  ;;  %v1160_v60 = vrot.slane %v4905_v62, 5  ;;  %v2031_v50 = vrot.slane %v2029_v56, 4  ;;  %v2034_v3 = vrot.slane %v2032_v25, 5  ;;  %v4845_v56 = vld [vmem:[%s5007_s27 + $0x90] sm:$0xff] }
 0x118   : > { %v1378_v61 = vadd.f32 %v1305_v27, %v953_v21  ;;  %v2040_v51 = vrot.slane %v2038_v41, 5  ;;  %v2169_v20 = vpack.c.b16 %v2149_v11, %v2148_v52  ;;  %v4529_v11 = vld [vmem:[%s5007_s27 + $0xac] sm:$0xf] }
 0x119   : > { %v2035_v16 = vor.u32 %v2034_v3, %v2031_v50  ;;  %v1033_v50 = vld [vmem:[%s5007_s27 + $0x9c] sm:$0xe] }
 0x11a   : > { %v2045_v25 = vor.u32 %v2044_v19, %v2040_v51 }
 0x11b   : > { %v2246_v1 = vpop.f32.mrf.mxu0 }
 0x11c   : > { %v1592_v21 = vpop.f32.mrf.mxu3  ;;  %4371 = vmatmul.msk.bf16.gmra.mxu2 %vm658_vm4, %v1228_v4  ;;  %v957_v44 = vpop.f32.mrf.mxu1  ;;  %v4527_v4 = vld [vmem:[%s5007_s27 + $0xa4] sm:$0x1] }
 0x11d   : > { %v1665_v31 = vadd.f32 %v1592_v21, %v1378_v61  ;;  %v958_v47 = vadd.f32 %v957_v44, %v5453_v24  ;;  %v1158_v61 = vsel %vm5193_vm7, %v4355_v48, %v1157_v8  ;;  %v1161_v24 = vsel %vm5193_vm7, %v1159_v35, %v1160_v60  ;;  %v4528_v44 = vld [vmem:[%s5007_s27 + $0xa8] sm:$0xf]  ;;  %v4906_v35 = vld [vmem:[%s5007_s27 + $0xa0] sm:$0xf] }
 0x11e   : > { %v2048_v14 = vshll.u32 %v4527_v4, 16  ;;  %v1210_v41 = vunpack.c.l.b16 %v1161_v24  ;;  %v2036_v8 = vrot.slane %v2035_v16, 4  ;;  %v2046_v60 = vrot.slane %v2045_v25, 4 }
 0x11f   : > { %v1308_v27 = vpop.f32.mrf.mxu2  ;;  %v5537_v54 = vadd.f32 %v2246_v1, %v1665_v31  ;;  %v1164_v52 = vrot.slane %v4906_v35, 5  ;;  %v2056_v19 = vshll.u32 %v4528_v44, 16  ;;  %v2066_v24 = vshrl.u32 %v4529_v11, 16 }
 0x120   : > { %v1379_v38 = vadd.f32 %v1308_v27, %v956_v30  ;;  %v1209_v30 = vunpack.c.l.b16 %v1158_v61  ;;  %v2050_v21 = vrot.slane %v2048_v14, 5  ;;  %v2041_v3 = vsel %vm5019_vm3, %v2036_v8, %v2040_v51 }
 0x121   : > { %4484 = vmatmul.msk.bf16.gmra.mxu3 %vm658_vm4, %v4860_v33  ;;  %v2053_v27 = vshrl.u32 %v4528_v44, 16  ;;  %v2062_v61 = vshll.u32 %v4529_v11, 16  ;;  %v1166_v25 = vrot.slane %v1164_v52, 4  ;;  %v2150_v51 = vunpack.c.l.b16 %v2041_v3  ;;  %v4530_v11 = vld [vmem:[%s5007_s27 + $0xb0] sm:$0x1]  ;;  %v4846_v3 = vld [vmem:[%s5007_s27 + $0x9c] sm:$0xff] }
 0x122   : > { %v1229_v48 = vpack.c.b16 %v1210_v41, %v1209_v30  ;;  %v2051_v4 = vsel %vm5019_vm3, %v2046_v60, %v2050_v21  ;;  %v2058_v8 = vrot.slane %v2056_v19, 5  ;;  %v2068_v21 = vrot.slane %v2066_v24, 4 }
 0x123   : > { %v2249_v9 = vpop.f32.mrf.mxu0  ;;  %v2151_v41 = vunpack.c.l.b16 %v2051_v4  ;;  %v2064_v60 = vrot.slane %v2062_v61, 5  ;;  %v2072_v4 = vshll.u32 %v4530_v11, 16 }
 0x124   : > { %v1595_v1 = vpop.f32.mrf.mxu3  ;;  %v960_v23 = vpop.f32.mrf.mxu1 }
 0x125   : > { %v1666_v5 = vadd.f32 %v1595_v1, %v1379_v38  ;;  %v4861_v1 = vld [vmem:[%s5007_s27 + $0x9c] sm:$0xff]  ;;  %v961_v30 = vadd.f32 %v960_v23, %v5288_v7  ;;  %v2170_v7 = vpack.c.b16 %v2151_v41, %v2150_v51  ;;  %v2074_v51 = vrot.slane %v2072_v4, 5 }
 0x126   : > { %4549 = vmatmul.msk.bf16.gmra.mxu0 %vm658_vm4, %v2169_v20  ;;  %v4907_v20 = vld [vmem:[%s5007_s27 + $0xa4] sm:$0x1] }
 0x127   : > { %v1310_v62 = vpop.f32.mrf.mxu2  ;;  %4339 = vmatmul.msk.bf16.gmra.mxu1 %vm658_vm4, %v4845_v56  ;;  %v5549_v31 = vadd.f32 %v2249_v9, %v1666_v5  ;;  %v1167_v16 = vrot.slane %v4907_v20, 5  ;;  %v4356_v56 = vrot.slane %v1033_v50, 9  ;;  %v2055_v5 = vrot.slane %v2053_v27, 4 }
 0x128   : > { %v1380_v33 = vadd.f32 %v1310_v62, %v958_v47 }
 0x129   : > { %v2059_v23 = vor.u32 %v2058_v8, %v2055_v5 }
 0x12b   : > { %v2251_v38 = vpop.f32.mrf.mxu0 }
 0x12c   : > { %v1597_v47 = vpop.f32.mrf.mxu3  ;;  %4372 = vmatmul.msk.bf16.gmra.mxu2 %vm658_vm4, %v1229_v48  ;;  %v962_v9 = vpop.f32.mrf.mxu1  ;;  %v1165_v48 = vsel %vm5193_vm7, %v4356_v56, %v1164_v52  ;;  %v4531_v52 = vld [vmem:[%s5007_s27 + $0xb4] sm:$0xf]  ;;  %v2060_v56 = vrot.slane %v2059_v23, 4 }
 0x12d   : > { %v1667_v14 = vadd.f32 %v1597_v47, %v1380_v33  ;;  %v1168_v33 = vsel %vm5193_vm7, %v1166_v25, %v1167_v16  ;;  %v1211_v27 = vunpack.c.l.b16 %v1165_v48  ;;  %v4532_v47 = vld [vmem:[%s5007_s27 + $0xb8] sm:$0xf]  ;;  %v963_v16 = vadd.f32 %v962_v9, %v5304_v34 }
 0x12e   : > { %v1212_v19 = vunpack.c.l.b16 %v1168_v33  ;;  %v2077_v5 = vshrl.u32 %v4531_v52, 16  ;;  %v2080_v8 = vshll.u32 %v4531_v52, 16  ;;  %v2090_v48 = vshrl.u32 %v4532_v47, 16  ;;  %v1034_v33 = vld [vmem:[%s5007_s27 + $0xa8] sm:$0xe] }
 0x12f   : > { %v1313_v62 = vpop.f32.mrf.mxu2  ;;  %v5562_v44 = vadd.f32 %v2251_v38, %v1667_v14  ;;  %v2069_v38 = vor.u32 %v2068_v21, %v2064_v60  ;;  %v4908_v21 = vld [vmem:[%s5007_s27 + $0xac] sm:$0xf]  ;;  %v2065_v9 = vsel %vm5019_vm3, %v2060_v56, %v2064_v60 }
 0x130   : > { %v1381_v35 = vadd.f32 %v1313_v62, %v961_v30  ;;  %v1230_v14 = vpack.c.b16 %v1212_v19, %v1211_v27  ;;  %v2086_v62 = vshll.u32 %v4532_v47, 16  ;;  %v2079_v27 = vrot.slane %v2077_v5, 4 }
 0x131   : > { %4485 = vmatmul.msk.bf16.gmra.mxu3 %vm658_vm4, %v4861_v1  ;;  %v2070_v1 = vrot.slane %v2069_v38, 4  ;;  %v2082_v19 = vrot.slane %v2080_v8, 5  ;;  %v2092_v47 = vrot.slane %v2090_v48, 4  ;;  %v4847_v48 = vld [vmem:[%s5007_s27 + $0xa8] sm:$0xff] }
 0x132   : > { %v2088_v38 = vrot.slane %v2086_v62, 5 }
 0x133   : > { %v2254_v50 = vpop.f32.mrf.mxu0  ;;  %v2075_v11 = vsel %vm5019_vm3, %v2070_v1, %v2074_v51 }
 0x134   : > { %v1600_v61 = vpop.f32.mrf.mxu3  ;;  %v965_v24 = vpop.f32.mrf.mxu1  ;;  %v2153_v56 = vunpack.c.l.b16 %v2075_v11  ;;  %v2093_v8 = vor.u32 %v2092_v47, %v2088_v38 }
 0x135   : > { %v1668_v20 = vadd.f32 %v1600_v61, %v1381_v35  ;;  %v1171_v35 = vrot.slane %v4908_v21, 5  ;;  %v4862_v61 = vld [vmem:[%s5007_s27 + $0xa8] sm:$0xff]  ;;  %v966_v60 = vadd.f32 %v965_v24, %v5324_v58 }
 0x136   : > { %4550 = vmatmul.msk.bf16.gmra.mxu0 %vm658_vm4, %v2170_v7  ;;  %v4909_v7 = vld [vmem:[%s5007_s27 + $0xb0] sm:$0x1] }
 0x137   : > { %v1315_v25 = vpop.f32.mrf.mxu2  ;;  %4340 = vmatmul.msk.bf16.gmra.mxu1 %vm658_vm4, %v4846_v3  ;;  %v5576_v30 = vadd.f32 %v2254_v50, %v1668_v20  ;;  %v1174_v23 = vrot.slane %v4909_v7, 5  ;;  %v4357_v20 = vrot.slane %v1034_v33, 9  ;;  %v1173_v52 = vrot.slane %v1171_v35, 4 }
 0x138   : > { %v1382_v41 = vadd.f32 %v1315_v25, %v963_v16  ;;  %v2152_v16 = vunpack.c.l.b16 %v2065_v9  ;;  %v4533_v25 = vld [vmem:[%s5007_s27 + $0xbc] sm:$0x1] }
 0x139   : > { %v1175_v5 = vsel %vm5193_vm7, %v1173_v52, %v1174_v23  ;;  %v2096_v58 = vshll.u32 %v4533_v25, 16  ;;  %v4535_v52 = vld [vmem:[%s5007_s27 + $0xc4] sm:$0xf] }
 0x13a   : > { %v2171_v24 = vpack.c.b16 %v2153_v56, %v2152_v16  ;;  %v1214_v11 = vunpack.c.l.b16 %v1175_v5  ;;  %v1035_v16 = vld [vmem:[%s5007_s27 + $0xb4] sm:$0xe]  ;;  %v4911_v56 = vld [vmem:[%s5007_s27 + $0xb8] sm:$0xf]  ;;  %v2114_v5 = vshrl.u32 %v4535_v52, 16 }
 0x13b   : > { %v2256_v34 = vpop.f32.mrf.mxu0  ;;  %v1178_v25 = vrot.slane %v4911_v56, 5 }
 0x13c   : > { %v1602_v50 = vpop.f32.mrf.mxu3  ;;  %4373 = vmatmul.msk.bf16.gmra.mxu2 %vm658_vm4, %v1230_v14  ;;  %v967_v3 = vpop.f32.mrf.mxu1  ;;  %v2083_v14 = vor.u32 %v2082_v19, %v2079_v27  ;;  %v2098_v27 = vrot.slane %v2096_v58, 5  ;;  %v4534_v19 = vld [vmem:[%s5007_s27 + $0xc0] sm:$0xf]  ;;  %v4912_v58 = vld [vmem:[%s5007_s27 + $0x14] sm:$0x1] }
 0x13d   : > { %v1669_v4 = vadd.f32 %v1602_v50, %v1382_v41  ;;  %v1172_v41 = vsel %vm5193_vm7, %v4357_v20, %v1171_v35  ;;  %v2094_v35 = vrot.slane %v2093_v8, 4  ;;  %v968_v23 = vadd.f32 %v967_v3, %v5341_v28 }
 0x13e   : > { %v1213_v9 = vunpack.c.l.b16 %v1172_v41  ;;  %v2084_v50 = vrot.slane %v2083_v14, 4  ;;  %v2101_v3 = vshrl.u32 %v4534_v19, 16  ;;  %v2104_v14 = vshll.u32 %v4534_v19, 16  ;;  %v4863_v19 = vld [vmem:[%s5007_s27 + $0xb4] sm:$0xff] }
 0x13f   : > { %v1318_v1 = vpop.f32.mrf.mxu2  ;;  %v5589_v51 = vadd.f32 %v2256_v34, %v1669_v4  ;;  %v4910_v4 = vld [vmem:[%s5007_s27 + $0x10] sm:$0xf]  ;;  %v2099_v28 = vsel %vm5019_vm3, %v2094_v35, %v2098_v27  ;;  %v2110_v41 = vshll.u32 %v4535_v52, 16  ;;  %v1180_v35 = vrot.slane %v1178_v25, 4  ;;  %v4554_v27 = vld [vmem:[%s5007_s27 + $0xc] sm:$0xe] }
 0x140   : > { %v1383_v21 = vadd.f32 %v1318_v1, %v966_v60  ;;  %v1231_v60 = vpack.c.b16 %v1214_v11, %v1213_v9  ;;  %v4913_v9 = vld [vmem:[%s5007_s27 + $0xbc] sm:$0x1]  ;;  %v4570_v52 = vrot.slane %v4554_v27, 9 }
 0x141   : > { %4486 = vmatmul.msk.bf16.gmra.mxu3 %vm658_vm4, %v4862_v61  ;;  %v2412_v61 = vrot.slane %v4910_v4, 5  ;;  %v2103_v4 = vrot.slane %v2101_v3, 4 }
 0x143   : > { %v2259_v62 = vpop.f32.mrf.mxu0  ;;  %v2414_v8 = vrot.slane %v2412_v61, 4 }
 0x144   : > { %v1605_v33 = vpop.f32.mrf.mxu3  ;;  %v970_v34 = vpop.f32.mrf.mxu1 }
 0x145   : > { %v1670_v7 = vadd.f32 %v1605_v33, %v1383_v21  ;;  %v2089_v21 = vsel %vm5019_vm3, %v2084_v50, %v2088_v38  ;;  %v4358_v33 = vrot.slane %v1035_v16, 9  ;;  %v971_v56 = vadd.f32 %v970_v34, %v5361_v53 }
 0x146   : > { %4551 = vmatmul.msk.bf16.gmra.mxu0 %vm658_vm4, %v2171_v24  ;;  %v2415_v24 = vrot.slane %v4912_v58, 5  ;;  %v2154_v38 = vunpack.c.l.b16 %v2089_v21  ;;  %v2112_v16 = vrot.slane %v2110_v41, 5  ;;  %v2116_v58 = vrot.slane %v2114_v5, 4  ;;  %v4536_v21 = vld [vmem:[%s5007_s27 + $0xc8] sm:$0x1] }
 0x147   : > { %v1320_v20 = vpop.f32.mrf.mxu2  ;;  %4341 = vmatmul.msk.bf16.gmra.mxu1 %vm658_vm4, %v4847_v48  ;;  %v5605_v1 = vadd.f32 %v2259_v62, %v1670_v7  ;;  %v1181_v62 = vrot.slane %v4913_v9, 5  ;;  %v2155_v7 = vunpack.c.l.b16 %v2099_v28  ;;  %v2413_v28 = vsel %vm5193_vm7, %v4570_v52, %v2412_v61  ;;  %v4716_v41 = vld [vmem:[%s5007_s27 + $0x18] sm:$0xf] }
 0x148   : > { %v1384_v47 = vadd.f32 %v1320_v20, %v968_v23  ;;  %v2106_v20 = vrot.slane %v2104_v14, 5  ;;  %v2524_v53 = vunpack.c.l.b16 %v2413_v28  ;;  %v2120_v27 = vshll.u32 %v4536_v21, 16 }
 0x149   : > { %v1182_v14 = vsel %vm5193_vm7, %v1180_v35, %v1181_v62  ;;  %v2172_v5 = vpack.c.b16 %v2155_v7, %v2154_v38  ;;  %v3080_v62 = vshrl.u32 %v4716_v41, 16  ;;  %v3083_v35 = vshll.u32 %v4716_v41, 16 }
 0x14b   : > { %v2261_v48 = vpop.f32.mrf.mxu0  ;;  %v3082_v21 = vrot.slane %v3080_v62, 4 }
 0x14c   : > { %v1607_v11 = vpop.f32.mrf.mxu3  ;;  %4374 = vmatmul.msk.bf16.gmra.mxu2 %vm658_vm4, %v1231_v60  ;;  %v972_v50 = vpop.f32.mrf.mxu1  ;;  %v1179_v60 = vsel %vm5193_vm7, %v4358_v33, %v1178_v25  ;;  %v5629_v25 = vld [vmem:[%s5007_s27 + $0x1c] sm:$0xf]  ;;  %v2117_v33 = vor.u32 %v2116_v58, %v2112_v16 }
 0x14d   : > { %v1671_v23 = vadd.f32 %v1607_v11, %v1384_v47  ;;  %v2416_v47 = vsel %vm5193_vm7, %v2414_v8, %v2415_v24  ;;  %v2107_v11 = vor.u32 %v2106_v20, %v2103_v4  ;;  %v4848_v24 = vld [vmem:[%s5007_s27 + $0xb4] sm:$0xff]  ;;  %v3093_v38 = vshrl.u32 %v5629_v25, 16 }
 0x14e   : > { %v2525_v34 = vunpack.c.l.b16 %v2416_v47  ;;  %v973_v4 = vadd.f32 %v972_v50, %v5381_v17 }
 0x14f   : > { %v1323_v9 = vpop.f32.mrf.mxu2  ;;  %v5633_v52 = vadd.f32 %v2261_v48, %v1671_v23  ;;  %v2108_v48 = vrot.slane %v2107_v11, 4  ;;  %v2118_v23 = vrot.slane %v2117_v33, 4  ;;  %v3095_v41 = vrot.slane %v3093_v38, 4 }
 0x150   : > { %v1385_v3 = vadd.f32 %v1323_v9, %v971_v56  ;;  %v5631_v61 = vpack.c.b16 %v2525_v34, %v2524_v53  ;;  %v1215_v56 = vunpack.c.l.b16 %v1179_v60  ;;  %v1216_v9 = vunpack.c.l.b16 %v1182_v14 }
 0x151   : > { %4487 = vmatmul.msk.bf16.gmra.mxu3 %vm658_vm4, %v4863_v19  ;;  %6382 = vst [vmem:[#allocation2_spill] sm:$0xff] %v5633_v52  ;;  %v3089_v19 = vshll.u32 %v5629_v25, 16  ;;  %v2122_v60 = vrot.slane %v2120_v27, 5  ;;  %v3085_v14 = vrot.slane %v3083_v35, 5  ;;  %v2113_v17 = vsel %vm5019_vm3, %v2108_v48, %v2112_v16  ;;  %v4781_v48 = vld [vmem:[%s5007_s27 + $0x18] sm:$0xe] }
 0x152   : > { %v1232_v58 = vpack.c.b16 %v1216_v9, %v1215_v56  ;;  %v4864_v9 = vld [vmem:[%s5007_s27 + $0xc0] sm:$0xff]  ;;  %v2156_v16 = vunpack.c.l.b16 %v2113_v17 }
 0x153   : > { %v2264_v8 = vpop.f32.mrf.mxu0  ;;  %v3091_v34 = vrot.slane %v3089_v19, 5  ;;  %v2123_v50 = vsel %vm5019_vm3, %v2118_v23, %v2122_v60  ;;  %v3086_v27 = vor.u32 %v3085_v14, %v3082_v21  ;;  %v4719_v23 = vld [vmem:[%s5007_s27 + $0x24] sm:$0xf]  ;;  %v5659_v60 = vld [vmem:[%s5007_s27 + $0x28] sm:$0xf] }
 0x154   : > { %v1610_v28 = vpop.f32.mrf.mxu3  ;;  %v975_v47 = vpop.f32.mrf.mxu1  ;;  %v2157_v35 = vunpack.c.l.b16 %v2123_v50 }
 0x155   : > { %v1672_v7 = vadd.f32 %v1610_v28, %v1385_v3  ;;  %v5644_v3 = vld [vmem:[%s5007_s27 + $0x20] sm:$0x1]  ;;  %v976_v62 = vadd.f32 %v975_v47, %v5404_v2  ;;  %v3087_v38 = vrot.slane %v3086_v27, 4  ;;  %v4914_v47 = vld [vmem:[%s5007_s27 + $0x1c] sm:$0xf] }
 0x156   : > { %4552 = vmatmul.msk.bf16.gmra.mxu0 %vm658_vm4, %v2172_v5  ;;  %v2419_v14 = vrot.slane %v4914_v47, 5  ;;  %v4555_v27 = vld [vmem:[%s5007_s27 + $0x18] sm:$0xe] }
 0x157   : > { %v1325_v20 = vpop.f32.mrf.mxu2  ;;  %4342 = vmatmul.msk.bf16.gmra.mxu1 %vm658_vm4, %v4848_v24  ;;  %v5641_v52 = vadd.f32 %v2264_v8, %v1672_v7  ;;  %v3096_v24 = vor.u32 %v3095_v41, %v3091_v34  ;;  %v3099_v8 = vshll.u32 %v5644_v3, 16  ;;  %v3092_v17 = vsel %vm5019_vm3, %v3087_v38, %v3091_v34 }
 0x158   : > { %v1386_v53 = vadd.f32 %v1325_v20, %v973_v4  ;;  %v2173_v20 = vpack.c.b16 %v2157_v35, %v2156_v16  ;;  %v3754_v34 = vrot.slane %v5644_v3, 5  ;;  %v4915_v16 = vld [vmem:[%s5007_s27 + $0x20] sm:$0x1]  ;;  %v4571_v38 = vrot.slane %v4555_v27, 9 }
 0x159   : > { %v3097_v7 = vrot.slane %v3096_v24, 4  ;;  %v3101_v4 = vrot.slane %v3099_v8, 5  ;;  %v3104_v24 = vshrl.u32 %v4719_v23, 16  ;;  %v3107_v8 = vshll.u32 %v4719_v23, 16 }
 0x15a   : > { %v2422_v35 = vrot.slane %v4915_v16, 5  ;;  %v2420_v27 = vsel %vm5193_vm7, %v4571_v38, %v2419_v14  ;;  %v4722_v38 = vld [vmem:[%s5007_s27 + $0x30] sm:$0xf] }
 0x15b   : > { %v2266_v5 = vpop.f32.mrf.mxu0  ;;  %v3102_v50 = vsel %vm5019_vm3, %v3097_v7, %v3101_v4  ;;  %v2421_v7 = vrot.slane %v2419_v14, 4  ;;  %v3109_v3 = vrot.slane %v3107_v8, 5 }
 0x15c   : > { %v1612_v11 = vpop.f32.mrf.mxu3  ;;  %4375 = vmatmul.msk.bf16.gmra.mxu2 %vm658_vm4, %v1232_v58  ;;  %v977_v33 = vpop.f32.mrf.mxu1  ;;  %v3751_v58 = vrot.slane %v5629_v25, 5  ;;  %v3466_v23 = vunpack.c.l.b16 %v3102_v50 }
 0x15d   : > { %v1673_v56 = vadd.f32 %v1612_v11, %v1386_v53  ;;  %v4797_v11 = vrot.slane %v4781_v48, 9  ;;  %v4865_v48 = vld [vmem:[%s5007_s27 + $0x18] sm:$0xff]  ;;  %v2423_v50 = vsel %vm5193_vm7, %v2421_v7, %v2422_v35  ;;  %v5699_v7 = vld [vmem:[%s5007_s27 + $0x34] sm:$0xf] }
 0x15f   : > { %v1328_v28 = vpop.f32.mrf.mxu2  ;;  %v5661_v21 = vadd.f32 %v2266_v5, %v1673_v56  ;;  %v3113_v5 = vshll.u32 %v5659_v60, 16  ;;  %v3117_v56 = vshrl.u32 %v5659_v60, 16 }
 0x160   : > { %v1387_v19 = vadd.f32 %v1328_v28, %v976_v62  ;;  %v3753_v62 = vrot.slane %v3751_v58, 4 }
 0x161   : > { %4488 = vmatmul.msk.bf16.gmra.mxu3 %vm658_vm4, %v4864_v9  ;;  %v978_v9 = vadd.f32 %v977_v33, %v5424_v29  ;;  %v3106_v33 = vrot.slane %v3104_v24, 4  ;;  %v5682_v47 = vrot.slane %v3113_v5, 5 }
 0x163   : > { %v2269_v2 = vpop.f32.mrf.mxu0  ;;  %v3110_v5 = vor.u32 %v3109_v3, %v3106_v33  ;;  %v4782_v33 = vld [vmem:[%s5007_s27 + $0x24] sm:$0xe] }
 0x164   : > { %v1615_v53 = vpop.f32.mrf.mxu3  ;;  %v980_v41 = vpop.f32.mrf.mxu1 }
 0x165   : > { %v1674_v25 = vadd.f32 %v1615_v53, %v1387_v19  ;;  %v3465_v19 = vunpack.c.l.b16 %v3092_v17  ;;  %v3119_v53 = vrot.slane %v3117_v56, 4  ;;  %v981_v14 = vadd.f32 %v980_v41, %v5306_v37 }
 0x166   : > { %4553 = vmatmul.msk.bf16.gmra.mxu0 %vm658_vm4, %v2173_v20  ;;  %v3752_v20 = vsel %vm5193_vm7, %v4797_v11, %v3751_v58  ;;  %v3758_v37 = vrot.slane %v5659_v60, 5 }
 0x167   : > { %v1330_v28 = vpop.f32.mrf.mxu2  ;;  %4587 = vmatmul.msk.bf16.vlgmr.msra.gmra.mxu1 %vm658_vm4, %v5631_v61  ;;  %v5680_v29 = vadd.f32 %v2269_v2, %v1674_v25  ;;  %v3755_v61 = vsel %vm5193_vm7, %v3753_v62, %v3754_v34  ;;  %v3497_v2 = vpack.c.b16 %v3466_v23, %v3465_v19  ;;  %v3863_v11 = vunpack.c.l.b16 %v3752_v20 }
 0x168   : > { %v1388_v4 = vadd.f32 %v1330_v28, %v978_v9  ;;  %v5691_v9 = vld [vmem:[%s5007_s27 + $0x2c] sm:$0x1]  ;;  %v3864_v8 = vunpack.c.l.b16 %v3755_v61  ;;  %v3120_v56 = vor.u32 %v3119_v53, %v5682_v47  ;;  %v2526_v62 = vunpack.c.l.b16 %v2420_v27 }
 0x169   : > { %v2527_v34 = vunpack.c.l.b16 %v2423_v50  ;;  %v3123_v16 = vshll.u32 %v5691_v9, 16  ;;  %v3128_v53 = vshrl.u32 %v4722_v38, 16  ;;  %v3131_v61 = vshll.u32 %v4722_v38, 16 }
 0x16a   : > { %v3895_v19 = vpack.c.b16 %v3864_v8, %v3863_v11  ;;  %v3137_v27 = vshll.u32 %v5699_v7, 16  ;;  %v3141_v50 = vshrl.u32 %v5699_v7, 16  ;;  %v4916_v11 = vld [vmem:[%s5007_s27 + $0x28] sm:$0xf]  ;;  %v3761_v60 = vrot.slane %v5691_v9, 5 }
 0x16b   : > { %v2271_v17 = vpop.f32.mrf.mxu0  ;;  %v2557_v23 = vpack.c.b16 %v2527_v34, %v2526_v62  ;;  %v3125_v20 = vrot.slane %v3123_v16, 5  ;;  %v2426_v8 = vrot.slane %v4916_v11, 5  ;;  %v4798_v62 = vrot.slane %v4782_v33, 9  ;;  %v4866_v11 = vld [vmem:[%s5007_s27 + $0x24] sm:$0xff] }
 0x16c   : > { %v1617_v58 = vpop.f32.mrf.mxu3  ;;  %4700 = vmatmul.msk.bf16.vlgmr.msra.gmra.mxu2 %vm658_vm4, %v4865_v48  ;;  %v982_v24 = vpop.f32.mrf.mxu1  ;;  %v3121_v48 = vrot.slane %v3120_v56, 4  ;;  %v3133_v33 = vrot.slane %v3131_v61, 5  ;;  %v5720_v9 = vrot.slane %v3137_v27, 5 }
 0x16d   : > { %v1675_v25 = vadd.f32 %v1617_v58, %v1388_v4  ;;  %v3111_v4 = vrot.slane %v3110_v5, 4  ;;  %v4917_v5 = vld [vmem:[%s5007_s27 + $0x2c] sm:$0x1] }
 0x16e   : > { %v2429_v56 = vrot.slane %v4917_v5, 5  ;;  %v3126_v16 = vsel %vm5019_vm3, %v3121_v48, %v3125_v20  ;;  %v3759_v20 = vsel %vm5193_vm7, %v4798_v62, %v3758_v37 }
 0x16f   : > { %v1333_v35 = vpop.f32.mrf.mxu2  ;;  %v5704_v41 = vadd.f32 %v2271_v17, %v1675_v25  ;;  %v4556_v17 = vld [vmem:[%s5007_s27 + $0x24] sm:$0xe]  ;;  %v983_v25 = vadd.f32 %v982_v24, %v5327_v63  ;;  %v3116_v34 = vsel %vm5019_vm3, %v3111_v4, %v5682_v47  ;;  %v2428_v24 = vrot.slane %v2426_v8, 4 }
 0x170   : > { %v1389_v28 = vadd.f32 %v1333_v35, %v981_v14  ;;  %v3760_v35 = vrot.slane %v3758_v37, 4  ;;  %v4572_v63 = vrot.slane %v4556_v17, 9  ;;  %v3467_v47 = vunpack.c.l.b16 %v3116_v34 }
 0x171   : > { %4765 = vmatmul.msk.bf16.vlgmr.msra.gmra.mxu3 %vm658_vm4, %v3497_v2  ;;  %6383 = vst [vmem:[#allocation3_spill] sm:$0xff] %v5704_v41  ;;  %v3468_v4 = vunpack.c.l.b16 %v3126_v16  ;;  %v5726_v41 = vld [vmem:[%s5007_s27 + $0x38] sm:$0x1] }
 0x172   : > { %v3147_v37 = vshll.u32 %v5726_v41, 16 }
 0x173   : > { %v2274_v3 = vpop.f32.mrf.mxu0  ;;  %v3498_v17 = vpack.c.b16 %v3468_v4, %v3467_v47  ;;  %v4918_v4 = vld [vmem:[%s5007_s27 + $0x34] sm:$0xf] }
 0x174   : > { %v1620_v58 = vpop.f32.mrf.mxu3  ;;  %v985_v2 = vpop.f32.mrf.mxu1 }
 0x175   : > { %v1676_v14 = vadd.f32 %v1620_v58, %v1389_v28  ;;  %v3130_v28 = vrot.slane %v3128_v53, 4  ;;  %v3143_v58 = vrot.slane %v3141_v50, 4  ;;  %v2430_v50 = vsel %vm5193_vm7, %v2428_v24, %v2429_v56  ;;  %v5745_v24 = vld [vmem:[%s5007_s27 + $0x40] sm:$0xf] }
 0x176   : > { %4814 = vmatmul.msk.bf16.vlgmr.msra.gmra.mxu0 %vm658_vm4, %v3895_v19 }
 0x177   : > { %v1335_v38 = vpop.f32.mrf.mxu2  ;;  %4588 = vmatmul.msk.bf16.gmra.mxu1 %vm658_vm4, %v2557_v23  ;;  %v5723_v5 = vadd.f32 %v2274_v3, %v1676_v14  ;;  %v3762_v23 = vsel %vm5193_vm7, %v3760_v35, %v3761_v60  ;;  %v3134_v53 = vor.u32 %v3133_v33, %v3130_v28  ;;  %v2427_v3 = vsel %vm5193_vm7, %v4572_v63, %v2426_v8 }
 0x178   : > { %v1390_v19 = vadd.f32 %v1335_v38, %v983_v25  ;;  %v3144_v14 = vor.u32 %v3143_v58, %v5720_v9  ;;  %v986_v60 = vadd.f32 %v985_v2, %v5344_v22  ;;  %v3865_v25 = vunpack.c.l.b16 %v3759_v20  ;;  %v4783_v58 = vld [vmem:[%s5007_s27 + $0x30] sm:$0xe] }
 0x179   : > { %v3866_v34 = vunpack.c.l.b16 %v3762_v23  ;;  %v2528_v35 = vunpack.c.l.b16 %v2427_v3  ;;  %v2529_v8 = vunpack.c.l.b16 %v2430_v50  ;;  %v3135_v28 = vrot.slane %v3134_v53, 4 }
 0x17a   : > { %v3145_v56 = vrot.slane %v3144_v14, 4  ;;  %v3149_v33 = vrot.slane %v3147_v37, 5  ;;  %v3765_v63 = vrot.slane %v5699_v7, 5  ;;  %v2433_v20 = vrot.slane %v4918_v4, 5  ;;  %v4557_v7 = vld [vmem:[%s5007_s27 + $0x30] sm:$0xe] }
 0x17b   : > { %v2276_v48 = vpop.f32.mrf.mxu0  ;;  %v2558_v47 = vpack.c.b16 %v2529_v8, %v2528_v35  ;;  %v4799_v50 = vrot.slane %v4783_v58, 9 }
 0x17c   : > { %v1622_v61 = vpop.f32.mrf.mxu3  ;;  %4701 = vmatmul.msk.bf16.gmra.mxu2 %vm658_vm4, %v4866_v11  ;;  %v987_v27 = vpop.f32.mrf.mxu1  ;;  %v4725_v11 = vld [vmem:[%s5007_s27 + $0x3c] sm:$0xf]  ;;  %v3150_v3 = vsel %vm5019_vm3, %v3145_v56, %v3149_v33  ;;  %v4867_v33 = vld [vmem:[%s5007_s27 + $0x30] sm:$0xff] }
 0x17d   : > { %v1677_v62 = vadd.f32 %v1622_v61, %v1390_v19  ;;  %v3896_v19 = vpack.c.b16 %v3866_v34, %v3865_v25  ;;  %v3140_v61 = vsel %vm5019_vm3, %v3135_v28, %v5720_v9  ;;  %v3152_v14 = vshrl.u32 %v4725_v11, 16  ;;  %v4919_v34 = vld [vmem:[%s5007_s27 + $0x38] sm:$0x1] }
 0x17e   : > { %v3767_v25 = vrot.slane %v3765_v63, 4  ;;  %v3768_v9 = vrot.slane %v5726_v41, 5  ;;  %v3469_v8 = vunpack.c.l.b16 %v3140_v61  ;;  %v2435_v28 = vrot.slane %v2433_v20, 4 }
 0x17f   : > { %v1338_v16 = vpop.f32.mrf.mxu2  ;;  %v5747_v22 = vadd.f32 %v2276_v48, %v1677_v62  ;;  %v3155_v48 = vshll.u32 %v4725_v11, 16  ;;  %v3161_v62 = vshll.u32 %v5745_v24, 16  ;;  %v3470_v58 = vunpack.c.l.b16 %v3150_v3 }
 0x180   : > { %v1391_v38 = vadd.f32 %v1338_v16, %v986_v60  ;;  %v988_v60 = vadd.f32 %v987_v27, %v5365_v55  ;;  %v2436_v16 = vrot.slane %v4919_v34, 5  ;;  %v3766_v11 = vsel %vm5193_vm7, %v4799_v50, %v3765_v63 }
 0x181   : > { %4766 = vmatmul.msk.bf16.gmra.mxu3 %vm658_vm4, %v3498_v17  ;;  %v3165_v17 = vshrl.u32 %v5745_v24, 16  ;;  %v3154_v55 = vrot.slane %v3152_v14, 4  ;;  %v3157_v27 = vrot.slane %v3155_v48, 5  ;;  %v5768_v41 = vrot.slane %v3161_v62, 5 }
 0x182   : > { %v2437_v3 = vsel %vm5193_vm7, %v2435_v28, %v2436_v16  ;;  %v3867_v50 = vunpack.c.l.b16 %v3766_v11  ;;  %v4784_v11 = vld [vmem:[%s5007_s27 + $0x3c] sm:$0xe] }
 0x183   : > { %v2279_v2 = vpop.f32.mrf.mxu0  ;;  %v3167_v4 = vrot.slane %v3165_v17, 4  ;;  %v3158_v62 = vor.u32 %v3157_v27, %v3154_v55 }
 0x184   : > { %v1625_v23 = vpop.f32.mrf.mxu3  ;;  %v990_v53 = vpop.f32.mrf.mxu1 }
 0x185   : > { %v1678_v37 = vadd.f32 %v1625_v23, %v1391_v38  ;;  %v4573_v38 = vrot.slane %v4557_v7, 9  ;;  %v5777_v7 = vld [vmem:[%s5007_s27 + $0x44] sm:$0x1]  ;;  %v3168_v17 = vor.u32 %v3167_v4, %v5768_v41  ;;  %v3159_v28 = vrot.slane %v3158_v62, 4 }
 0x186   : > { %4815 = vmatmul.msk.bf16.gmra.mxu0 %vm658_vm4, %v3896_v19 }
 0x187   : > { %v1340_v35 = vpop.f32.mrf.mxu2  ;;  %4589 = vmatmul.msk.bf16.gmra.mxu1 %vm658_vm4, %v2558_v47  ;;  %v5766_v19 = vadd.f32 %v2279_v2, %v1678_v37  ;;  %v3769_v47 = vsel %vm5193_vm7, %v3767_v25, %v3768_v9  ;;  %v2434_v61 = vsel %vm5193_vm7, %v4573_v38, %v2433_v20  ;;  %v3499_v2 = vpack.c.b16 %v3470_v58, %v3469_v8  ;;  %v5785_v38 = vld [vmem:[%s5007_s27 + $0x4c] sm:$0xf] }
 0x188   : > { %v1392_v56 = vadd.f32 %v1340_v35, %v988_v60  ;;  %v3868_v48 = vunpack.c.l.b16 %v3769_v47  ;;  %v991_v20 = vadd.f32 %v990_v53, %v5388_v26  ;;  %v2530_v60 = vunpack.c.l.b16 %v2434_v61  ;;  %v4728_v35 = vld [vmem:[%s5007_s27 + $0x48] sm:$0xf] }
 0x189   : > { %v2531_v25 = vunpack.c.l.b16 %v2437_v3  ;;  %v3171_v9 = vshll.u32 %v5777_v7, 16  ;;  %v3772_v26 = vrot.slane %v5745_v24, 5  ;;  %v3176_v27 = vshrl.u32 %v4728_v35, 16 }
 0x18a   : > { %v3897_v8 = vpack.c.b16 %v3868_v48, %v3867_v50  ;;  %v3179_v4 = vshll.u32 %v4728_v35, 16  ;;  %v3185_v47 = vshll.u32 %v5785_v38, 16  ;;  %v3189_v61 = vshrl.u32 %v5785_v38, 16  ;;  %v4921_v48 = vld [vmem:[%s5007_s27 + $0x44] sm:$0x1] }
 0x18b   : > { %v2281_v23 = vpop.f32.mrf.mxu0  ;;  %v3173_v58 = vrot.slane %v3171_v9, 5  ;;  %v2443_v62 = vrot.slane %v4921_v48, 5  ;;  %v3775_v24 = vrot.slane %v5777_v7, 5  ;;  %v3774_v9 = vrot.slane %v3772_v26, 4  ;;  %v5812_v48 = vld [vmem:[%s5007_s27 + $0x50] sm:$0x1] }
 0x18c   : > { %v1627_v63 = vpop.f32.mrf.mxu3  ;;  %4702 = vmatmul.msk.bf16.gmra.mxu2 %vm658_vm4, %v4867_v33  ;;  %v992_v14 = vpop.f32.mrf.mxu1  ;;  %v2559_v33 = vpack.c.b16 %v2531_v25, %v2530_v60  ;;  %v3164_v60 = vsel %vm5019_vm3, %v3159_v28, %v5768_v41  ;;  %v3181_v35 = vrot.slane %v3179_v4, 5  ;;  %v5806_v7 = vrot.slane %v3185_v47, 5 }
 0x18d   : > { %v1679_v37 = vadd.f32 %v1627_v63, %v1392_v56  ;;  %v3169_v56 = vrot.slane %v3168_v17, 4  ;;  %v3471_v41 = vunpack.c.l.b16 %v3164_v60 }
 0x18f   : > { %v1343_v34 = vpop.f32.mrf.mxu2  ;;  %v5790_v53 = vadd.f32 %v2281_v23, %v1679_v37  ;;  %v4558_v23 = vld [vmem:[%s5007_s27 + $0x3c] sm:$0xe]  ;;  %v993_v37 = vadd.f32 %v992_v14, %v5406_v43  ;;  %v3174_v25 = vsel %vm5019_vm3, %v3169_v56, %v3173_v58 }
 0x190   : > { %v1393_v16 = vadd.f32 %v1343_v34, %v991_v20  ;;  %v4800_v20 = vrot.slane %v4784_v11, 9  ;;  %v3191_v11 = vrot.slane %v3189_v61, 4  ;;  %v4574_v43 = vrot.slane %v4558_v23, 9 }
 0x191   : > { %4767 = vmatmul.msk.bf16.gmra.mxu3 %vm658_vm4, %v3499_v2  ;;  %v4920_v2 = vld [vmem:[%s5007_s27 + $0x40] sm:$0xf]  ;;  %v3472_v28 = vunpack.c.l.b16 %v3174_v25 }
 0x192   : > { %v2440_v50 = vrot.slane %v4920_v2, 5  ;;  %v3773_v58 = vsel %vm5193_vm7, %v4800_v20, %v3772_v26  ;;  %v3195_v26 = vshll.u32 %v5812_v48, 16 }
 0x193   : > { %v2284_v55 = vpop.f32.mrf.mxu0  ;;  %v3500_v23 = vpack.c.b16 %v3472_v28, %v3471_v41  ;;  %v4922_v28 = vld [vmem:[%s5007_s27 + $0x4c] sm:$0xf] }
 0x194   : > { %v1630_v3 = vpop.f32.mrf.mxu3  ;;  %v995_v63 = vpop.f32.mrf.mxu1  ;;  %v2442_v14 = vrot.slane %v2440_v50, 4 }
 0x195   : > { %v1680_v17 = vadd.f32 %v1630_v3, %v1393_v16  ;;  %v3178_v16 = vrot.slane %v3176_v27, 4  ;;  %v4868_v3 = vld [vmem:[%s5007_s27 + $0x3c] sm:$0xff] }
 0x196   : > { %4816 = vmatmul.msk.bf16.gmra.mxu0 %vm658_vm4, %v3897_v8  ;;  %v2444_v61 = vsel %vm5193_vm7, %v2442_v14, %v2443_v62  ;;  %v5831_v14 = vld [vmem:[%s5007_s27 + $0x58] sm:$0xf] }
 0x197   : > { %v1345_v34 = vpop.f32.mrf.mxu2  ;;  %4590 = vmatmul.msk.bf16.gmra.mxu1 %vm658_vm4, %v2559_v33  ;;  %v5809_v2 = vadd.f32 %v2284_v55, %v1680_v17  ;;  %v3776_v33 = vsel %vm5193_vm7, %v3774_v9, %v3775_v24  ;;  %v3182_v27 = vor.u32 %v3181_v35, %v3178_v16  ;;  %v2441_v55 = vsel %vm5193_vm7, %v4574_v43, %v2440_v50 }
 0x198   : > { %v1394_v8 = vadd.f32 %v1345_v34, %v993_v37  ;;  %v3192_v17 = vor.u32 %v3191_v11, %v5806_v7  ;;  %v996_v24 = vadd.f32 %v995_v63, %v5427_v40  ;;  %v3869_v37 = vunpack.c.l.b16 %v3773_v58  ;;  %v4785_v11 = vld [vmem:[%s5007_s27 + $0x48] sm:$0xe] }
 0x199   : > { %v3870_v60 = vunpack.c.l.b16 %v3776_v33  ;;  %v2532_v9 = vunpack.c.l.b16 %v2441_v55  ;;  %v2533_v50 = vunpack.c.l.b16 %v2444_v61  ;;  %v3183_v16 = vrot.slane %v3182_v27, 4 }
 0x19a   : > { %v3193_v62 = vrot.slane %v3192_v17, 4  ;;  %v3197_v35 = vrot.slane %v3195_v26, 5  ;;  %v3779_v43 = vrot.slane %v5785_v38, 5  ;;  %v2447_v58 = vrot.slane %v4922_v28, 5  ;;  %v4559_v38 = vld [vmem:[%s5007_s27 + $0x48] sm:$0xe] }
 0x19b   : > { %v2286_v56 = vpop.f32.mrf.mxu0  ;;  %v2560_v41 = vpack.c.b16 %v2533_v50, %v2532_v9  ;;  %v4801_v61 = vrot.slane %v4785_v11, 9 }
 0x19c   : > { %v1632_v4 = vpop.f32.mrf.mxu3  ;;  %4703 = vmatmul.msk.bf16.gmra.mxu2 %vm658_vm4, %v4868_v3  ;;  %v997_v47 = vpop.f32.mrf.mxu1  ;;  %v4731_v3 = vld [vmem:[%s5007_s27 + $0x54] sm:$0xf]  ;;  %v3198_v55 = vsel %vm5019_vm3, %v3193_v62, %v3197_v35  ;;  %v4869_v35 = vld [vmem:[%s5007_s27 + $0x48] sm:$0xff] }
 0x19d   : > { %v1681_v20 = vadd.f32 %v1632_v4, %v1394_v8  ;;  %v3898_v8 = vpack.c.b16 %v3870_v60, %v3869_v37  ;;  %v3188_v4 = vsel %vm5019_vm3, %v3183_v16, %v5806_v7  ;;  %v3200_v17 = vshrl.u32 %v4731_v3, 16  ;;  %v4923_v60 = vld [vmem:[%s5007_s27 + $0x50] sm:$0x1] }
 0x19e   : > { %v3781_v37 = vrot.slane %v3779_v43, 4  ;;  %v3782_v7 = vrot.slane %v5812_v48, 5  ;;  %v3473_v50 = vunpack.c.l.b16 %v3188_v4  ;;  %v2449_v16 = vrot.slane %v2447_v58, 4 }
 0x19f   : > { %v1348_v25 = vpop.f32.mrf.mxu2  ;;  %v5833_v40 = vadd.f32 %v2286_v56, %v1681_v20  ;;  %v3203_v56 = vshll.u32 %v4731_v3, 16  ;;  %v3209_v20 = vshll.u32 %v5831_v14, 16  ;;  %v3474_v11 = vunpack.c.l.b16 %v3198_v55 }
 0x1a0   : > { %v1395_v34 = vadd.f32 %v1348_v25, %v996_v24  ;;  %v998_v24 = vadd.f32 %v997_v47, %v5442_v10  ;;  %v2450_v25 = vrot.slane %v4923_v60, 5  ;;  %v3780_v3 = vsel %vm5193_vm7, %v4801_v61, %v3779_v43 }
 0x1a1   : > { %4768 = vmatmul.msk.bf16.gmra.mxu3 %vm658_vm4, %v3500_v23  ;;  %v3213_v23 = vshrl.u32 %v5831_v14, 16  ;;  %v3202_v10 = vrot.slane %v3200_v17, 4  ;;  %v3205_v47 = vrot.slane %v3203_v56, 5  ;;  %v5854_v48 = vrot.slane %v3209_v20, 5 }
 0x1a2   : > { %v2451_v55 = vsel %vm5193_vm7, %v2449_v16, %v2450_v25  ;;  %v3871_v61 = vunpack.c.l.b16 %v3780_v3  ;;  %v4786_v3 = vld [vmem:[%s5007_s27 + $0x54] sm:$0xe] }
 0x1a3   : > { %v2289_v63 = vpop.f32.mrf.mxu0  ;;  %v3215_v28 = vrot.slane %v3213_v23, 4  ;;  %v3206_v20 = vor.u32 %v3205_v47, %v3202_v10 }
 0x1a4   : > { %v1635_v33 = vpop.f32.mrf.mxu3  ;;  %v1000_v27 = vpop.f32.mrf.mxu1 }
 0x1a5   : > { %v1682_v26 = vadd.f32 %v1635_v33, %v1395_v34  ;;  %v4575_v34 = vrot.slane %v4559_v38, 9  ;;  %v5863_v38 = vld [vmem:[%s5007_s27 + $0x5c] sm:$0x1]  ;;  %v3216_v23 = vor.u32 %v3215_v28, %v5854_v48  ;;  %v3207_v16 = vrot.slane %v3206_v20, 4 }
 0x1a6   : > { %4817 = vmatmul.msk.bf16.gmra.mxu0 %vm658_vm4, %v3898_v8 }
 0x1a7   : > { %v1350_v9 = vpop.f32.mrf.mxu2  ;;  %4591 = vmatmul.msk.bf16.gmra.mxu1 %vm658_vm4, %v2560_v41  ;;  %v5852_v8 = vadd.f32 %v2289_v63, %v1682_v26  ;;  %v3783_v41 = vsel %vm5193_vm7, %v3781_v37, %v3782_v7  ;;  %v2448_v4 = vsel %vm5193_vm7, %v4575_v34, %v2447_v58  ;;  %v3501_v63 = vpack.c.b16 %v3474_v11, %v3473_v50  ;;  %v5871_v34 = vld [vmem:[%s5007_s27 + $0x64] sm:$0xf] }
 0x1a8   : > { %v1396_v62 = vadd.f32 %v1350_v9, %v998_v24  ;;  %v3872_v56 = vunpack.c.l.b16 %v3783_v41  ;;  %v1001_v58 = vadd.f32 %v1000_v27, %v5318_v49  ;;  %v2534_v24 = vunpack.c.l.b16 %v2448_v4  ;;  %v4734_v9 = vld [vmem:[%s5007_s27 + $0x60] sm:$0xf] }
 0x1a9   : > { %v2535_v37 = vunpack.c.l.b16 %v2451_v55  ;;  %v3219_v7 = vshll.u32 %v5863_v38, 16  ;;  %v3786_v49 = vrot.slane %v5831_v14, 5  ;;  %v3224_v47 = vshrl.u32 %v4734_v9, 16 }
 0x1aa   : > { %v3899_v50 = vpack.c.b16 %v3872_v56, %v3871_v61  ;;  %v3227_v28 = vshll.u32 %v4734_v9, 16  ;;  %v3233_v41 = vshll.u32 %v5871_v34, 16  ;;  %v3237_v4 = vshrl.u32 %v5871_v34, 16  ;;  %v4925_v56 = vld [vmem:[%s5007_s27 + $0x5c] sm:$0x1] }
 0x1ab   : > { %v2291_v33 = vpop.f32.mrf.mxu0  ;;  %v3221_v11 = vrot.slane %v3219_v7, 5  ;;  %v2457_v20 = vrot.slane %v4925_v56, 5  ;;  %v3789_v14 = vrot.slane %v5863_v38, 5  ;;  %v3788_v7 = vrot.slane %v3786_v49, 4 }
 0x1ac   : > { %v1637_v43 = vpop.f32.mrf.mxu3  ;;  %4704 = vmatmul.msk.bf16.gmra.mxu2 %vm658_vm4, %v4869_v35  ;;  %v1002_v17 = vpop.f32.mrf.mxu1  ;;  %v2561_v35 = vpack.c.b16 %v2535_v37, %v2534_v24  ;;  %v3212_v24 = vsel %vm5019_vm3, %v3207_v16, %v5854_v48  ;;  %v3229_v9 = vrot.slane %v3227_v28, 5  ;;  %v3235_v38 = vrot.slane %v3233_v41, 5  ;;  %v5896_v16 = vld [vmem:[%s5007_s27 + $0x68] sm:$0x1] }
 0x1ad   : > { %v1683_v26 = vadd.f32 %v1637_v43, %v1396_v62  ;;  %v3217_v62 = vrot.slane %v3216_v23, 4  ;;  %v3475_v56 = vunpack.c.l.b16 %v3212_v24 }
 0x1af   : > { %v1353_v60 = vpop.f32.mrf.mxu2  ;;  %v5876_v27 = vadd.f32 %v2291_v33, %v1683_v26  ;;  %v4560_v33 = vld [vmem:[%s5007_s27 + $0x54] sm:$0xe]  ;;  %v1003_v26 = vadd.f32 %v1002_v17, %v5337_v0  ;;  %v3222_v37 = vsel %vm5019_vm3, %v3217_v62, %v3221_v11 }
 0x1b0   : > { %v1397_v25 = vadd.f32 %v1353_v60, %v1001_v58  ;;  %v4802_v58 = vrot.slane %v4786_v3, 9  ;;  %v3239_v3 = vrot.slane %v3237_v4, 4  ;;  %v3476_v48 = vunpack.c.l.b16 %v3222_v37 }
 0x1b1   : > { %4769 = vmatmul.msk.bf16.gmra.mxu3 %vm658_vm4, %v3501_v63  ;;  %6384 = vst [vmem:[#allocation4_spill] sm:$0xff] %v5876_v27  ;;  %v4924_v63 = vld [vmem:[%s5007_s27 + $0x58] sm:$0xf] }
 0x1b2   : > { %v2454_v61 = vrot.slane %v4924_v63, 5  ;;  %v4576_v63 = vrot.slane %v4560_v33, 9  ;;  %v3787_v62 = vsel %vm5193_vm7, %v4802_v58, %v3786_v49  ;;  %v3240_v4 = vor.u32 %v3239_v3, %v3235_v38 }
 0x1b3   : > { %v2294_v10 = vpop.f32.mrf.mxu0  ;;  %v3502_v58 = vpack.c.b16 %v3476_v48, %v3475_v56  ;;  %v3873_v33 = vunpack.c.l.b16 %v3787_v62 }
 0x1b4   : > { %v1640_v55 = vpop.f32.mrf.mxu3  ;;  %v1005_v43 = vpop.f32.mrf.mxu1  ;;  %v2456_v0 = vrot.slane %v2454_v61, 4 }
 0x1b5   : > { %v1684_v23 = vadd.f32 %v1640_v55, %v1397_v25  ;;  %v3226_v25 = vrot.slane %v3224_v47, 4 }
 0x1b6   : > { %4818 = vmatmul.msk.bf16.gmra.mxu0 %vm658_vm4, %v3899_v50  ;;  %v4870_v50 = vld [vmem:[%s5007_s27 + $0x54] sm:$0xff]  ;;  %v2458_v41 = vsel %vm5193_vm7, %v2456_v0, %v2457_v20  ;;  %v3793_v0 = vrot.slane %v5871_v34, 5  ;;  %v4927_v34 = vld [vmem:[%s5007_s27 + $0x68] sm:$0x1] }
 0x1b7   : > { %v1355_v60 = vpop.f32.mrf.mxu2  ;;  %4592 = vmatmul.msk.bf16.gmra.mxu1 %vm658_vm4, %v2561_v35  ;;  %v5893_v17 = vadd.f32 %v2294_v10, %v1684_v23  ;;  %v3790_v35 = vsel %vm5193_vm7, %v3788_v7, %v3789_v14  ;;  %v3230_v11 = vor.u32 %v3229_v9, %v3226_v25  ;;  %v2455_v10 = vsel %vm5193_vm7, %v4576_v63, %v2454_v61  ;;  %v4737_v9 = vld [vmem:[%s5007_s27 + $0x6c] sm:$0xf]  ;;  %v4787_v63 = vld [vmem:[%s5007_s27 + $0x60] sm:$0xe] }
 0x1b8   : > { %v1398_v55 = vadd.f32 %v1355_v60, %v1003_v26  ;;  %v3243_v23 = vshll.u32 %v5896_v16, 16  ;;  %v1006_v14 = vadd.f32 %v1005_v43, %v5358_v39  ;;  %v3874_v26 = vunpack.c.l.b16 %v3790_v35 }
 0x1b9   : > { %v2536_v37 = vunpack.c.l.b16 %v2455_v10  ;;  %v2537_v7 = vunpack.c.l.b16 %v2458_v41  ;;  %v3231_v61 = vrot.slane %v3230_v11, 4  ;;  %v3241_v25 = vrot.slane %v3240_v4, 4  ;;  %v4926_v11 = vld [vmem:[%s5007_s27 + $0x64] sm:$0xf] }
 0x1ba   : > { %v3245_v20 = vrot.slane %v3243_v23, 5  ;;  %v3900_v3 = vpack.c.b16 %v3874_v26, %v3873_v33  ;;  %v3248_v10 = vshrl.u32 %v4737_v9, 16  ;;  %v3251_v4 = vshll.u32 %v4737_v9, 16 }
 0x1bb   : > { %v2296_v27 = vpop.f32.mrf.mxu0  ;;  %v2562_v43 = vpack.c.b16 %v2537_v7, %v2536_v37  ;;  %v3236_v62 = vsel %vm5019_vm3, %v3231_v61, %v3235_v38  ;;  %v3795_v37 = vrot.slane %v3793_v0, 4  ;;  %v3796_v7 = vrot.slane %v5896_v16, 5  ;;  %v4871_v61 = vld [vmem:[%s5007_s27 + $0x60] sm:$0xff] }
 0x1bc   : > { %v1642_v47 = vpop.f32.mrf.mxu3  ;;  %4705 = vmatmul.msk.bf16.gmra.mxu2 %vm658_vm4, %v4870_v50  ;;  %v1007_v28 = vpop.f32.mrf.mxu1  ;;  %v3246_v35 = vsel %vm5019_vm3, %v3241_v25, %v3245_v20  ;;  %v3477_v26 = vunpack.c.l.b16 %v3236_v62 }
 0x1bd   : > { %v1685_v49 = vadd.f32 %v1642_v47, %v1398_v55  ;;  %v5912_v55 = vld [vmem:[%s5007_s27 + $0x70] sm:$0xf]  ;;  %v2461_v47 = vrot.slane %v4926_v11, 5  ;;  %v1008_v38 = vadd.f32 %v1007_v28, %v5377_v6  ;;  %v5937_v28 = vld [vmem:[%s5007_s27 + $0x74] sm:$0x1]  ;;  %v3797_v16 = vsel %vm5193_vm7, %v3795_v37, %v3796_v7 }
 0x1be   : > { %v3257_v23 = vshll.u32 %v5912_v55, 16 }
 0x1bf   : > { %v1358_v24 = vpop.f32.mrf.mxu2  ;;  %v5914_v50 = vadd.f32 %v2296_v27, %v1685_v49  ;;  %v4561_v27 = vld [vmem:[%s5007_s27 + $0x60] sm:$0xe]  ;;  %v3261_v49 = vshrl.u32 %v5912_v55, 16  ;;  %v2463_v20 = vrot.slane %v2461_v47, 4 }
 0x1c0   : > { %v1399_v60 = vadd.f32 %v1358_v24, %v1006_v14  ;;  %v4803_v14 = vrot.slane %v4787_v63, 9  ;;  %v3478_v24 = vunpack.c.l.b16 %v3246_v35  ;;  %v4577_v25 = vrot.slane %v4561_v27, 9 }
 0x1c1   : > { %4770 = vmatmul.msk.bf16.gmra.mxu3 %vm658_vm4, %v3502_v58  ;;  %v2464_v58 = vrot.slane %v4927_v34, 5  ;;  %v5934_v11 = vrot.slane %v3257_v23, 5  ;;  %v3263_v6 = vrot.slane %v3261_v49, 4  ;;  %v3267_v23 = vshll.u32 %v5937_v28, 16 }
 0x1c3   : > { %v2299_v39 = vpop.f32.mrf.mxu0  ;;  %v3269_v7 = vrot.slane %v3267_v23, 5 }
 0x1c4   : > { %v1645_v56 = vpop.f32.mrf.mxu3  ;;  %v1010_v48 = vpop.f32.mrf.mxu1 }
 0x1c5   : > { %v1686_v41 = vadd.f32 %v1645_v56, %v1399_v60  ;;  %v3250_v56 = vrot.slane %v3248_v10, 4  ;;  %v2462_v10 = vsel %vm5193_vm7, %v4577_v25, %v2461_v47  ;;  %v1011_v49 = vadd.f32 %v1010_v48, %v5396_v45  ;;  %v4740_v47 = vld [vmem:[%s5007_s27 + $0x78] sm:$0xf] }
 0x1c6   : > { %4819 = vmatmul.msk.bf16.gmra.mxu0 %vm658_vm4, %v3900_v3  ;;  %v3253_v3 = vrot.slane %v3251_v4, 5  ;;  %v3800_v25 = vrot.slane %v5912_v55, 5 }
 0x1c7   : > { %v1360_v33 = vpop.f32.mrf.mxu2  ;;  %4593 = vmatmul.msk.bf16.gmra.mxu1 %vm658_vm4, %v2562_v43  ;;  %v5932_v9 = vadd.f32 %v2299_v39, %v1686_v41  ;;  %v3794_v43 = vsel %vm5193_vm7, %v4803_v14, %v3793_v0  ;;  %v3503_v39 = vpack.c.b16 %v3478_v24, %v3477_v26  ;;  %v2465_v41 = vsel %vm5193_vm7, %v2463_v20, %v2464_v58 }
 0x1c8   : > { %v1400_v60 = vadd.f32 %v1360_v33, %v1008_v38  ;;  %v3254_v4 = vor.u32 %v3253_v3, %v3250_v56  ;;  %v3264_v0 = vor.u32 %v3263_v6, %v5934_v11  ;;  %v3875_v34 = vunpack.c.l.b16 %v3794_v43  ;;  %v5958_v56 = vld [vmem:[%s5007_s27 + $0x7c] sm:$0xf] }
 0x1c9   : > { %v3876_v38 = vunpack.c.l.b16 %v3797_v16  ;;  %v2538_v33 = vunpack.c.l.b16 %v2462_v10  ;;  %v2539_v26 = vunpack.c.l.b16 %v2465_v41  ;;  %v3272_v3 = vshrl.u32 %v4740_v47, 16  ;;  %v4928_v10 = vld [vmem:[%s5007_s27 + $0x70] sm:$0xf] }
 0x1ca   : > { %v3255_v58 = vrot.slane %v3254_v4, 4  ;;  %v3265_v37 = vrot.slane %v3264_v0, 4  ;;  %v3275_v6 = vshll.u32 %v4740_v47, 16  ;;  %v2468_v41 = vrot.slane %v4928_v10, 5 }
 0x1cb   : > { %v2301_v63 = vpop.f32.mrf.mxu0  ;;  %v2563_v20 = vpack.c.b16 %v2539_v26, %v2538_v33  ;;  %v3802_v23 = vrot.slane %v3800_v25, 4 }
 0x1cc   : > { %v1647_v62 = vpop.f32.mrf.mxu3  ;;  %4706 = vmatmul.msk.bf16.gmra.mxu2 %vm658_vm4, %v4871_v61  ;;  %v1012_v35 = vpop.f32.mrf.mxu1  ;;  %v3901_v61 = vpack.c.b16 %v3876_v38, %v3875_v34  ;;  %v3260_v55 = vsel %vm5019_vm3, %v3255_v58, %v5934_v11  ;;  %v3285_v34 = vshrl.u32 %v5958_v56, 16  ;;  %v3274_v11 = vrot.slane %v3272_v3, 4  ;;  %v5982_v3 = vld [vmem:[%s5007_s27 + $0x80] sm:$0x1] }
 0x1cd   : > { %v1687_v27 = vadd.f32 %v1647_v62, %v1400_v60  ;;  %v4788_v60 = vld [vmem:[%s5007_s27 + $0x6c] sm:$0xe]  ;;  %v1013_v0 = vadd.f32 %v1012_v35, %v5419_v12  ;;  %v3277_v33 = vrot.slane %v3275_v6, 5  ;;  %v2470_v47 = vrot.slane %v2468_v41, 4 }
 0x1ce   : > { %v4804_v62 = vrot.slane %v4788_v60, 9  ;;  %v3479_v12 = vunpack.c.l.b16 %v3260_v55 }
 0x1cf   : > { %v1363_v14 = vpop.f32.mrf.mxu2  ;;  %v5955_v45 = vadd.f32 %v2301_v63, %v1687_v27  ;;  %v3270_v63 = vsel %vm5019_vm3, %v3265_v37, %v3269_v7  ;;  %v3803_v27 = vrot.slane %v5937_v28, 5  ;;  %v4929_v28 = vld [vmem:[%s5007_s27 + $0x74] sm:$0x1]  ;;  %v3278_v6 = vor.u32 %v3277_v33, %v3274_v11  ;;  %v4789_v33 = vld [vmem:[%s5007_s27 + $0x78] sm:$0xe] }
 0x1d0   : > { %v1401_v24 = vadd.f32 %v1363_v14, %v1011_v49  ;;  %v3281_v49 = vshll.u32 %v5958_v56, 16  ;;  %v2471_v58 = vrot.slane %v4929_v28, 5  ;;  %v3480_v35 = vunpack.c.l.b16 %v3270_v63  ;;  %v5996_v28 = vld [vmem:[%s5007_s27 + $0x88] sm:$0xf] }
 0x1d1   : > { %4771 = vmatmul.msk.bf16.gmra.mxu3 %vm658_vm4, %v3503_v39  ;;  %v4562_v39 = vld [vmem:[%s5007_s27 + $0x6c] sm:$0xe]  ;;  %v3801_v7 = vsel %vm5193_vm7, %v4804_v62, %v3800_v25  ;;  %v3804_v60 = vsel %vm5193_vm7, %v3802_v23, %v3803_v27  ;;  %v3291_v23 = vshll.u32 %v5982_v3, 16  ;;  %v3279_v11 = vrot.slane %v3278_v6, 4 }
 0x1d2   : > { %v4578_v14 = vrot.slane %v4562_v39, 9  ;;  %v2472_v25 = vsel %vm5193_vm7, %v2470_v47, %v2471_v58  ;;  %v3877_v55 = vunpack.c.l.b16 %v3801_v7  ;;  %v3878_v63 = vunpack.c.l.b16 %v3804_v60 }
 0x1d3   : > { %v2304_v48 = vpop.f32.mrf.mxu0 }
 0x1d4   : > { %v1650_v43 = vpop.f32.mrf.mxu3  ;;  %v1015_v16 = vpop.f32.mrf.mxu1  ;;  %v2469_v10 = vsel %vm5193_vm7, %v4578_v14, %v2468_v41  ;;  %v4743_v41 = vld [vmem:[%s5007_s27 + $0x84] sm:$0xf]  ;;  %v3902_v14 = vpack.c.b16 %v3878_v63, %v3877_v55 }
 0x1d5   : > { %v1688_v4 = vadd.f32 %v1650_v43, %v1401_v24  ;;  %v4872_v24 = vld [vmem:[%s5007_s27 + $0x6c] sm:$0xff]  ;;  %v1016_v27 = vadd.f32 %v1015_v16, %v5438_v59  ;;  %v3293_v59 = vrot.slane %v3291_v23, 5  ;;  %v4805_v16 = vrot.slane %v4789_v33, 9  ;;  %v4873_v33 = vld [vmem:[%s5007_s27 + $0x78] sm:$0xff] }
 0x1d6   : > { %4820 = vmatmul.msk.bf16.gmra.mxu0 %vm658_vm4, %v3901_v61  ;;  %v3283_v61 = vrot.slane %v3281_v49, 5  ;;  %v3296_v60 = vshrl.u32 %v4743_v41, 16 }
 0x1d7   : > { %v1365_v38 = vpop.f32.mrf.mxu2  ;;  %4594 = vmatmul.msk.bf16.gmra.mxu1 %vm658_vm4, %v2563_v20  ;;  %v5975_v37 = vadd.f32 %v2304_v48, %v1688_v4  ;;  %v3287_v20 = vrot.slane %v3285_v34, 4  ;;  %v3504_v4 = vpack.c.b16 %v3480_v35, %v3479_v12  ;;  %v2540_v34 = vunpack.c.l.b16 %v2469_v10 }
 0x1d8   : > { %v1402_v26 = vadd.f32 %v1365_v38, %v1013_v0  ;;  %v2541_v38 = vunpack.c.l.b16 %v2472_v25  ;;  %v3284_v7 = vsel %vm5019_vm3, %v3279_v11, %v3283_v61  ;;  %v3810_v10 = vrot.slane %v5982_v3, 5  ;;  %v4563_v25 = vld [vmem:[%s5007_s27 + $0x78] sm:$0xe] }
 0x1d9   : > { %v3288_v0 = vor.u32 %v3287_v20, %v3283_v61  ;;  %v3299_v20 = vshll.u32 %v4743_v41, 16  ;;  %v4931_v41 = vld [vmem:[%s5007_s27 + $0x80] sm:$0x1] }
 0x1da   : > { %v2564_v35 = vpack.c.b16 %v2541_v38, %v2540_v34  ;;  %v3298_v34 = vrot.slane %v3296_v60, 4 }
 0x1db   : > { %v2306_v43 = vpop.f32.mrf.mxu0  ;;  %v3289_v47 = vrot.slane %v3288_v0, 4  ;;  %v3481_v0 = vunpack.c.l.b16 %v3284_v7  ;;  %v3301_v38 = vrot.slane %v3299_v20, 5  ;;  %v4745_v7 = vld [vmem:[%s5007_s27 + $0x8c] sm:$0x1] }
 0x1dc   : > { %v1652_v39 = vpop.f32.mrf.mxu3  ;;  %4707 = vmatmul.msk.bf16.gmra.mxu2 %vm658_vm4, %v4872_v24  ;;  %v1017_v48 = vpop.f32.mrf.mxu1 }
 0x1dd   : > { %v1689_v62 = vadd.f32 %v1652_v39, %v1402_v26  ;;  %v3807_v26 = vrot.slane %v5958_v56, 5  ;;  %v4930_v56 = vld [vmem:[%s5007_s27 + $0x7c] sm:$0xf]  ;;  %v1018_v61 = vadd.f32 %v1017_v48, %v5455_v32 }
 0x1df   : > { %v1368_v49 = vpop.f32.mrf.mxu2  ;;  %v5998_v58 = vadd.f32 %v2306_v43, %v1689_v62  ;;  %v3809_v63 = vrot.slane %v3807_v26, 4  ;;  %v3305_v43 = vshll.u32 %v5996_v28, 16  ;;  %v3309_v62 = vshrl.u32 %v5996_v28, 16 }
 0x1e0   : > { %v1403_v24 = vadd.f32 %v1368_v49, %v1016_v27  ;;  %v3294_v27 = vsel %vm5019_vm3, %v3289_v47, %v3293_v59  ;;  %v3808_v23 = vsel %vm5193_vm7, %v4805_v16, %v3807_v26  ;;  %v4579_v49 = vrot.slane %v4563_v25, 9 }
 0x1e1   : > { %4772 = vmatmul.msk.bf16.gmra.mxu3 %vm658_vm4, %v3504_v4  ;;  %v2475_v4 = vrot.slane %v4930_v56, 5  ;;  %v3482_v48 = vunpack.c.l.b16 %v3294_v27  ;;  %v3811_v47 = vsel %vm5193_vm7, %v3809_v63, %v3810_v10  ;;  %v6020_v59 = vrot.slane %v3305_v43, 5 }
 0x1e2   : > { %v3879_v16 = vunpack.c.l.b16 %v3808_v23  ;;  %v3880_v20 = vunpack.c.l.b16 %v3811_v47  ;;  %v3302_v25 = vor.u32 %v3301_v38, %v3298_v34  ;;  %v3315_v43 = vshll.u32 %v4745_v7, 16  ;;  %v6034_v47 = vld [vmem:[%s5007_s27 + $0x94] sm:$0xf] }
 0x1e3   : > { %v2309_v12 = vpop.f32.mrf.mxu0 }
 0x1e4   : > { %v1655_v6 = vpop.f32.mrf.mxu3  ;;  %v2632_v39 = vpop.f32.mrf.mxu1  ;;  %v3317_v38 = vrot.slane %v3315_v43, 5 }
 0x1e5   : > { %v1690_v55 = vadd.f32 %v1655_v6, %v1403_v24  ;;  %v2477_v24 = vrot.slane %v2475_v4, 4  ;;  %v2712_v27 = vadd.f32 %v2632_v39, %v5472_v46 }
 0x1e6   : > { %4821 = vmatmul.msk.bf16.gmra.mxu0 %vm658_vm4, %v3902_v14  ;;  %v2478_v14 = vrot.slane %v4931_v41, 5  ;;  %v4746_v41 = vld [vmem:[%s5007_s27 + $0x90] sm:$0xf] }
 0x1e7   : > { %v1370_v3 = vpop.f32.mrf.mxu2  ;;  %4595 = vmatmul.msk.bf16.gmra.mxu1 %vm658_vm4, %v2564_v35  ;;  %v6016_v32 = vadd.f32 %v2309_v12, %v1690_v55  ;;  %v3311_v35 = vrot.slane %v3309_v62, 4  ;;  %v2476_v12 = vsel %vm5193_vm7, %v4579_v49, %v2475_v4  ;;  %v3505_v55 = vpack.c.b16 %v3482_v48, %v3481_v0  ;;  %v4790_v62 = vld [vmem:[%s5007_s27 + $0x84] sm:$0xe] }
 0x1e8   : > { %v1404_v11 = vadd.f32 %v1370_v3, %v1018_v61  ;;  %v2479_v10 = vsel %vm5193_vm7, %v2477_v24, %v2478_v14  ;;  %v3814_v61 = vrot.slane %v5996_v28, 5  ;;  %v2542_v23 = vunpack.c.l.b16 %v2476_v12  ;;  %v4932_v12 = vld [vmem:[%s5007_s27 + $0x88] sm:$0xf] }
 0x1e9   : > { %v3312_v63 = vor.u32 %v3311_v35, %v6020_v59  ;;  %v3903_v4 = vpack.c.b16 %v3880_v20, %v3879_v16  ;;  %v3303_v49 = vrot.slane %v3302_v25, 4  ;;  %v3817_v28 = vrot.slane %v4745_v7, 5  ;;  %v6045_v7 = vld [vmem:[%s6376_s2] ss:$0 sm:$0xff] }
 0x1ea   : > { %v3816_v24 = vrot.slane %v3814_v61, 4  ;;  %v3320_v14 = vshrl.u32 %v4746_v41, 16  ;;  %v3323_v35 = vshll.u32 %v4746_v41, 16  ;;  %v3329_v16 = vshll.u32 %v6034_v47, 16 }
 0x1eb   : > { %v2311_v26 = vpop.f32.mrf.mxu0  ;;  %v3313_v34 = vrot.slane %v3312_v63, 4  ;;  %v3333_v25 = vshrl.u32 %v6034_v47, 16 }
 0x1ec   : > { %v1657_v60 = vpop.f32.mrf.mxu3  ;;  %4708 = vmatmul.msk.bf16.gmra.mxu2 %vm658_vm4, %v4873_v33  ;;  %v2634_v6 = vpop.f32.mrf.mxu1  ;;  %v2543_v33 = vunpack.c.l.b16 %v2479_v10  ;;  %v2482_v10 = vrot.slane %v4932_v12, 5  ;;  %v6061_v41 = vrot.slane %v3329_v16, 5 }
 0x1ed   : > { %v1691_v56 = vadd.f32 %v1657_v60, %v1404_v11  ;;  %v4806_v11 = vrot.slane %v4790_v62, 9  ;;  %v3318_v63 = vsel %vm5019_vm3, %v3313_v34, %v3317_v38  ;;  %v3818_v62 = vsel %vm5193_vm7, %v3816_v24, %v3817_v28  ;;  %v4933_v34 = vld [vmem:[%s5007_s27 + $0x8c] sm:$0x1] }
 0x1ee   : > { %v2565_v48 = vpack.c.b16 %v2543_v33, %v2542_v23  ;;  %v2713_v23 = vadd.f32 %v2634_v6, %v5485_v42  ;;  %v3325_v33 = vrot.slane %v3323_v35, 5  ;;  %v3335_v38 = vrot.slane %v3333_v25, 4  ;;  %v6072_v42 = vld [vmem:[%s5007_s27 + $0x98] sm:$0x1] }
 0x1ef   : > { %v2919_v3 = vpop.f32.mrf.mxu2  ;;  %v6037_v46 = vadd.f32 %v2311_v26, %v1691_v56  ;;  %v3308_v26 = vsel %vm5019_vm3, %v3303_v49, %v6020_v59  ;;  %v4564_v56 = vld [vmem:[%s5007_s27 + $0x84] sm:$0xe]  ;;  %v3815_v43 = vsel %vm5193_vm7, %v4806_v11, %v3814_v61  ;;  %v2485_v61 = vrot.slane %v4933_v34, 5  ;;  %v4749_v34 = vld [vmem:[%s5007_s27 + $0x9c] sm:$0xf] }
 0x1f0   : > { %v2999_v0 = vadd.f32 %v2919_v3, %v2712_v27  ;;  %v3322_v27 = vrot.slane %v3320_v14, 4  ;;  %v4580_v49 = vrot.slane %v4564_v56, 9  ;;  %v3483_v28 = vunpack.c.l.b16 %v3308_v26 }
 0x1f1   : > { %4773 = vmatmul.msk.bf16.gmra.mxu3 %vm658_vm4, %v3505_v55  ;;  %v3484_v14 = vunpack.c.l.b16 %v3318_v63  ;;  %v3882_v35 = vunpack.c.l.b16 %v3818_v62  ;;  %v3336_v26 = vor.u32 %v3335_v38, %v6061_v41 }
 0x1f2   : > { %v2483_v12 = vsel %vm5193_vm7, %v4580_v49, %v2482_v10 }
 0x1f3   : > { %v3971_v39 = vpop.f32.mrf.mxu0  ;;  %v3506_v63 = vpack.c.b16 %v3484_v14, %v3483_v28 }
 0x1f4   : > { %v3573_v60 = vpop.f32.mrf.mxu3  ;;  %v2637_v20 = vpop.f32.mrf.mxu1 }
 0x1f5   : > { %v3653_v55 = vadd.f32 %v3573_v60, %v2999_v0  ;;  %v2484_v0 = vrot.slane %v2482_v10, 4  ;;  %v6085_v10 = vld [vmem:[%s5007_s27 + $0xa0] sm:$0xf] }
 0x1f6   : > { %4822 = vmatmul.msk.bf16.gmra.mxu0 %vm658_vm4, %v3903_v4  ;;  %v4874_v4 = vld [vmem:[%s5007_s27 + $0x84] sm:$0xff]  ;;  %v3353_v28 = vshll.u32 %v6085_v10, 16  ;;  %v3357_v14 = vshrl.u32 %v6085_v10, 16 }
 0x1f7   : > { %v4051_v3 = vadd.f32 %v3971_v39, %v3653_v55  ;;  %v2921_v59 = vpop.f32.mrf.mxu2  ;;  %4596 = vmatmul.msk.bf16.gmra.mxu1 %vm658_vm4, %v2565_v48  ;;  %v3881_v48 = vunpack.c.l.b16 %v3815_v43  ;;  %v2486_v25 = vsel %vm5193_vm7, %v2484_v0, %v2485_v61  ;;  %v3326_v55 = vor.u32 %v3325_v33, %v3322_v27 }
 0x1f8   : > { %v3000_v24 = vadd.f32 %v2921_v59, %v2713_v23  ;;  %v3339_v43 = vshll.u32 %v6072_v42, 16  ;;  %v2544_v59 = vunpack.c.l.b16 %v2483_v12  ;;  %v3337_v27 = vrot.slane %v3336_v26, 4 }
 0x1f9   : > { %v4087_v11 = vadd.f32 %v6045_v7, %v4051_v3  ;;  %v2714_v3 = vadd.f32 %v2637_v20, %v5498_v15  ;;  %v3904_v49 = vpack.c.b16 %v3882_v35, %v3881_v48  ;;  %v3327_v0 = vrot.slane %v3326_v55, 4  ;;  %v4934_v55 = vld [vmem:[%s5007_s27 + $0x94] sm:$0xf] }
 0x1fa   : > { %v3341_v38 = vrot.slane %v3339_v43, 5  ;;  %v3821_v15 = vrot.slane %v6034_v47, 5  ;;  %v3344_v20 = vshrl.u32 %v4749_v34, 16  ;;  %v2489_v26 = vrot.slane %v4934_v55, 5 }
 0x1fb   : > { %v4119_v6 = vmax.f32 %v4087_v11, 0.0  ;;  %v3973_v39 = vpop.f32.mrf.mxu0  ;;  %v4791_v11 = vld [vmem:[%s5007_s27 + $0x90] sm:$0xe] }
 0x1fc   : > { %v3575_v16 = vpop.f32.mrf.mxu3  ;;  %4709 = vmatmul.msk.bf16.gmra.mxu2 %vm658_vm4, %v4874_v4  ;;  %v2639_v60 = vpop.f32.mrf.mxu1  ;;  %v2545_v4 = vunpack.c.l.b16 %v2486_v25  ;;  %v4807_v12 = vrot.slane %v4791_v11, 9  ;;  %v3824_v25 = vrot.slane %v6072_v42, 5  ;;  %v3823_v43 = vrot.slane %v3821_v15, 4  ;;  %v4935_v11 = vld [vmem:[%s5007_s27 + $0x98] sm:$0x1] }
 0x1fd   : > { %4151 = vst [vmem:[%s6069_s15] sm:$0xff] %v4119_v6  ;;  %v3654_v56 = vadd.f32 %v3575_v16, %v3000_v24  ;;  %v3347_v24 = vshll.u32 %v4749_v34, 16  ;;  %v2715_v34 = vadd.f32 %v2639_v60, %v5511_v13 }
 0x1fe   : > { %v2566_v48 = vpack.c.b16 %v2545_v4, %v2544_v59  ;;  %v3359_v59 = vrot.slane %v3357_v14, 4  ;;  %v3825_v13 = vsel %vm5193_vm7, %v3823_v43, %v3824_v25 }
 0x1ff   : > { %v4052_v62 = vadd.f32 %v3973_v39, %v3654_v56  ;;  %v2924_v23 = vpop.f32.mrf.mxu2  ;;  %v3332_v56 = vsel %vm5019_vm3, %v3327_v0, %v6061_v41  ;;  %v3349_v42 = vrot.slane %v3347_v24, 5  ;;  %v6108_v41 = vld [vmem:[%s5007_s27 + $0xa4] sm:$0x1]  ;;  %v4875_v0 = vld [vmem:[%s5007_s27 + $0x90] sm:$0xff]  ;;  %v3884_v43 = vunpack.c.l.b16 %v3825_v13 }
 0x200   : > { %v3001_v61 = vadd.f32 %v2924_v23, %v2714_v3  ;;  %v3346_v3 = vrot.slane %v3344_v20, 4  ;;  %v6103_v23 = vrot.slane %v3353_v28, 5  ;;  %v3822_v28 = vsel %vm5193_vm7, %v4807_v12, %v3821_v15 }
 0x201   : > { %v4088_v33 = vadd.f32 %v6045_v7, %v4052_v62  ;;  %4774 = vmatmul.msk.bf16.gmra.mxu3 %vm658_vm4, %v3506_v63  ;;  %v3342_v63 = vsel %vm5019_vm3, %v3337_v27, %v3341_v38  ;;  %v4565_v62 = vld [vmem:[%s5007_s27 + $0x90] sm:$0xe]  ;;  %v3485_v27 = vunpack.c.l.b16 %v3332_v56  ;;  %v2491_v38 = vrot.slane %v2489_v26, 4 }
 0x202   : > { %v3486_v24 = vunpack.c.l.b16 %v3342_v63  ;;  %v3350_v60 = vor.u32 %v3349_v42, %v3346_v3  ;;  %v3360_v14 = vor.u32 %v3359_v59, %v6103_v23  ;;  %v3883_v63 = vunpack.c.l.b16 %v3822_v28 }
 0x203   : > { %v4120_v6 = vmax.f32 %v4088_v33, 0.0  ;;  %v3976_v39 = vpop.f32.mrf.mxu0  ;;  %v3828_v59 = vrot.slane %v6085_v10, 5 }
 0x204   : > { %v3578_v35 = vpop.f32.mrf.mxu3  ;;  %v2642_v16 = vpop.f32.mrf.mxu1  ;;  %v3507_v25 = vpack.c.b16 %v3486_v24, %v3485_v27  ;;  %v3361_v3 = vrot.slane %v3360_v14, 4  ;;  %v3905_v27 = vpack.c.b16 %v3884_v43, %v3883_v63 }
 0x205   : > { %4152 = vst [vmem:[%s6069_s15 + $0x8] sm:$0xff] %v4120_v6  ;;  %v3655_v47 = vadd.f32 %v3578_v35, %v3001_v61  ;;  %v4581_v61 = vrot.slane %v4565_v62, 9  ;;  %v2492_v6 = vrot.slane %v4935_v11, 5  ;;  %v3351_v62 = vrot.slane %v3350_v60, 4 }
 0x206   : > { %4823 = vmatmul.msk.bf16.gmra.mxu0 %vm658_vm4, %v3904_v49  ;;  %v3831_v60 = vrot.slane %v6108_v41, 5 }
 0x207   : > { %v4053_v4 = vadd.f32 %v3976_v39, %v3655_v47  ;;  %v2926_v33 = vpop.f32.mrf.mxu2  ;;  %4597 = vmatmul.msk.bf16.gmra.mxu1 %vm658_vm4, %v2566_v48  ;;  %v3363_v39 = vshll.u32 %v6108_v41, 16  ;;  %v2490_v56 = vsel %vm5193_vm7, %v4581_v61, %v2489_v26  ;;  %v2493_v15 = vsel %vm5193_vm7, %v2491_v38, %v2492_v6  ;;  %v4792_v61 = vld [vmem:[%s5007_s27 + $0x9c] sm:$0xe]  ;;  %v4752_v38 = vld [vmem:[%s5007_s27 + $0xa8] sm:$0xf] }
 0x208   : > { %v3002_v20 = vadd.f32 %v2926_v33, %v2715_v34  ;;  %v2716_v34 = vadd.f32 %v2642_v16, %v5524_v57  ;;  %v2546_v33 = vunpack.c.l.b16 %v2490_v56  ;;  %v3356_v10 = vsel %vm5019_vm3, %v3351_v62, %v6103_v23 }
 0x209   : > { %v4089_v49 = vadd.f32 %v6045_v7, %v4053_v4  ;;  %v3365_v42 = vrot.slane %v3363_v39, 5  ;;  %v4808_v16 = vrot.slane %v4792_v61, 9  ;;  %v3368_v14 = vshrl.u32 %v4752_v38, 16  ;;  %v4937_v61 = vld [vmem:[%s5007_s27 + $0xa4] sm:$0x1] }
 0x20a   : > { %v3371_v56 = vshll.u32 %v4752_v38, 16  ;;  %v3487_v63 = vunpack.c.l.b16 %v3356_v10  ;;  %v2499_v38 = vrot.slane %v4937_v61, 5 }
 0x20b   : > { %v4121_v48 = vmax.f32 %v4089_v49, 0.0  ;;  %v3978_v35 = vpop.f32.mrf.mxu0  ;;  %v3366_v57 = vsel %vm5019_vm3, %v3361_v3, %v3365_v42  ;;  %v3830_v49 = vrot.slane %v3828_v59, 4  ;;  %v3829_v41 = vsel %vm5193_vm7, %v4808_v16, %v3828_v59 }
 0x20c   : > { %v3580_v55 = vpop.f32.mrf.mxu3  ;;  %4710 = vmatmul.msk.bf16.gmra.mxu2 %vm658_vm4, %v4875_v0  ;;  %v2644_v47 = vpop.f32.mrf.mxu1  ;;  %v2547_v0 = vunpack.c.l.b16 %v2493_v15  ;;  %v4566_v15 = vld [vmem:[%s5007_s27 + $0x9c] sm:$0xe]  ;;  %v3488_v43 = vunpack.c.l.b16 %v3366_v57  ;;  %v3885_v16 = vunpack.c.l.b16 %v3829_v41 }
 0x20d   : > { %4153 = vst [vmem:[%s6069_s15 + $0x10] sm:$0xff] %v4121_v48  ;;  %v3656_v12 = vadd.f32 %v3580_v55, %v3002_v20  ;;  %v6137_v20 = vld [vmem:[%s5007_s27 + $0xac] sm:$0xf]  ;;  %v2717_v3 = vadd.f32 %v2644_v47, %v5537_v54  ;;  %v6158_v47 = vld [vmem:[%s5007_s27 + $0xb0] sm:$0x1] }
 0x20e   : > { %v2567_v13 = vpack.c.b16 %v2547_v0, %v2546_v33  ;;  %v4582_v33 = vrot.slane %v4566_v15, 9 }
 0x20f   : > { %v4054_v4 = vadd.f32 %v3978_v35, %v3656_v12  ;;  %v2929_v26 = vpop.f32.mrf.mxu2  ;;  %v4936_v35 = vld [vmem:[%s5007_s27 + $0xa0] sm:$0xf]  ;;  %v3377_v12 = vshll.u32 %v6137_v20, 16 }
 0x210   : > { %v3003_v6 = vadd.f32 %v2929_v26, %v2716_v34  ;;  %v2496_v55 = vrot.slane %v4936_v35, 5  ;;  %v3370_v34 = vrot.slane %v3368_v14, 4  ;;  %v4876_v26 = vld [vmem:[%s5007_s27 + $0x9c] sm:$0xff]  ;;  %v3508_v35 = vpack.c.b16 %v3488_v43, %v3487_v63 }
 0x211   : > { %v4090_v11 = vadd.f32 %v6045_v7, %v4054_v4  ;;  %4775 = vmatmul.msk.bf16.gmra.mxu3 %vm658_vm4, %v3507_v25  ;;  %v3381_v25 = vshrl.u32 %v6137_v20, 16  ;;  %v3832_v4 = vsel %vm5193_vm7, %v3830_v49, %v3831_v60 }
 0x212   : > { %v2498_v0 = vrot.slane %v2496_v55, 4 }
 0x213   : > { %v4122_v24 = vmax.f32 %v4090_v11, 0.0  ;;  %v3981_v28 = vpop.f32.mrf.mxu0  ;;  %v3373_v11 = vrot.slane %v3371_v56, 5  ;;  %v3383_v54 = vrot.slane %v3381_v25, 4 }
 0x214   : > { %v3583_v39 = vpop.f32.mrf.mxu3  ;;  %v2647_v48 = vpop.f32.mrf.mxu1  ;;  %v2500_v60 = vsel %vm5193_vm7, %v2498_v0, %v2499_v38 }
 0x215   : > { %4154 = vst [vmem:[%s6069_s15 + $0x18] sm:$0xff] %v4122_v24  ;;  %v3657_v23 = vadd.f32 %v3583_v39, %v3003_v6  ;;  %v6155_v6 = vrot.slane %v3377_v12, 5  ;;  %v3886_v24 = vunpack.c.l.b16 %v3832_v4  ;;  %v3374_v14 = vor.u32 %v3373_v11, %v3370_v34 }
 0x216   : > { %4824 = vmatmul.msk.bf16.gmra.mxu0 %vm658_vm4, %v3905_v27  ;;  %v2718_v12 = vadd.f32 %v2647_v48, %v5549_v31 }
 0x217   : > { %v4055_v62 = vadd.f32 %v3981_v28, %v3657_v23  ;;  %v2931_v42 = vpop.f32.mrf.mxu2  ;;  %4598 = vmatmul.msk.bf16.gmra.mxu1 %vm658_vm4, %v2567_v13  ;;  %v2497_v13 = vsel %vm5193_vm7, %v4582_v33, %v2496_v55  ;;  %v3384_v56 = vor.u32 %v3383_v54, %v6155_v6  ;;  %v3387_v23 = vshll.u32 %v6158_v47, 16  ;;  %v6171_v55 = vld [vmem:[%s5007_s27 + $0xb8] sm:$0xf]  ;;  %v4793_v33 = vld [vmem:[%s5007_s27 + $0xa8] sm:$0xe] }
 0x218   : > { %v3004_v27 = vadd.f32 %v2931_v42, %v2717_v3  ;;  %v2548_v41 = vunpack.c.l.b16 %v2497_v13  ;;  %v4755_v3 = vld [vmem:[%s5007_s27 + $0xb4] sm:$0xf]  ;;  %v3906_v42 = vpack.c.b16 %v3886_v24, %v3885_v16  ;;  %v3375_v4 = vrot.slane %v3374_v14, 4  ;;  %v4567_v14 = vld [vmem:[%s5007_s27 + $0xa8] sm:$0xe] }
 0x219   : > { %v4091_v59 = vadd.f32 %v6045_v7, %v4055_v62  ;;  %v2549_v62 = vunpack.c.l.b16 %v2500_v60  ;;  %v3385_v43 = vrot.slane %v3384_v56, 4  ;;  %v3392_v0 = vshrl.u32 %v4755_v3, 16 }
 0x21a   : > { %v3395_v31 = vshll.u32 %v4755_v3, 16  ;;  %v3401_v48 = vshll.u32 %v6171_v55, 16  ;;  %v3405_v61 = vshrl.u32 %v6171_v55, 16  ;;  %v3380_v24 = vsel %vm5019_vm3, %v3375_v4, %v6155_v6 }
 0x21b   : > { %v4123_v10 = vmax.f32 %v4091_v59, 0.0  ;;  %v3983_v57 = vpop.f32.mrf.mxu0  ;;  %v2568_v59 = vpack.c.b16 %v2549_v62, %v2548_v41  ;;  %v4809_v60 = vrot.slane %v4793_v33, 9  ;;  %v6194_v41 = vld [vmem:[%s5007_s27 + $0xbc] sm:$0x1]  ;;  %v4877_v62 = vld [vmem:[%s5007_s27 + $0xa8] sm:$0xff]  ;;  %v4583_v3 = vrot.slane %v4567_v14, 9 }
 0x21c   : > { %v3585_v49 = vpop.f32.mrf.mxu3  ;;  %4711 = vmatmul.msk.bf16.gmra.mxu2 %vm658_vm4, %v4876_v26  ;;  %v2649_v28 = vpop.f32.mrf.mxu1  ;;  %v3389_v26 = vrot.slane %v3387_v23, 5  ;;  %v3407_v56 = vrot.slane %v3405_v61, 4 }
 0x21d   : > { %4155 = vst [vmem:[%s6069_s15 + $0x20] sm:$0xff] %v4123_v10  ;;  %v3658_v39 = vadd.f32 %v3585_v49, %v3004_v27  ;;  %v3835_v27 = vrot.slane %v6137_v20, 5  ;;  %v3394_v20 = vrot.slane %v3392_v0, 4 }
 0x21e   : > { %v3390_v13 = vsel %vm5019_vm3, %v3385_v43, %v3389_v26  ;;  %v3489_v26 = vunpack.c.l.b16 %v3380_v24 }
 0x21f   : > { %v4056_v15 = vadd.f32 %v3983_v57, %v3658_v39  ;;  %v2934_v25 = vpop.f32.mrf.mxu2  ;;  %v4938_v57 = vld [vmem:[%s5007_s27 + $0xac] sm:$0xf]  ;;  %v3397_v39 = vrot.slane %v3395_v31, 5  ;;  %v3837_v6 = vrot.slane %v3835_v27, 4  ;;  %v3490_v33 = vunpack.c.l.b16 %v3390_v13 }
 0x220   : > { %v3005_v63 = vadd.f32 %v2934_v25, %v2718_v12  ;;  %v2503_v16 = vrot.slane %v4938_v57, 5  ;;  %v3838_v25 = vrot.slane %v6158_v47, 5  ;;  %v3411_v47 = vshll.u32 %v6194_v41, 16 }
 0x221   : > { %v4092_v34 = vadd.f32 %v6045_v7, %v4056_v15  ;;  %4776 = vmatmul.msk.bf16.gmra.mxu3 %vm658_vm4, %v3508_v35  ;;  %v6188_v35 = vrot.slane %v3401_v48, 5  ;;  %v2719_v15 = vadd.f32 %v2649_v28, %v5562_v44  ;;  %v3836_v44 = vsel %vm5193_vm7, %v4809_v60, %v3835_v27 }
 0x222   : > { %v2505_v4 = vrot.slane %v2503_v16, 4  ;;  %v3398_v28 = vor.u32 %v3397_v39, %v3394_v20  ;;  %v3839_v61 = vsel %vm5193_vm7, %v3837_v6, %v3838_v25  ;;  %v3509_v57 = vpack.c.b16 %v3490_v33, %v3489_v26 }
 0x223   : > { %v4124_v38 = vmax.f32 %v4092_v34, 0.0  ;;  %v3986_v11 = vpop.f32.mrf.mxu0  ;;  %v3408_v0 = vor.u32 %v3407_v56, %v6188_v35  ;;  %v3888_v24 = vunpack.c.l.b16 %v3839_v61  ;;  %v3413_v14 = vrot.slane %v3411_v47, 5  ;;  %v4568_v47 = vld [vmem:[%s5007_s27 + $0xb4] sm:$0xe] }
 0x224   : > { %v3588_v54 = vpop.f32.mrf.mxu3  ;;  %v2652_v10 = vpop.f32.mrf.mxu1  ;;  %v3399_v13 = vrot.slane %v3398_v28, 4 }
 0x225   : > { %4156 = vst [vmem:[%s6069_s15 + $0x28] sm:$0xff] %v4124_v38  ;;  %v3659_v49 = vadd.f32 %v3588_v54, %v3005_v63  ;;  %v3409_v60 = vrot.slane %v3408_v0, 4  ;;  %v2720_v39 = vadd.f32 %v2652_v10, %v5576_v30  ;;  %v3842_v30 = vrot.slane %v6171_v55, 5  ;;  %v6220_v10 = vld [vmem:[%s5007_s27 + $0xc4] sm:$0xf] }
 0x226   : > { %4825 = vmatmul.msk.bf16.gmra.mxu0 %vm658_vm4, %v3906_v42  ;;  %v4939_v42 = vld [vmem:[%s5007_s27 + $0xb0] sm:$0x1]  ;;  %v3425_v55 = vshll.u32 %v6220_v10, 16 }
 0x227   : > { %v4057_v23 = vadd.f32 %v3986_v11, %v3659_v49  ;;  %v2936_v12 = vpop.f32.mrf.mxu2  ;;  %4599 = vmatmul.msk.bf16.gmra.mxu1 %vm658_vm4, %v2568_v59  ;;  %v2506_v34 = vrot.slane %v4939_v42, 5  ;;  %v2504_v59 = vsel %vm5193_vm7, %v4583_v3, %v2503_v16  ;;  %v3887_v49 = vunpack.c.l.b16 %v3836_v44  ;;  %v4758_v16 = vld [vmem:[%s5007_s27 + $0xc0] sm:$0xf]  ;;  %v4940_v44 = vld [vmem:[%s5007_s27 + $0xb8] sm:$0xf] }
 0x228   : > { %v3006_v43 = vadd.f32 %v2936_v12, %v2719_v15  ;;  %v2510_v28 = vrot.slane %v4940_v44, 5  ;;  %v3419_v0 = vshll.u32 %v4758_v16, 16 }
 0x229   : > { %v4093_v63 = vadd.f32 %v6045_v7, %v4057_v23  ;;  %v2507_v27 = vsel %vm5193_vm7, %v2505_v4, %v2506_v34  ;;  %v2550_v23 = vunpack.c.l.b16 %v2504_v59  ;;  %v3907_v25 = vpack.c.b16 %v3888_v24, %v3887_v49 }
 0x22a   : > { %v2551_v15 = vunpack.c.l.b16 %v2507_v27  ;;  %v3414_v34 = vsel %vm5019_vm3, %v3409_v60, %v3413_v14  ;;  %v3844_v59 = vrot.slane %v3842_v30, 4  ;;  %v3845_v49 = vrot.slane %v6194_v41, 5 }
 0x22b   : > { %v4125_v31 = vmax.f32 %v4093_v63, 0.0  ;;  %v3988_v48 = vpop.f32.mrf.mxu0  ;;  %v4794_v63 = vld [vmem:[%s5007_s27 + $0xb4] sm:$0xe]  ;;  %v3492_v61 = vunpack.c.l.b16 %v3414_v34  ;;  %v4584_v60 = vrot.slane %v4568_v47, 9  ;;  %v2512_v14 = vrot.slane %v2510_v28, 4 }
 0x22c   : > { %v3590_v38 = vpop.f32.mrf.mxu3  ;;  %4712 = vmatmul.msk.bf16.gmra.mxu2 %vm658_vm4, %v4877_v62  ;;  %v2654_v11 = vpop.f32.mrf.mxu1  ;;  %v3404_v62 = vsel %vm5019_vm3, %v3399_v13, %v6188_v35  ;;  %v2569_v42 = vpack.c.b16 %v2551_v15, %v2550_v23  ;;  %v4878_v13 = vld [vmem:[%s5007_s27 + $0xb4] sm:$0xff] }
 0x22d   : > { %4157 = vst [vmem:[%s6069_s15 + $0x30] sm:$0xff] %v4125_v31  ;;  %v3660_v54 = vadd.f32 %v3590_v38, %v3006_v43  ;;  %v3416_v43 = vshrl.u32 %v4758_v16, 16  ;;  %v3429_v31 = vshrl.u32 %v6220_v10, 16  ;;  %v4810_v38 = vrot.slane %v4794_v63, 9 }
 0x22e   : > { %v3427_v16 = vrot.slane %v3425_v55, 5 }
 0x22f   : > { %v4058_v20 = vadd.f32 %v3988_v48, %v3660_v54  ;;  %v2939_v56 = vpop.f32.mrf.mxu2  ;;  %v3491_v48 = vunpack.c.l.b16 %v3404_v62  ;;  %v2721_v54 = vadd.f32 %v2654_v11, %v5589_v51  ;;  %v3418_v24 = vrot.slane %v3416_v43, 4 }
 0x230   : > { %v3007_v6 = vadd.f32 %v2939_v56, %v2720_v39  ;;  %v3421_v56 = vrot.slane %v3419_v0, 5  ;;  %v3843_v41 = vsel %vm5193_vm7, %v4810_v38, %v3842_v30 }
 0x231   : > { %v4094_v12 = vadd.f32 %v6045_v7, %v4058_v20  ;;  %4777 = vmatmul.msk.bf16.gmra.mxu3 %vm658_vm4, %v3509_v57  ;;  %v4941_v20 = vld [vmem:[%s5007_s27 + $0xbc] sm:$0x1]  ;;  %v3510_v43 = vpack.c.b16 %v3492_v61, %v3491_v48  ;;  %v3889_v44 = vunpack.c.l.b16 %v3843_v41 }
 0x232   : > { %v2513_v39 = vrot.slane %v4941_v20, 5  ;;  %v3422_v34 = vor.u32 %v3421_v56, %v3418_v24  ;;  %v3849_v24 = vrot.slane %v6220_v10, 5 }
 0x233   : > { %v4126_v3 = vmax.f32 %v4094_v12, 0.0  ;;  %v3991_v4 = vpop.f32.mrf.mxu0  ;;  %v3431_v12 = vrot.slane %v3429_v31, 4 }
 0x234   : > { %v3593_v26 = vpop.f32.mrf.mxu3  ;;  %v2657_v33 = vpop.f32.mrf.mxu1  ;;  %v3423_v38 = vrot.slane %v3422_v34, 4 }
 0x235   : > { %4158 = vst [vmem:[%s6069_s15 + $0x38] sm:$0xff] %v4126_v3  ;;  %v3661_v35 = vadd.f32 %v3593_v26, %v3007_v6  ;;  %v6238_v6 = vld [vmem:[%s5007_s27 + $0xc8] sm:$0x1]  ;;  %v3432_v26 = vor.u32 %v3431_v12, %v3427_v16  ;;  %v2722_v47 = vadd.f32 %v2657_v33, %v5605_v1 }
 0x236   : > { %4826 = vmatmul.msk.bf16.gmra.mxu0 %vm658_vm4, %v3907_v25  ;;  %v3846_v25 = vsel %vm5193_vm7, %v3844_v59, %v3845_v49  ;;  %v3435_v30 = vshll.u32 %v6238_v6, 16 }
 0x237   : > { %v4059_v27 = vadd.f32 %v3991_v4, %v3661_v35  ;;  %v2941_v57 = vpop.f32.mrf.mxu2  ;;  %4600 = vmatmul.msk.bf16.gmra.mxu1 %vm658_vm4, %v2569_v42  ;;  %v2511_v4 = vsel %vm5193_vm7, %v4584_v60, %v2510_v28  ;;  %v2514_v42 = vsel %vm5193_vm7, %v2512_v14, %v2513_v39  ;;  %v3890_v0 = vunpack.c.l.b16 %v3846_v25  ;;  %v6258_v60 = vld [vmem:[%s5007_s27 + $0xd0] sm:$0xf]  ;;  %v4942_v39 = vld [vmem:[%s5007_s27 + $0xc4] sm:$0xf] }
 0x238   : > { %v3008_v15 = vadd.f32 %v2941_v57, %v2721_v54  ;;  %v2552_v28 = vunpack.c.l.b16 %v2511_v4  ;;  %v2553_v31 = vunpack.c.l.b16 %v2514_v42  ;;  %v3433_v61 = vrot.slane %v3432_v26, 4  ;;  %v4795_v57 = vld [vmem:[%s5007_s27 + $0xc0] sm:$0xe] }
 0x239   : > { %v4095_v23 = vadd.f32 %v6045_v7, %v4059_v27  ;;  %v3437_v27 = vrot.slane %v3435_v30, 5  ;;  %v3908_v54 = vpack.c.b16 %v3890_v0, %v3889_v44  ;;  %v2517_v56 = vrot.slane %v4942_v39, 5  ;;  %v6385_v42 = vld [vmem:[#allocation2_spill] sm:$0xff] }
 0x23a   : > { %v2570_v33 = vpack.c.b16 %v2553_v31, %v2552_v28  ;;  %v3449_v25 = vshll.u32 %v6258_v60, 16  ;;  %v4879_v26 = vld [vmem:[%s5007_s27 + $0xc0] sm:$0xff] }
 0x23b   : > { %v4127_v51 = vmax.f32 %v4095_v23, 0.0  ;;  %v3993_v11 = vpop.f32.mrf.mxu0  ;;  %v3438_v12 = vsel %vm5019_vm3, %v3433_v61, %v3437_v27  ;;  %v2519_v0 = vrot.slane %v2517_v56, 4 }
 0x23c   : > { %v3595_v62 = vpop.f32.mrf.mxu3  ;;  %4713 = vmatmul.msk.bf16.gmra.mxu2 %vm658_vm4, %v4878_v13  ;;  %v2659_v3 = vpop.f32.mrf.mxu1  ;;  %v4761_v13 = vld [vmem:[%s5007_s27 + $0xcc] sm:$0xf]  ;;  %v3494_v31 = vunpack.c.l.b16 %v3438_v12 }
 0x23d   : > { %4159 = vst [vmem:[%s6069_s15 + $0x40] sm:$0xff] %v4127_v51  ;;  %v3662_v63 = vadd.f32 %v3595_v62, %v3008_v15  ;;  %v3428_v15 = vsel %vm5019_vm3, %v3423_v38, %v3427_v16  ;;  %v4811_v51 = vrot.slane %v4795_v57, 9  ;;  %v3440_v10 = vshrl.u32 %v4761_v13, 16  ;;  %v4763_v57 = vld [vmem:[%s5007_s27 + $0xd4] sm:$0x1] }
 0x23e   : > { %v3443_v41 = vshll.u32 %v4761_v13, 16  ;;  %v3453_v62 = vshrl.u32 %v6258_v60, 16  ;;  %v2723_v34 = vadd.f32 %v2659_v3, %v6385_v42  ;;  %v3851_v16 = vrot.slane %v3849_v24, 4 }
 0x23f   : > { %v4060_v35 = vadd.f32 %v3993_v11, %v3662_v63  ;;  %v2944_v55 = vpop.f32.mrf.mxu2  ;;  %v4569_v11 = vld [vmem:[%s5007_s27 + $0xc0] sm:$0xe]  ;;  %v3493_v30 = vunpack.c.l.b16 %v3428_v15  ;;  %v3850_v3 = vsel %vm5193_vm7, %v4811_v51, %v3849_v24  ;;  %v3442_v38 = vrot.slane %v3440_v10, 4 }
 0x240   : > { %v3009_v48 = vadd.f32 %v2944_v55, %v2722_v47  ;;  %v4585_v44 = vrot.slane %v4569_v11, 9  ;;  %v3455_v61 = vrot.slane %v3453_v62, 4  ;;  %v3891_v39 = vunpack.c.l.b16 %v3850_v3 }
 0x241   : > { %v4096_v59 = vadd.f32 %v6045_v7, %v4060_v35  ;;  %4778 = vmatmul.msk.bf16.gmra.mxu3 %vm658_vm4, %v3510_v43  ;;  %v3852_v43 = vrot.slane %v6238_v6, 5  ;;  %v4943_v35 = vld [vmem:[%s5007_s27 + $0xc8] sm:$0x1]  ;;  %v3459_v51 = vshll.u32 %v4763_v57, 16 }
 0x242   : > { %v2520_v47 = vrot.slane %v4943_v35, 5 }
 0x243   : > { %v4128_v49 = vmax.f32 %v4096_v59, 0.0  ;;  %v3996_v1 = vpop.f32.mrf.mxu0  ;;  %v3445_v59 = vrot.slane %v3443_v41, 5 }
 0x244   : > { %v3598_v14 = vpop.f32.mrf.mxu3  ;;  %v2662_v20 = vpop.f32.mrf.mxu1  ;;  %v2521_v24 = vsel %vm5193_vm7, %v2519_v0, %v2520_v47 }
 0x245   : > { %4160 = vst [vmem:[%s6069_s15 + $0x48] sm:$0xff] %v4128_v49  ;;  %v3663_v23 = vadd.f32 %v3598_v14, %v3009_v48  ;;  %v3451_v48 = vrot.slane %v3449_v25, 5  ;;  %v3511_v14 = vpack.c.b16 %v3494_v31, %v3493_v30  ;;  %v3446_v15 = vor.u32 %v3445_v59, %v3442_v38 }
 0x246   : > { %4827 = vmatmul.msk.bf16.gmra.mxu0 %vm658_vm4, %v3908_v54  ;;  %v3853_v54 = vsel %vm5193_vm7, %v3851_v16, %v3852_v43  ;;  %v2724_v10 = vadd.f32 %v2662_v20, %v5641_v52  ;;  %v2555_v62 = vunpack.c.l.b16 %v2521_v24  ;;  %v3461_v16 = vrot.slane %v3459_v51, 5 }
 0x247   : > { %v4061_v4 = vadd.f32 %v3996_v1, %v3663_v23  ;;  %v2946_v63 = vpop.f32.mrf.mxu2  ;;  %4601 = vmatmul.msk.bf16.gmra.mxu1 %vm658_vm4, %v2570_v33  ;;  %v2518_v33 = vsel %vm5193_vm7, %v4585_v44, %v2517_v56  ;;  %v3892_v23 = vunpack.c.l.b16 %v3853_v54  ;;  %v3456_v12 = vor.u32 %v3455_v61, %v3451_v48  ;;  %v4796_v44 = vld [vmem:[%s5007_s27 + $0xcc] sm:$0xe] }
 0x248   : > { %v3010_v28 = vadd.f32 %v2946_v63, %v2723_v34  ;;  %v2554_v25 = vunpack.c.l.b16 %v2518_v33  ;;  %v3447_v34 = vrot.slane %v3446_v15, 4  ;;  %v3856_v52 = vrot.slane %v6258_v60, 5  ;;  %v4880_v61 = vld [vmem:[%s5007_s27 + $0xcc] sm:$0xff] }
 0x249   : > { %v4097_v55 = vadd.f32 %v6045_v7, %v4061_v4  ;;  %v3909_v42 = vpack.c.b16 %v3892_v23, %v3891_v39  ;;  %v3457_v63 = vrot.slane %v3456_v12, 4  ;;  %v3859_v59 = vrot.slane %v4763_v57, 5 }
 0x24a   : > { %v2571_v30 = vpack.c.b16 %v2555_v62, %v2554_v25  ;;  %v3452_v47 = vsel %vm5019_vm3, %v3447_v34, %v3451_v48  ;;  %v3858_v60 = vrot.slane %v3856_v52, 4 }
 0x24b   : > { %v4129_v6 = vmax.f32 %v4097_v55, 0.0  ;;  %v3998_v27 = vpop.f32.mrf.mxu0  ;;  %v3462_v55 = vsel %vm5019_vm3, %v3457_v63, %v3461_v16  ;;  %v3495_v54 = vunpack.c.l.b16 %v3452_v47 }
 0x24c   : > { %v3600_v49 = vpop.f32.mrf.mxu3  ;;  %4714 = vmatmul.msk.bf16.gmra.mxu2 %vm658_vm4, %v4879_v26  ;;  %v2664_v1 = vpop.f32.mrf.mxu1 }
 0x24d   : > { %4161 = vst [vmem:[%s6069_s15 + $0x50] sm:$0xff] %v4129_v6  ;;  %v3664_v13 = vadd.f32 %v3600_v49, %v3010_v28  ;;  %v4812_v28 = vrot.slane %v4796_v44, 9  ;;  %v2725_v3 = vadd.f32 %v2664_v1, %v5661_v21  ;;  %v3496_v49 = vunpack.c.l.b16 %v3462_v55 }
 0x24e   : > { %v3860_v21 = vsel %vm5193_vm7, %v3858_v60, %v3859_v59 }
 0x24f   : > { %v4062_v11 = vadd.f32 %v3998_v27, %v3664_v13  ;;  %v2949_v41 = vpop.f32.mrf.mxu2  ;;  %v3857_v36 = vsel %vm5193_vm7, %v4812_v28, %v3856_v52  ;;  %v3512_v13 = vpack.c.b16 %v3496_v49, %v3495_v54  ;;  %v3894_v39 = vunpack.c.l.b16 %v3860_v21 }
 0x250   : > { %v3011_v4 = vadd.f32 %v2949_v41, %v2724_v10 }
 0x251   : > { %v4098_v56 = vadd.f32 %v6045_v7, %v4062_v11  ;;  %4779 = vmatmul.msk.bf16.gmra.mxu3 %vm658_vm4, %v3511_v14  ;;  %v3893_v14 = vunpack.c.l.b16 %v3857_v36 }
 0x253   : > { %v4130_v43 = vmax.f32 %v4098_v56, 0.0  ;;  %v4001_v26 = vpop.f32.mrf.mxu0  ;;  %v3910_v11 = vpack.c.b16 %v3894_v39, %v3893_v14 }
 0x254   : > { %v3603_v20 = vpop.f32.mrf.mxu3  ;;  %v2667_v0 = vpop.f32.mrf.mxu1 }
 0x255   : > { %4162 = vst [vmem:[%s6069_s15 + $0x58] sm:$0xff] %v4130_v43  ;;  %v3665_v35 = vadd.f32 %v3603_v20, %v3011_v4  ;;  %v2726_v15 = vadd.f32 %v2667_v0, %v5680_v29 }
 0x256   : > { %4828 = vmatmul.msk.bf16.gmra.mxu0 %vm658_vm4, %v3909_v42  ;;  %v6386_v42 = vld [vmem:[#allocation3_spill] sm:$0xff] }
 0x257   : > { %v4063_v31 = vadd.f32 %v4001_v26, %v3665_v35  ;;  %v2951_v38 = vpop.f32.mrf.mxu2  ;;  %4602 = vmatmul.msk.bf16.gmra.mxu1 %vm658_vm4, %v2571_v30 }
 0x258   : > { %v3012_v27 = vadd.f32 %v2951_v38, %v2725_v3 }
 0x259   : > { %v4099_v6 = vadd.f32 %v6045_v7, %v4063_v31 }
 0x25b   : > { %v4131_v48 = vmax.f32 %v4099_v6, 0.0  ;;  %v4003_v33 = vpop.f32.mrf.mxu0 }
 0x25c   : > { %v3605_v1 = vpop.f32.mrf.mxu3  ;;  %4715 = vmatmul.msk.bf16.gmra.mxu2 %vm658_vm4, %v4880_v61  ;;  %v2669_v24 = vpop.f32.mrf.mxu1 }
 0x25d   : > { %4163 = vst [vmem:[%s6069_s15 + $0x60] sm:$0xff] %v4131_v48  ;;  %v3666_v57 = vadd.f32 %v3605_v1, %v3012_v27  ;;  %v2727_v34 = vadd.f32 %v2669_v24, %v6386_v42 }
 0x25f   : > { %v4064_v23 = vadd.f32 %v4003_v33, %v3666_v57  ;;  %v2954_v12 = vpop.f32.mrf.mxu2 }
 0x260   : > { %v3013_v18 = vadd.f32 %v2954_v12, %v2726_v15 }
 0x261   : > { %v4100_v51 = vadd.f32 %v6045_v7, %v4064_v23  ;;  %4780 = vmatmul.msk.bf16.gmra.mxu3 %vm658_vm4, %v3512_v13 }
 0x263   : > { %v4132_v10 = vmax.f32 %v4100_v51, 0.0  ;;  %v4006_v41 = vpop.f32.mrf.mxu0 }
 0x264   : > { %v3608_v25 = vpop.f32.mrf.mxu3  ;;  %v2672_v62 = vpop.f32.mrf.mxu1 }
 0x265   : > { %4164 = vst [vmem:[%s6069_s15 + $0x68] sm:$0xff] %v4132_v10  ;;  %v3667_v56 = vadd.f32 %v3608_v25, %v3013_v18  ;;  %v2728_v0 = vadd.f32 %v2672_v62, %v5723_v5 }
 0x266   : > { %4829 = vmatmul.msk.bf16.gmra.mxu0 %vm658_vm4, %v3910_v11 }
 0x267   : > { %v4065_v4 = vadd.f32 %v4006_v41, %v3667_v56  ;;  %v2956_v29 = vpop.f32.mrf.mxu2 }
 0x268   : > { %v3014_v16 = vadd.f32 %v2956_v29, %v2727_v34 }
 0x269   : > { %v4101_v63 = vadd.f32 %v6045_v7, %v4065_v4 }
 0x26b   : > { %v4133_v43 = vmax.f32 %v4101_v63, 0.0  ;;  %v4008_v26 = vpop.f32.mrf.mxu0 }
 0x26c   : > { %v3610_v30 = vpop.f32.mrf.mxu3  ;;  %v2674_v44 = vpop.f32.mrf.mxu1 }
 0x26d   : > { %4165 = vst [vmem:[%s6069_s15 + $0x70] sm:$0xff] %v4133_v43  ;;  %v3668_v52 = vadd.f32 %v3610_v30, %v3014_v16  ;;  %v2729_v61 = vadd.f32 %v2674_v44, %v5747_v22 }
 0x26f   : > { %v4066_v20 = vadd.f32 %v4008_v26, %v3668_v52  ;;  %v2959_v35 = vpop.f32.mrf.mxu2 }
 0x270   : > { %v3015_v55 = vadd.f32 %v2959_v35, %v2728_v0  ;;  %v6335_v0 = vld [vmem:[%s6376_s2] ss:$0 sm:$0xff] }
 0x271   : > { %v4102_v47 = vadd.f32 %v6045_v7, %v4066_v20 }
 0x273   : > { %v4134_v28 = vmax.f32 %v4102_v47, 0.0  ;;  %v4011_v31 = vpop.f32.mrf.mxu0 }
 0x274   : > { %v3613_v3 = vpop.f32.mrf.mxu3  ;;  %v2677_v38 = vpop.f32.mrf.mxu1 }
 0x275   : > { %4166 = vst [vmem:[%s6069_s15 + $0x78] sm:$0xff] %v4134_v28  ;;  %v3669_v60 = vadd.f32 %v3613_v3, %v3015_v55  ;;  %v2730_v1 = vadd.f32 %v2677_v38, %v5766_v19 }
 0x277   : > { %v4067_v59 = vadd.f32 %v4011_v31, %v3669_v60  ;;  %v2961_v6 = vpop.f32.mrf.mxu2 }
 0x278   : > { %v3016_v54 = vadd.f32 %v2961_v6, %v2729_v61 }
 0x279   : > { %v4103_v27 = vadd.f32 %v6045_v7, %v4067_v59 }
 0x27b   : > { %v4135_v5 = vmax.f32 %v4103_v27, 0.0  ;;  %v4013_v49 = vpop.f32.mrf.mxu0 }
 0x27c   : > { %v3615_v48 = vpop.f32.mrf.mxu3  ;;  %v2679_v33 = vpop.f32.mrf.mxu1 }
 0x27d   : > { %4167 = vst [vmem:[%s6069_s15 + $0x80] sm:$0xff] %v4135_v5  ;;  %v3670_v36 = vadd.f32 %v3615_v48, %v3016_v54  ;;  %v2731_v51 = vadd.f32 %v2679_v33, %v5790_v53  ;;  %v6387_v48 = vld [vmem:[#allocation4_spill] sm:$0xff] }
 0x27f   : > { %v4068_v21 = vadd.f32 %v4013_v49, %v3670_v36  ;;  %v2964_v24 = vpop.f32.mrf.mxu2 }
 0x280   : > { %v3017_v13 = vadd.f32 %v2964_v24, %v2730_v1 }
 0x281   : > { %v4104_v57 = vadd.f32 %v6045_v7, %v4068_v21 }
 0x283   : > { %v4136_v22 = vmax.f32 %v4104_v57, 0.0  ;;  %v4016_v14 = vpop.f32.mrf.mxu0 }
 0x284   : > { %v3618_v39 = vpop.f32.mrf.mxu3  ;;  %v2682_v23 = vpop.f32.mrf.mxu1 }
 0x285   : > { %4168 = vst [vmem:[%s6069_s15 + $0x88] sm:$0xff] %v4136_v22  ;;  %v3671_v15 = vadd.f32 %v3618_v39, %v3017_v13  ;;  %v2732_v42 = vadd.f32 %v2682_v23, %v5809_v2 }
 0x287   : > { %v4069_v12 = vadd.f32 %v4016_v14, %v3671_v15  ;;  %v2966_v18 = vpop.f32.mrf.mxu2 }
 0x288   : > { %v3018_v10 = vadd.f32 %v2966_v18, %v2731_v51 }
 0x289   : > { %v4105_v11 = vadd.f32 %v6045_v7, %v4069_v12 }
 0x28b   : > { %v4137_v19 = vmax.f32 %v4105_v11, 0.0  ;;  %v4018_v41 = vpop.f32.mrf.mxu0 }
 0x28c   : > { %v3620_v25 = vpop.f32.mrf.mxu3  ;;  %v2684_v62 = vpop.f32.mrf.mxu1 }
 0x28d   : > { %4169 = vst [vmem:[%s6069_s15 + $0x90] sm:$0xff] %v4137_v19  ;;  %v3672_v56 = vadd.f32 %v3620_v25, %v3018_v10  ;;  %v2733_v52 = vadd.f32 %v2684_v62, %v5833_v40 }
 0x28f   : > { %v4070_v4 = vadd.f32 %v4018_v41, %v3672_v56  ;;  %v2969_v34 = vpop.f32.mrf.mxu2 }
 0x290   : > { %v3019_v63 = vadd.f32 %v2969_v34, %v2732_v42 }
 0x291   : > { %v4106_v29 = vadd.f32 %v6045_v7, %v4070_v4 }
 0x293   : > { %v4138_v16 = vmax.f32 %v4106_v29, 0.0  ;;  %v4021_v53 = vpop.f32.mrf.mxu0 }
 0x294   : > { %v3623_v43 = vpop.f32.mrf.mxu3  ;;  %v2687_v26 = vpop.f32.mrf.mxu1 }
 0x295   : > { %4170 = vst [vmem:[%s6069_s15 + $0x98] sm:$0xff] %v4138_v16  ;;  %v3673_v30 = vadd.f32 %v3623_v43, %v3019_v63  ;;  %v2734_v38 = vadd.f32 %v2687_v26, %v5852_v8 }
 0x297   : > { %v4071_v44 = vadd.f32 %v4021_v53, %v3673_v30  ;;  %v2971_v20 = vpop.f32.mrf.mxu2 }
 0x298   : > { %v3020_v7 = vadd.f32 %v2971_v20, %v2733_v52 }
 0x299   : > { %v4107_v2 = vadd.f32 %v6335_v0, %v4071_v44 }
 0x29b   : > { %v4139_v35 = vmax.f32 %v4107_v2, 0.0  ;;  %v4023_v47 = vpop.f32.mrf.mxu0 }
 0x29c   : > { %v3625_v55 = vpop.f32.mrf.mxu3  ;;  %v2689_v28 = vpop.f32.mrf.mxu1 }
 0x29d   : > { %4171 = vst [vmem:[%s6069_s15 + $0xa0] sm:$0xff] %v4139_v35  ;;  %v3674_v31 = vadd.f32 %v3625_v55, %v3020_v7  ;;  %v2735_v33 = vadd.f32 %v2689_v28, %v6387_v48 }
 0x29f   : > { %v4072_v3 = vadd.f32 %v4023_v47, %v3674_v31  ;;  %v2974_v40 = vpop.f32.mrf.mxu2 }
 0x2a0   : > { %v3021_v59 = vadd.f32 %v2974_v40, %v2734_v38 }
 0x2a1   : > { %v4108_v60 = vadd.f32 %v6335_v0, %v4072_v3 }
 0x2a3   : > { %v4140_v61 = vmax.f32 %v4108_v60, 0.0  ;;  %v4026_v6 = vpop.f32.mrf.mxu0 }
 0x2a4   : > { %v3628_v27 = vpop.f32.mrf.mxu3  ;;  %v2692_v54 = vpop.f32.mrf.mxu1 }
 0x2a5   : > { %4172 = vst [vmem:[%s6069_s15 + $0xa8] sm:$0xff] %v4140_v61  ;;  %v3675_v5 = vadd.f32 %v3628_v27, %v3021_v59  ;;  %v2736_v39 = vadd.f32 %v2692_v54, %v5893_v17 }
 0x2a7   : > { %v4073_v49 = vadd.f32 %v4026_v6, %v3675_v5  ;;  %v2976_v36 = vpop.f32.mrf.mxu2 }
 0x2a8   : > { %v3022_v1 = vadd.f32 %v2976_v36, %v2735_v33 }
 0x2a9   : > { %v4109_v21 = vadd.f32 %v6335_v0, %v4073_v49 }
 0x2ab   : > { %v4141_v8 = vmax.f32 %v4109_v21, 0.0  ;;  %v4028_v24 = vpop.f32.mrf.mxu0 }
 0x2ac   : > { %v3630_v57 = vpop.f32.mrf.mxu3  ;;  %v2694_v13 = vpop.f32.mrf.mxu1 }
 0x2ad   : > { %4173 = vst [vmem:[%s6069_s15 + $0xb0] sm:$0xff] %v4141_v8  ;;  %v3676_v22 = vadd.f32 %v3630_v57, %v3022_v1  ;;  %v2737_v25 = vadd.f32 %v2694_v13, %v5914_v50 }
 0x2af   : > { %v4074_v14 = vadd.f32 %v4028_v24, %v3676_v22  ;;  %v2979_v23 = vpop.f32.mrf.mxu2 }
 0x2b0   : > { %v3023_v12 = vadd.f32 %v2979_v23, %v2736_v39 }
 0x2b1   : > { %v4110_v15 = vadd.f32 %v6335_v0, %v4074_v14 }
 0x2b3   : > { %v4142_v51 = vmax.f32 %v4110_v15, 0.0  ;;  %v4031_v18 = vpop.f32.mrf.mxu0 }
 0x2b4   : > { %v3633_v11 = vpop.f32.mrf.mxu3  ;;  %v2697_v10 = vpop.f32.mrf.mxu1 }
 0x2b5   : > { %4174 = vst [vmem:[%s6069_s15 + $0xb8] sm:$0xff] %v4142_v51  ;;  %v3677_v19 = vadd.f32 %v3633_v11, %v3023_v12  ;;  %v2738_v53 = vadd.f32 %v2697_v10, %v5932_v9 }
 0x2b7   : > { %v4075_v41 = vadd.f32 %v4031_v18, %v3677_v19  ;;  %v2981_v62 = vpop.f32.mrf.mxu2 }
 0x2b8   : > { %v3024_v4 = vadd.f32 %v2981_v62, %v2737_v25 }
 0x2b9   : > { %v4111_v56 = vadd.f32 %v6335_v0, %v4075_v41 }
 0x2bb   : > { %v4143_v17 = vmax.f32 %v4111_v56, 0.0  ;;  %v4033_v42 = vpop.f32.mrf.mxu0 }
 0x2bc   : > { %v3635_v34 = vpop.f32.mrf.mxu3  ;;  %v2699_v29 = vpop.f32.mrf.mxu1 }
 0x2bd   : > { %4175 = vst [vmem:[%s6069_s15 + $0xc0] sm:$0xff] %v4143_v17  ;;  %v3678_v63 = vadd.f32 %v3635_v34, %v3024_v4  ;;  %v2739_v35 = vadd.f32 %v2699_v29, %v5955_v45 }
 0x2bf   : > { %v4076_v16 = vadd.f32 %v4033_v42, %v3678_v63  ;;  %v2984_v43 = vpop.f32.mrf.mxu2 }
 0x2c0   : > { %v3025_v30 = vadd.f32 %v2984_v43, %v2738_v53 }
 0x2c1   : > { %v4112_v26 = vadd.f32 %v6335_v0, %v4076_v16 }
 0x2c3   : > { %v4144_v50 = vmax.f32 %v4112_v26, 0.0  ;;  %v4036_v44 = vpop.f32.mrf.mxu0 }
 0x2c4   : > { %v3638_v52 = vpop.f32.mrf.mxu3  ;;  %v2702_v2 = vpop.f32.mrf.mxu1 }
 0x2c5   : > { %4176 = vst [vmem:[%s6069_s15 + $0xc8] sm:$0xff] %v4144_v50  ;;  %v3679_v20 = vadd.f32 %v3638_v52, %v3025_v30  ;;  %v2740_v60 = vadd.f32 %v2702_v2, %v5975_v37 }
 0x2c7   : > { %v4077_v7 = vadd.f32 %v4036_v44, %v3679_v20  ;;  %v2986_v47 = vpop.f32.mrf.mxu2 }
 0x2c8   : > { %v3026_v28 = vadd.f32 %v2986_v47, %v2739_v35 }
 0x2c9   : > { %v4113_v55 = vadd.f32 %v6335_v0, %v4077_v7 }
 0x2cb   : > { %v4145_v9 = vmax.f32 %v4113_v55, 0.0  ;;  %v4038_v31 = vpop.f32.mrf.mxu0 }
 0x2cc   : > { %v3640_v3 = vpop.f32.mrf.mxu3  ;;  %v2704_v61 = vpop.f32.mrf.mxu1 }
 0x2cd   : > { %4177 = vst [vmem:[%s6069_s15 + $0xd0] sm:$0xff] %v4145_v9  ;;  %v3680_v38 = vadd.f32 %v3640_v3, %v3026_v28  ;;  %v2741_v33 = vadd.f32 %v2704_v61, %v5998_v58 }
 0x2cf   : > { %v4078_v40 = vadd.f32 %v4038_v31, %v3680_v38  ;;  %v2989_v59 = vpop.f32.mrf.mxu2 }
 0x2d0   : > { %v3027_v27 = vadd.f32 %v2989_v59, %v2740_v60 }
 0x2d1   : > { %v4114_v6 = vadd.f32 %v6335_v0, %v4078_v40 }
 0x2d3   : > { %v4146_v45 = vmax.f32 %v4114_v6, 0.0  ;;  %v4041_v54 = vpop.f32.mrf.mxu0 }
 0x2d4   : > { %v3643_v5 = vpop.f32.mrf.mxu3  ;;  %v2707_v37 = vpop.f32.mrf.mxu1 }
 0x2d5   : > { %4178 = vst [vmem:[%s6069_s15 + $0xd8] sm:$0xff] %v4146_v45  ;;  %v3681_v49 = vadd.f32 %v3643_v5, %v3027_v27  ;;  %v2742_v14 = vadd.f32 %v2707_v37, %v6016_v32 }
 0x2d7   : > { %v4079_v48 = vadd.f32 %v4041_v54, %v3681_v49  ;;  %v2991_v36 = vpop.f32.mrf.mxu2 }
 0x2d8   : > { %v3028_v1 = vadd.f32 %v2991_v36, %v2741_v33 }
 0x2d9   : > { %v4115_v21 = vadd.f32 %v6335_v0, %v4079_v48 }
 0x2db   : > { %v4147_v8 = vmax.f32 %v4115_v21, 0.0  ;;  %v4043_v24 = vpop.f32.mrf.mxu0 }
 0x2dc   : > { %v3645_v57 = vpop.f32.mrf.mxu3  ;;  %v2709_v12 = vpop.f32.mrf.mxu1 }
 0x2dd   : > { %4179 = vst [vmem:[%s6069_s15 + $0xe0] sm:$0xff] %v4147_v8  ;;  %v3682_v13 = vadd.f32 %v3645_v57, %v3028_v1  ;;  %v2743_v19 = vadd.f32 %v2709_v12, %v6037_v46 }
 0x2df   : > { %v4080_v22 = vadd.f32 %v4043_v24, %v3682_v13  ;;  %v2994_v39 = vpop.f32.mrf.mxu2 }
 0x2e0   : > { %v3029_v15 = vadd.f32 %v2994_v39, %v2742_v14 }
 0x2e1   : > { %v4116_v23 = vadd.f32 %v6335_v0, %v4080_v22 }
 0x2e3   : > { %v4148_v58 = vmax.f32 %v4116_v23, 0.0  ;;  %v4046_v51 = vpop.f32.mrf.mxu0 }
 0x2e4   : > { %v3648_v18 = vpop.f32.mrf.mxu3 }
 0x2e5   : > { %4180 = vst [vmem:[%s6069_s15 + $0xe8] sm:$0xff] %v4148_v58  ;;  %v3683_v11 = vadd.f32 %v3648_v18, %v3029_v15 }
 0x2e7   : > { %v4081_v10 = vadd.f32 %v4046_v51, %v3683_v11  ;;  %v2996_v41 = vpop.f32.mrf.mxu2 }
 0x2e8   : > { %v3030_v62 = vadd.f32 %v2996_v41, %v2743_v19 }
 0x2e9   : > { %v4117_v25 = vadd.f32 %v6335_v0, %v4081_v10 }
 0x2eb   : > { %v4149_v32 = vmax.f32 %v4117_v25, 0.0  ;;  %v4048_v17 = vpop.f32.mrf.mxu0 }
 0x2ec   : > { %v3650_v56 = vpop.f32.mrf.mxu3 }
 0x2ed   : > { %4181 = vst [vmem:[%s6069_s15 + $0xf0] sm:$0xff] %v4149_v32  ;;  %v3684_v4 = vadd.f32 %v3650_v56, %v3030_v62 }
 0x2ef   : > { %v4082_v42 = vadd.f32 %v4048_v17, %v3684_v4 }
 0x2f1   : > { %v4118_v34 = vadd.f32 %v6335_v0, %v4082_v42 }
 0x2f3   : > { %v4150_v29 = vmax.f32 %v4118_v34, 0.0 }
 0x2f5   : > { %4182 = vst [vmem:[%s6069_s15 + $0xf8] sm:$0xff] %v4150_v29 }
 0x2f6 PF: > { %s13_s12 = sadd.s32 1, %s4951_s12  }
 0x2f7   : > { %p10_p4 = scmp.ge.s32.totalorder %s13_s12, 4  }
 0x2f9   :  { %12 = sbr.rel (!%p10_p4) target bundleno = 1 (0x1), region = 72 }

</bundles_post_ra>
